<compile_context>
chip_gen: v7x
topology: tpu7x:2x2x1
jax: 0.10.0
libtpu: 0.0.40
codegen_flags: <defaults>
</compile_context>

<pallas_src>
import jax
import jax.numpy as jnp
from jax.experimental import pallas as pl
from jax.experimental.pallas import tpu as pltpu


def _round_up(n: int, m: int) -> int:
    return ((n + m - 1) // m) * m


def _num_tensorcores() -> int:
    """Best-effort TensorCore count of the default device (1 if unknown)."""
    try:
        dev = jax.devices()[0]
    except Exception:
        return 1
    for attr in ("num_cores", "core_count"):
        n = getattr(dev, attr, None)
        if isinstance(n, int) and n > 0:
            return max(1, min(n, 2))   # current TPUs have at most 2 TCs per device
    return 1


def mlp_kernel(x_ref, w1_ref, b1_ref, w2_ref, b2_ref, o_ref):
    # ----- linear1 + ReLU : MXU matmul, f32 accumulate -----
    h = jnp.dot(x_ref[...], w1_ref[...], preferred_element_type=jnp.float32)
    h = jnp.maximum(h + b1_ref[...], 0.0)                        # (tile_b, hpad)
    # ----- linear2 (out_features == 1) + sigmoid -----
    # N=1 would waste the MXU; VPU broadcast-multiply + XLU lane reduce instead.
    z = jnp.sum(h * w2_ref[...], axis=-1, keepdims=True) + b2_ref[0, 0]
    o_ref[...] = jax.nn.sigmoid(z).astype(o_ref.dtype)


@jax.jit
def neural_net_forward(x, w1_t, b1, w2_t, b2):
    """x: (B, input_size); w1_t: (input_size, hidden); b1: (1, hidden);
    w2_t: (hidden, 1); b2: (1, 1)  ->  (B, 1)"""
    B, in_size = x.shape
    H = w1_t.shape[1]
    dtype = x.dtype

    # Lane-pad hidden dim to a multiple of 128 (padded weights are 0 -> exact).
    hpad = _round_up(max(H, 128), 128)
    w1_p = jnp.pad(w1_t, ((0, 0), (0, hpad - H)))                    # (in_size, hpad)
    b1_p = jnp.pad(jnp.reshape(b1, (1, H)), ((0, 0), (0, hpad - H))) # (1, hpad)
    w2_row = jnp.pad(jnp.reshape(w2_t, (1, H)), ((0, 0), (0, hpad - H)))  # (1, hpad)
    b2_p = jnp.reshape(b2, (1, 1))                                   # SMEM scalar

    # One batch tile per TensorCore: grid=(1,) on v5e/v6e, (2,) on 2-TC parts.
    # No wrapper pad / output slice: Pallas masks the ragged last block.
    n_cores = _num_tensorcores()
    tile_b = min(_round_up(pl.cdiv(B, n_cores), 8), 4096)
    n_tiles = pl.cdiv(B, tile_b)

    return pl.pallas_call(
        mlp_kernel,
        out_shape=jax.ShapeDtypeStruct((B, 1), dtype),
        grid=(n_tiles,),
        in_specs=[
            pl.BlockSpec((tile_b, in_size), lambda i: (i, 0)),     # x tile (pipelined)
            pl.BlockSpec((in_size, hpad), lambda i: (0, 0)),       # w1 (VMEM-resident)
            pl.BlockSpec((1, hpad), lambda i: (0, 0)),             # b1 (resident)
            pl.BlockSpec((1, hpad), lambda i: (0, 0)),             # w2 row (resident)
            pl.BlockSpec(memory_space=pltpu.MemorySpace.SMEM),     # b2 scalar (SMEM)
        ],
        out_specs=pl.BlockSpec((tile_b, 1), lambda i: (i, 0)),
        compiler_params=pltpu.CompilerParams(
            dimension_semantics=("parallel",),     # shard batch tiles across TCs
            vmem_limit_bytes=32 * 1024 * 1024,     # safe on 64 MiB (v7x) and 128 MiB parts
        ),
    )(x, w1_p, b1_p, w2_row, b2_p)


if __name__ == "__main__":
    batch, input_size, hidden_size = 1000, 16, 32   # non-multiple batch exercises ragged block

    key = jax.random.PRNGKey(0)
    kx, kw1, kb1, kw2, kb2 = jax.random.split(key, 5)

    x = jax.random.normal(kx, (batch, input_size), dtype=jnp.float32)

    # Deterministic init mimicking nn.Linear's U(-1/sqrt(fan_in), 1/sqrt(fan_in)).
    bound1 = 1.0 / (input_size ** 0.5)
    w1_t = jax.random.uniform(kw1, (input_size, hidden_size),
                              minval=-bound1, maxval=bound1, dtype=jnp.float32)
    b1 = jax.random.uniform(kb1, (1, hidden_size),
                            minval=-bound1, maxval=bound1, dtype=jnp.float32)

    bound2 = 1.0 / (hidden_size ** 0.5)
    w2_t = jax.random.uniform(kw2, (hidden_size, 1),
                              minval=-bound2, maxval=bound2, dtype=jnp.float32)
    b2 = jax.random.uniform(kb2, (1, 1),
                            minval=-bound2, maxval=bound2, dtype=jnp.float32)

    out = neural_net_forward(x, w1_t, b1, w2_t, b2)
    out = jax.block_until_ready(out)

    # Pure-JAX reference check
    ref = jax.nn.sigmoid(jnp.maximum(x @ w1_t + b1, 0.0) @ w2_t + b2)
    assert out.shape == (batch, 1)
    assert jnp.allclose(out, ref, atol=1e-5), "mismatch vs reference"

    print("KERNEL_OK")
</pallas_src>

<mosaic_0001>
module attributes {stable_mosaic.version = 11 : i64} {
  func.func @mlp_kernel(%arg0: i32, %arg1: memref<1000x16xf32, #tpu.memory_space<vmem>>, %arg2: memref<16x128xf32, #tpu.memory_space<vmem>>, %arg3: memref<1x128xf32, #tpu.memory_space<vmem>>, %arg4: memref<1x128xf32, #tpu.memory_space<vmem>>, %arg5: memref<1x1xf32, #tpu.memory_space<smem>>, %arg6: memref<1000x1xf32, #tpu.memory_space<vmem>>) attributes {dimension_semantics = [#tpu.dimension_semantics<parallel>], iteration_bounds = array<i64: 1>, scalar_prefetch = 0 : i64, scratch_operands = 0 : i64, tpu.core_type = #tpu.core_type<tc>, window_params = [{transform_indices = @transform_0, window_bounds = array<i64: 1000, 16>}, {pipeline_mode = #tpu.pipeline_mode<synchronous>, transform_indices = @transform_1, window_bounds = array<i64: 16, 128>}, {pipeline_mode = #tpu.pipeline_mode<synchronous>, transform_indices = @transform_2, window_bounds = array<i64: 1, 128>}, {pipeline_mode = #tpu.pipeline_mode<synchronous>, transform_indices = @transform_3, window_bounds = array<i64: 1, 128>}, {transform_indices = @transform_4, window_bounds = array<i64: 1, 1>}, {transform_indices = @transform_5, window_bounds = array<i64: 1000, 1>}]} {
    %c0 = arith.constant 0 : index
    %c0_0 = arith.constant 0 : index
    %0 = vector.load %arg1[%c0, %c0_0] : memref<1000x16xf32, #tpu.memory_space<vmem>>, vector<1000x16xf32>
    %c0_1 = arith.constant 0 : index
    %c0_2 = arith.constant 0 : index
    %1 = vector.load %arg2[%c0_1, %c0_2] : memref<16x128xf32, #tpu.memory_space<vmem>>, vector<16x128xf32>
    %cst = arith.constant dense<0.000000e+00> : vector<1000x128xf32>
    %2 = tpu.matmul %0, %1, %cst {dimension_numbers = #tpu.dot_dimension_numbers<[1], [0], [0], [1], [0, 0, 1, 1], [], []>} : vector<1000x16xf32>, vector<16x128xf32>, vector<1000x128xf32> -> vector<1000x128xf32>
    %c0_3 = arith.constant 0 : index
    %c0_4 = arith.constant 0 : index
    %3 = vector.load %arg3[%c0_3, %c0_4] : memref<1x128xf32, #tpu.memory_space<vmem>>, vector<1x128xf32>
    %4 = vector.broadcast %3 : vector<1x128xf32> to vector<1000x128xf32>
    %5 = arith.addf %2, %4 : vector<1000x128xf32>
    %cst_5 = arith.constant 0.000000e+00 : f32
    %6 = vector.broadcast %cst_5 : f32 to vector<1000x128xf32>
    %7 = arith.maximumf %5, %6 : vector<1000x128xf32>
    %c0_6 = arith.constant 0 : index
    %c0_7 = arith.constant 0 : index
    %8 = vector.load %arg4[%c0_6, %c0_7] : memref<1x128xf32, #tpu.memory_space<vmem>>, vector<1x128xf32>
    %9 = vector.broadcast %8 : vector<1x128xf32> to vector<1000x128xf32>
    %10 = arith.mulf %7, %9 : vector<1000x128xf32>
    %cst_8 = arith.constant dense<0.000000e+00> : vector<1000xf32>
    %11 = vector.multi_reduction <add>, %10, %cst_8 [1] : vector<1000x128xf32> to vector<1000xf32>
    %12 = vector.shape_cast %11 : vector<1000xf32> to vector<1000x1xf32>
    %c0_9 = arith.constant 0 : index
    %c0_10 = arith.constant 0 : index
    %13 = memref.load %arg5[%c0_9, %c0_10] : memref<1x1xf32, #tpu.memory_space<smem>>
    %14 = vector.broadcast %13 : f32 to vector<1000x1xf32>
    %15 = arith.addf %12, %14 : vector<1000x1xf32>
    %16 = arith.negf %15 : vector<1000x1xf32>
    %17 = math.exp %16 : vector<1000x1xf32>
    %cst_11 = arith.constant 1.000000e+00 : f32
    %18 = vector.broadcast %cst_11 : f32 to vector<1000x1xf32>
    %19 = arith.addf %18, %17 : vector<1000x1xf32>
    %20 = arith.divf %18, %19 : vector<1000x1xf32>
    %c0_12 = arith.constant 0 : index
    %c0_13 = arith.constant 0 : index
    %21 = vector.load %arg6[%c0_12, %c0_13] : memref<1000x1xf32, #tpu.memory_space<vmem>>, vector<1000x1xf32>
    tpu.vector_store %arg6[%c0_12, %c0_13], %20 {strides = array<i32>} : memref<1000x1xf32, #tpu.memory_space<vmem>>, vector<1000x1xf32>,
    return
  }
  func.func @transform_0(%arg0: i32) -> (i32, i32) {
    %c0_i32 = arith.constant 0 : i32
    %c0_i32_0 = arith.constant 0 : i32
    return %arg0, %c0_i32 : i32, i32
  }
  func.func @transform_1(%arg0: i32) -> (i32, i32) {
    %c0_i32 = arith.constant 0 : i32
    %c0_i32_0 = arith.constant 0 : i32
    %c0_i32_1 = arith.constant 0 : i32
    return %c0_i32, %c0_i32_0 : i32, i32
  }
  func.func @transform_2(%arg0: i32) -> (i32, i32) {
    %c0_i32 = arith.constant 0 : i32
    %c0_i32_0 = arith.constant 0 : i32
    %c0_i32_1 = arith.constant 0 : i32
    return %c0_i32, %c0_i32_0 : i32, i32
  }
  func.func @transform_3(%arg0: i32) -> (i32, i32) {
    %c0_i32 = arith.constant 0 : i32
    %c0_i32_0 = arith.constant 0 : i32
    %c0_i32_1 = arith.constant 0 : i32
    return %c0_i32, %c0_i32_0 : i32, i32
  }
  func.func @transform_4(%arg0: i32) -> (i32, i32) {
    %c0_i32 = arith.constant 0 : i32
    %c0_i32_0 = arith.constant 0 : i32
    %c0_i32_1 = arith.constant 0 : i32
    return %c0_i32, %c0_i32_0 : i32, i32
  }
  func.func @transform_5(%arg0: i32) -> (i32, i32) {
    %c0_i32 = arith.constant 0 : i32
    %c0_i32_0 = arith.constant 0 : i32
    return %arg0, %c0_i32 : i32, i32
  }
}

</mosaic_0001>

<bundles_post_ra>
// kernel: neural_net_forward.1
= control target key start
LH: loop header
LB: loop body
LE: loop exit
PB: predicated region body
PF: predicated region fallthrough
CT: control target
= control target key end

     0   :  { %v4005_v0 = vmov 0.0|0.0   ;;  %vm4006_vm0 = vmmov 0   ;;  %v4007_v4 = vmov 0.0   ;;  %vm155_vm1 = vcmask 130048   ;;  %s5707_s1 = inlined_call_operand.vmem [shape: f32[16,128], index: 1, kind: input, shape index: {}]   ;;  %s5708_s0 = inlined_call_operand.vmem [shape: f32[1000,16], index: 0, kind: input, shape index: {}]   ;;  %s5709_s2 = inlined_call_operand.vmem [shape: f32[1,128], index: 2, kind: input, shape index: {}]   ;;  %s5710_s3 = inlined_call_operand.vmem [shape: f32[1,128], index: 3, kind: input, shape index: {}]   ;;  %s5711_s4 = inlined_call_operand.<no memory space> [shape: f32[1,1], index: 4, kind: input, shape index: {}]   ;;  %s5712_s5 = inlined_call_operand.vmem [shape: f32[1000,1], index: 5, kind: output, shape index: {}]  }
   0x1   :  { %3493 = vmatprep.subr.bf16.mxu0 %v4005_v0  ;;  %3496 = vmatprep.subr.bf16.mxu1 %v4005_v0  ;;  %v146_v1 = vld [vmem:[%s5707_s1] sm:$0xff]  ;;  %v147_v2 = vld [vmem:[%s5707_s1 + $0x8] sm:$0xff]  ;;  %v84_v6 = vld [vmem:[%s5708_s0 + $0x1f8] sm:$0xff]  ;;  %vm2605_vm2 = vcmask 7168  }
   0x2   :  { %v3494_v3 = vpack.c.bf16 %v147_v2, %v146_v1  ;;  %3118 = vmatprep.mubr.msk.f32.mxu0 %vm4006_vm0, %v4007_v4  ;;  %3307 = vmatprep.mubr.msk.f32.mxu1 %vm4006_vm0, %v4007_v4  ;;  %v21_v5 = vld [vmem:[%s5708_s0] sm:$0xff]  ;;  %v22_v7 = vld [vmem:[%s5708_s0 + $0x8] sm:$0xff]  ;;  %v23_v9 = vld [vmem:[%s5708_s0 + $0x10] sm:$0xff] }
   0x3   :  { %v85_v8 = vld [vmem:[%s5708_s0 + $0x200] sm:$0xff]  ;;  %v86_v10 = vld [vmem:[%s5708_s0 + $0x208] sm:$0xff]  ;;  %v24_v11 = vld [vmem:[%s5708_s0 + $0x18] sm:$0xff] }
   0x4   :  { %3495 = vmatpush3.bf16.msra.mxu0 %v3494_v3  ;;  %3497 = vmatpush3.bf16.msra.mxu1 %v3494_v3  ;;  %v87_v12 = vld [vmem:[%s5708_s0 + $0x210] sm:$0xff]  ;;  %v25_v13 = vld [vmem:[%s5708_s0 + $0x20] sm:$0xff]  ;;  %v88_v14 = vld [vmem:[%s5708_s0 + $0x218] sm:$0xff] }
   0x5   :  { %v26_v15 = vld [vmem:[%s5708_s0 + $0x28] sm:$0xff]  ;;  %v89_v16 = vld [vmem:[%s5708_s0 + $0x220] sm:$0xff]  ;;  %v27_v17 = vld [vmem:[%s5708_s0 + $0x30] sm:$0xff] }
   0x6   :  { %v90_v18 = vld [vmem:[%s5708_s0 + $0x228] sm:$0xff]  ;;  %v28_v19 = vld [vmem:[%s5708_s0 + $0x38] sm:$0xff]  ;;  %v91_v20 = vld [vmem:[%s5708_s0 + $0x230] sm:$0xff] }
   0x7   :  { %3119 = vmatmul.mubr.msk.f32.vlgmr.msra.gmra.mrb[0].mxu0 %vm155_vm1, %v21_v5  ;;  %3308 = vmatmul.mubr.msk.f32.vlgmr.msra.gmra.mrb[0].mxu1 %vm155_vm1, %v84_v6  ;;  %v29_v21 = vld [vmem:[%s5708_s0 + $0x40] sm:$0xff]  ;;  %v92_v22 = vld [vmem:[%s5708_s0 + $0x238] sm:$0xff]  ;;  %v30_v23 = vld [vmem:[%s5708_s0 + $0x48] sm:$0xff] }
   0x8   :  { %3121 = vmatprep.mubr.msk.f32.mxu0 %vm4006_vm0, %v4007_v4  ;;  %3310 = vmatprep.mubr.msk.f32.mxu1 %vm4006_vm0, %v4007_v4  ;;  %v93_v24 = vld [vmem:[%s5708_s0 + $0x240] sm:$0xff]  ;;  %v31_v25 = vld [vmem:[%s5708_s0 + $0x50] sm:$0xff]  ;;  %v94_v26 = vld [vmem:[%s5708_s0 + $0x248] sm:$0xff] }
   0x9   :  { %v32_v27 = vld [vmem:[%s5708_s0 + $0x58] sm:$0xff]  ;;  %v95_v28 = vld [vmem:[%s5708_s0 + $0x250] sm:$0xff]  ;;  %v33_v29 = vld [vmem:[%s5708_s0 + $0x60] sm:$0xff] }
   0xa   :  { %v96_v30 = vld [vmem:[%s5708_s0 + $0x258] sm:$0xff]  ;;  %v34_v31 = vld [vmem:[%s5708_s0 + $0x68] sm:$0xff]  ;;  %v97_v32 = vld [vmem:[%s5708_s0 + $0x260] sm:$0xff] }
   0xb   :  { %3122 = vmatmul.mubr.msk.f32.gmra.mrb[2].mxu0 %vm155_vm1, %v22_v7  ;;  %3311 = vmatmul.mubr.msk.f32.gmra.mrb[2].mxu1 %vm155_vm1, %v85_v8  ;;  %v35_v33 = vld [vmem:[%s5708_s0 + $0x70] sm:$0xff]  ;;  %v98_v34 = vld [vmem:[%s5708_s0 + $0x268] sm:$0xff]  ;;  %v36_v35 = vld [vmem:[%s5708_s0 + $0x78] sm:$0xff] }
   0xc   :  { %3124 = vmatprep.mubr.msk.f32.mxu0 %vm4006_vm0, %v4007_v4  ;;  %3313 = vmatprep.mubr.msk.f32.mxu1 %vm4006_vm0, %v4007_v4  ;;  %v99_v36 = vld [vmem:[%s5708_s0 + $0x270] sm:$0xff]  ;;  %v37_v37 = vld [vmem:[%s5708_s0 + $0x80] sm:$0xff]  ;;  %v100_v38 = vld [vmem:[%s5708_s0 + $0x278] sm:$0xff] }
   0xd   :  { %v38_v39 = vld [vmem:[%s5708_s0 + $0x88] sm:$0xff]  ;;  %v101_v40 = vld [vmem:[%s5708_s0 + $0x280] sm:$0xff]  ;;  %v39_v41 = vld [vmem:[%s5708_s0 + $0x90] sm:$0xff] }
   0xe   :  { %v102_v42 = vld [vmem:[%s5708_s0 + $0x288] sm:$0xff]  ;;  %v40_v43 = vld [vmem:[%s5708_s0 + $0x98] sm:$0xff]  ;;  %v103_v44 = vld [vmem:[%s5708_s0 + $0x290] sm:$0xff] }
   0xf   :  { %3125 = vmatmul.mubr.msk.f32.gmra.mrb[4].mxu0 %vm155_vm1, %v23_v9  ;;  %3314 = vmatmul.mubr.msk.f32.gmra.mrb[4].mxu1 %vm155_vm1, %v86_v10  ;;  %v41_v45 = vld [vmem:[%s5708_s0 + $0xa0] sm:$0xff]  ;;  %v104_v46 = vld [vmem:[%s5708_s0 + $0x298] sm:$0xff]  ;;  %v42_v47 = vld [vmem:[%s5708_s0 + $0xa8] sm:$0xff] }
  0x10   :  { %3127 = vmatprep.mubr.msk.f32.mxu0 %vm4006_vm0, %v4007_v4  ;;  %3316 = vmatprep.mubr.msk.f32.mxu1 %vm4006_vm0, %v4007_v4  ;;  %v105_v48 = vld [vmem:[%s5708_s0 + $0x2a0] sm:$0xff]  ;;  %v43_v49 = vld [vmem:[%s5708_s0 + $0xb0] sm:$0xff]  ;;  %v106_v50 = vld [vmem:[%s5708_s0 + $0x2a8] sm:$0xff] }
  0x11   :  { %v44_v51 = vld [vmem:[%s5708_s0 + $0xb8] sm:$0xff]  ;;  %v107_v52 = vld [vmem:[%s5708_s0 + $0x2b0] sm:$0xff]  ;;  %v45_v53 = vld [vmem:[%s5708_s0 + $0xc0] sm:$0xff] }
  0x12   :  { %v108_v54 = vld [vmem:[%s5708_s0 + $0x2b8] sm:$0xff]  ;;  %v46_v55 = vld [vmem:[%s5708_s0 + $0xc8] sm:$0xff]  ;;  %v109_v56 = vld [vmem:[%s5708_s0 + $0x2c0] sm:$0xff] }
  0x13   :  { %3128 = vmatmul.mubr.msk.f32.gmra.mrb[6].mxu0 %vm155_vm1, %v24_v11  ;;  %3317 = vmatmul.mubr.msk.f32.gmra.mrb[6].mxu1 %vm155_vm1, %v87_v12  ;;  %v47_v57 = vld [vmem:[%s5708_s0 + $0xd0] sm:$0xff]  ;;  %v110_v58 = vld [vmem:[%s5708_s0 + $0x2c8] sm:$0xff]  ;;  %v48_v59 = vld [vmem:[%s5708_s0 + $0xd8] sm:$0xff] }
  0x14   :  { %3130 = vmatprep.mubr.msk.f32.mxu0 %vm4006_vm0, %v4007_v4  ;;  %3319 = vmatprep.mubr.msk.f32.mxu1 %vm4006_vm0, %v4007_v4  ;;  %v111_v60 = vld [vmem:[%s5708_s0 + $0x2d0] sm:$0xff]  ;;  %v49_v61 = vld [vmem:[%s5708_s0 + $0xe0] sm:$0xff]  ;;  %v112_v62 = vld [vmem:[%s5708_s0 + $0x2d8] sm:$0xff] }
  0x15   :  { %v50_v63 = vld [vmem:[%s5708_s0 + $0xe8] sm:$0xff]  ;;  %v113_v0 = vld [vmem:[%s5708_s0 + $0x2e0] sm:$0xff]  ;;  %v51_v1 = vld [vmem:[%s5708_s0 + $0xf0] sm:$0xff] }
  0x16   :  { %v114_v2 = vld [vmem:[%s5708_s0 + $0x2e8] sm:$0xff]  ;;  %v52_v3 = vld [vmem:[%s5708_s0 + $0xf8] sm:$0xff]  ;;  %v115_v5 = vld [vmem:[%s5708_s0 + $0x2f0] sm:$0xff] }
  0x17   :  { %3131 = vmatmul.mubr.msk.f32.gmra.mrb[8].mxu0 %vm155_vm1, %v25_v13  ;;  %3320 = vmatmul.mubr.msk.f32.gmra.mrb[8].mxu1 %vm155_vm1, %v88_v14  ;;  %v53_v6 = vld [vmem:[%s5708_s0 + $0x100] sm:$0xff]  ;;  %v116_v7 = vld [vmem:[%s5708_s0 + $0x2f8] sm:$0xff]  ;;  %v54_v8 = vld [vmem:[%s5708_s0 + $0x108] sm:$0xff] }
  0x18   :  { %3133 = vmatprep.mubr.msk.f32.mxu0 %vm4006_vm0, %v4007_v4  ;;  %3322 = vmatprep.mubr.msk.f32.mxu1 %vm4006_vm0, %v4007_v4  ;;  %v117_v9 = vld [vmem:[%s5708_s0 + $0x300] sm:$0xff]  ;;  %v55_v10 = vld [vmem:[%s5708_s0 + $0x110] sm:$0xff]  ;;  %v118_v11 = vld [vmem:[%s5708_s0 + $0x308] sm:$0xff] }
  0x19   :  { %v56_v12 = vld [vmem:[%s5708_s0 + $0x118] sm:$0xff]  ;;  %v119_v13 = vld [vmem:[%s5708_s0 + $0x310] sm:$0xff]  ;;  %v57_v14 = vld [vmem:[%s5708_s0 + $0x120] sm:$0xff] }
  0x1b   :  { %3134 = vmatmul.mubr.msk.f32.gmra.mrb[10].mxu0 %vm155_vm1, %v26_v15  ;;  %3323 = vmatmul.mubr.msk.f32.gmra.mrb[10].mxu1 %vm155_vm1, %v89_v16  ;;  %v120_v15 = vld [vmem:[%s5708_s0 + $0x318] sm:$0xff]  ;;  %v58_v16 = vld [vmem:[%s5708_s0 + $0x128] sm:$0xff] }
  0x1c   :  { %3136 = vmatprep.mubr.msk.f32.mxu0 %vm4006_vm0, %v4007_v4  ;;  %3325 = vmatprep.mubr.msk.f32.mxu1 %vm4006_vm0, %v4007_v4 }
  0x1f   :  { %3137 = vmatmul.mubr.msk.f32.gmra.mrb[12].mxu0 %vm155_vm1, %v27_v17  ;;  %3326 = vmatmul.mubr.msk.f32.gmra.mrb[12].mxu1 %vm155_vm1, %v90_v18  ;;  %v121_v17 = vld [vmem:[%s5708_s0 + $0x320] sm:$0xff]  ;;  %v59_v18 = vld [vmem:[%s5708_s0 + $0x130] sm:$0xff] }
  0x20   :  { %3139 = vmatprep.mubr.msk.f32.mxu0 %vm4006_vm0, %v4007_v4  ;;  %3328 = vmatprep.mubr.msk.f32.mxu1 %vm4006_vm0, %v4007_v4 }
  0x23   :  { %3140 = vmatmul.mubr.msk.f32.gmra.mrb[14].mxu0 %vm155_vm1, %v28_v19  ;;  %3329 = vmatmul.mubr.msk.f32.gmra.mrb[14].mxu1 %vm155_vm1, %v91_v20  ;;  %v122_v19 = vld [vmem:[%s5708_s0 + $0x328] sm:$0xff]  ;;  %v60_v20 = vld [vmem:[%s5708_s0 + $0x138] sm:$0xff] }
  0x24   :  { %3142 = vmatprep.mubr.msk.f32.mxu0 %vm4006_vm0, %v4007_v4  ;;  %3331 = vmatprep.mubr.msk.f32.mxu1 %vm4006_vm0, %v4007_v4 }
  0x27   :  { %3143 = vmatmul.mubr.msk.f32.gmra.mrb[16].mxu0 %vm155_vm1, %v29_v21  ;;  %3332 = vmatmul.mubr.msk.f32.gmra.mrb[16].mxu1 %vm155_vm1, %v92_v22  ;;  %v123_v21 = vld [vmem:[%s5708_s0 + $0x330] sm:$0xff]  ;;  %v61_v22 = vld [vmem:[%s5708_s0 + $0x140] sm:$0xff] }
  0x28   :  { %3145 = vmatprep.mubr.msk.f32.mxu0 %vm4006_vm0, %v4007_v4  ;;  %3334 = vmatprep.mubr.msk.f32.mxu1 %vm4006_vm0, %v4007_v4 }
  0x2b   :  { %3146 = vmatmul.mubr.msk.f32.gmra.mrb[18].mxu0 %vm155_vm1, %v30_v23  ;;  %3335 = vmatmul.mubr.msk.f32.gmra.mrb[18].mxu1 %vm155_vm1, %v93_v24  ;;  %v124_v23 = vld [vmem:[%s5708_s0 + $0x338] sm:$0xff]  ;;  %v62_v24 = vld [vmem:[%s5708_s0 + $0x148] sm:$0xff] }
  0x2c   :  { %3148 = vmatprep.mubr.msk.f32.mxu0 %vm4006_vm0, %v4007_v4  ;;  %3337 = vmatprep.mubr.msk.f32.mxu1 %vm4006_vm0, %v4007_v4 }
  0x2f   :  { %3149 = vmatmul.mubr.msk.f32.gmra.mrb[20].mxu0 %vm155_vm1, %v31_v25  ;;  %3338 = vmatmul.mubr.msk.f32.gmra.mrb[20].mxu1 %vm155_vm1, %v94_v26  ;;  %v125_v25 = vld [vmem:[%s5708_s0 + $0x340] sm:$0xff]  ;;  %v63_v26 = vld [vmem:[%s5708_s0 + $0x150] sm:$0xff] }
  0x30   :  { %3151 = vmatprep.mubr.msk.f32.mxu0 %vm4006_vm0, %v4007_v4  ;;  %3340 = vmatprep.mubr.msk.f32.mxu1 %vm4006_vm0, %v4007_v4 }
  0x33   :  { %3152 = vmatmul.mubr.msk.f32.gmra.mrb[22].mxu0 %vm155_vm1, %v32_v27  ;;  %3341 = vmatmul.mubr.msk.f32.gmra.mrb[22].mxu1 %vm155_vm1, %v95_v28  ;;  %v126_v27 = vld [vmem:[%s5708_s0 + $0x348] sm:$0xff]  ;;  %v64_v28 = vld [vmem:[%s5708_s0 + $0x158] sm:$0xff] }
  0x34   :  { %3154 = vmatprep.mubr.msk.f32.mxu0 %vm4006_vm0, %v4007_v4  ;;  %3343 = vmatprep.mubr.msk.f32.mxu1 %vm4006_vm0, %v4007_v4 }
  0x37   :  { %3155 = vmatmul.mubr.msk.f32.gmra.mrb[24].mxu0 %vm155_vm1, %v33_v29  ;;  %3344 = vmatmul.mubr.msk.f32.gmra.mrb[24].mxu1 %vm155_vm1, %v96_v30  ;;  %v127_v29 = vld [vmem:[%s5708_s0 + $0x350] sm:$0xff]  ;;  %v65_v30 = vld [vmem:[%s5708_s0 + $0x160] sm:$0xff] }
  0x38   :  { %3157 = vmatprep.mubr.msk.f32.mxu0 %vm4006_vm0, %v4007_v4  ;;  %3346 = vmatprep.mubr.msk.f32.mxu1 %vm4006_vm0, %v4007_v4 }
  0x3b   :  { %3158 = vmatmul.mubr.msk.f32.gmra.mrb[26].mxu0 %vm155_vm1, %v34_v31  ;;  %3347 = vmatmul.mubr.msk.f32.gmra.mrb[26].mxu1 %vm155_vm1, %v97_v32  ;;  %v128_v31 = vld [vmem:[%s5708_s0 + $0x358] sm:$0xff]  ;;  %v66_v32 = vld [vmem:[%s5708_s0 + $0x168] sm:$0xff] }
  0x3c   :  { %3160 = vmatprep.mubr.msk.f32.mxu0 %vm4006_vm0, %v4007_v4  ;;  %3349 = vmatprep.mubr.msk.f32.mxu1 %vm4006_vm0, %v4007_v4 }
  0x3f   :  { %3161 = vmatmul.mubr.msk.f32.gmra.mrb[28].mxu0 %vm155_vm1, %v35_v33  ;;  %3350 = vmatmul.mubr.msk.f32.gmra.mrb[28].mxu1 %vm155_vm1, %v98_v34  ;;  %v129_v33 = vld [vmem:[%s5708_s0 + $0x360] sm:$0xff]  ;;  %v67_v34 = vld [vmem:[%s5708_s0 + $0x170] sm:$0xff] }
  0x40   :  { %3163 = vmatprep.mubr.msk.f32.mxu0 %vm4006_vm0, %v4007_v4  ;;  %3352 = vmatprep.mubr.msk.f32.mxu1 %vm4006_vm0, %v4007_v4 }
  0x43   :  { %3164 = vmatmul.mubr.msk.f32.gmra.mrb[30].mxu0 %vm155_vm1, %v36_v35  ;;  %3353 = vmatmul.mubr.msk.f32.gmra.mrb[30].mxu1 %vm155_vm1, %v99_v36  ;;  %v130_v35 = vld [vmem:[%s5708_s0 + $0x368] sm:$0xff]  ;;  %v68_v36 = vld [vmem:[%s5708_s0 + $0x178] sm:$0xff] }
  0x44   :  { %3166 = vmatprep.mubr.msk.f32.mxu0 %vm4006_vm0, %v4007_v4  ;;  %3355 = vmatprep.mubr.msk.f32.mxu1 %vm4006_vm0, %v4007_v4 }
  0x47   :  { %3167 = vmatmul.mubr.msk.f32.gmra.mrb[32].mxu0 %vm155_vm1, %v37_v37  ;;  %3356 = vmatmul.mubr.msk.f32.gmra.mrb[32].mxu1 %vm155_vm1, %v100_v38  ;;  %v131_v37 = vld [vmem:[%s5708_s0 + $0x370] sm:$0xff]  ;;  %v69_v38 = vld [vmem:[%s5708_s0 + $0x180] sm:$0xff] }
  0x48   :  { %3169 = vmatprep.mubr.msk.f32.mxu0 %vm4006_vm0, %v4007_v4  ;;  %3358 = vmatprep.mubr.msk.f32.mxu1 %vm4006_vm0, %v4007_v4 }
  0x4b   :  { %3170 = vmatmul.mubr.msk.f32.gmra.mrb[34].mxu0 %vm155_vm1, %v38_v39  ;;  %3359 = vmatmul.mubr.msk.f32.gmra.mrb[34].mxu1 %vm155_vm1, %v101_v40  ;;  %v132_v39 = vld [vmem:[%s5708_s0 + $0x378] sm:$0xff]  ;;  %v70_v40 = vld [vmem:[%s5708_s0 + $0x188] sm:$0xff] }
  0x4c   :  { %3172 = vmatprep.mubr.msk.f32.mxu0 %vm4006_vm0, %v4007_v4  ;;  %3361 = vmatprep.mubr.msk.f32.mxu1 %vm4006_vm0, %v4007_v4 }
  0x4f   :  { %3173 = vmatmul.mubr.msk.f32.gmra.mrb[36].mxu0 %vm155_vm1, %v39_v41  ;;  %3362 = vmatmul.mubr.msk.f32.gmra.mrb[36].mxu1 %vm155_vm1, %v102_v42  ;;  %v133_v41 = vld [vmem:[%s5708_s0 + $0x380] sm:$0xff]  ;;  %v71_v42 = vld [vmem:[%s5708_s0 + $0x190] sm:$0xff] }
  0x50   :  { %3175 = vmatprep.mubr.msk.f32.mxu0 %vm4006_vm0, %v4007_v4  ;;  %3364 = vmatprep.mubr.msk.f32.mxu1 %vm4006_vm0, %v4007_v4 }
  0x53   :  { %3176 = vmatmul.mubr.msk.f32.gmra.mrb[38].mxu0 %vm155_vm1, %v40_v43  ;;  %3365 = vmatmul.mubr.msk.f32.gmra.mrb[38].mxu1 %vm155_vm1, %v103_v44  ;;  %v134_v43 = vld [vmem:[%s5708_s0 + $0x388] sm:$0xff]  ;;  %v72_v44 = vld [vmem:[%s5708_s0 + $0x198] sm:$0xff] }
  0x54   :  { %3178 = vmatprep.mubr.msk.f32.mxu0 %vm4006_vm0, %v4007_v4  ;;  %3367 = vmatprep.mubr.msk.f32.mxu1 %vm4006_vm0, %v4007_v4 }
  0x57   :  { %3179 = vmatmul.mubr.msk.f32.gmra.mrb[40].mxu0 %vm155_vm1, %v41_v45  ;;  %3368 = vmatmul.mubr.msk.f32.gmra.mrb[40].mxu1 %vm155_vm1, %v104_v46  ;;  %v135_v45 = vld [vmem:[%s5708_s0 + $0x390] sm:$0xff]  ;;  %v73_v46 = vld [vmem:[%s5708_s0 + $0x1a0] sm:$0xff] }
  0x58   :  { %3181 = vmatprep.mubr.msk.f32.mxu0 %vm4006_vm0, %v4007_v4  ;;  %3370 = vmatprep.mubr.msk.f32.mxu1 %vm4006_vm0, %v4007_v4 }
  0x5b   :  { %3182 = vmatmul.mubr.msk.f32.gmra.mrb[42].mxu0 %vm155_vm1, %v42_v47  ;;  %3371 = vmatmul.mubr.msk.f32.gmra.mrb[42].mxu1 %vm155_vm1, %v105_v48  ;;  %v136_v47 = vld [vmem:[%s5708_s0 + $0x398] sm:$0xff]  ;;  %v4683_v48 = vld [vmem:[%s5709_s2] ss:$0 sm:$0xff] }
  0x5c   :  { %3184 = vmatprep.mubr.msk.f32.mxu0 %vm4006_vm0, %v4007_v4  ;;  %3373 = vmatprep.mubr.msk.f32.mxu1 %vm4006_vm0, %v4007_v4 }
  0x5f   :  { %3185 = vmatmul.mubr.msk.f32.gmra.mrb[44].mxu0 %vm155_vm1, %v43_v49  ;;  %3374 = vmatmul.mubr.msk.f32.gmra.mrb[44].mxu1 %vm155_vm1, %v106_v50  ;;  %v74_v49 = vld [vmem:[%s5708_s0 + $0x1a8] sm:$0xff]  ;;  %v137_v50 = vld [vmem:[%s5708_s0 + $0x3a0] sm:$0xff] }
  0x60   :  { %3187 = vmatprep.mubr.msk.f32.mxu0 %vm4006_vm0, %v4007_v4  ;;  %3376 = vmatprep.mubr.msk.f32.mxu1 %vm4006_vm0, %v4007_v4 }
  0x63   :  { %3188 = vmatmul.mubr.msk.f32.gmra.mrb[46].mxu0 %vm155_vm1, %v44_v51  ;;  %3377 = vmatmul.mubr.msk.f32.gmra.mrb[46].mxu1 %vm155_vm1, %v107_v52 }
  0x64   :  { %3190 = vmatprep.mubr.msk.f32.mxu0 %vm4006_vm0, %v4007_v4  ;;  %3379 = vmatprep.mubr.msk.f32.mxu1 %vm4006_vm0, %v4007_v4 }
  0x67   :  { %3191 = vmatmul.mubr.msk.f32.gmra.mrb[48].mxu0 %vm155_vm1, %v45_v53  ;;  %3380 = vmatmul.mubr.msk.f32.gmra.mrb[48].mxu1 %vm155_vm1, %v108_v54 }
  0x68   :  { %3193 = vmatprep.mubr.msk.f32.mxu0 %vm4006_vm0, %v4007_v4  ;;  %3382 = vmatprep.mubr.msk.f32.mxu1 %vm4006_vm0, %v4007_v4 }
  0x6b   :  { %3194 = vmatmul.mubr.msk.f32.gmra.mrb[50].mxu0 %vm155_vm1, %v46_v55  ;;  %3383 = vmatmul.mubr.msk.f32.gmra.mrb[50].mxu1 %vm155_vm1, %v109_v56 }
  0x6c   :  { %3196 = vmatprep.mubr.msk.f32.mxu0 %vm4006_vm0, %v4007_v4  ;;  %3385 = vmatprep.mubr.msk.f32.mxu1 %vm4006_vm0, %v4007_v4 }
  0x6f   :  { %3197 = vmatmul.mubr.msk.f32.gmra.mrb[52].mxu0 %vm155_vm1, %v47_v57  ;;  %3386 = vmatmul.mubr.msk.f32.gmra.mrb[52].mxu1 %vm155_vm1, %v110_v58  ;;  %v75_v57 = vld [vmem:[%s5708_s0 + $0x1b0] sm:$0xff]  ;;  %v138_v58 = vld [vmem:[%s5708_s0 + $0x3a8] sm:$0xff] }
  0x70   :  { %3199 = vmatprep.mubr.msk.f32.mxu0 %vm4006_vm0, %v4007_v4  ;;  %3388 = vmatprep.mubr.msk.f32.mxu1 %vm4006_vm0, %v4007_v4 }
  0x73   :  { %3200 = vmatmul.mubr.msk.f32.gmra.mrb[54].mxu0 %vm155_vm1, %v48_v59  ;;  %3389 = vmatmul.mubr.msk.f32.gmra.mrb[54].mxu1 %vm155_vm1, %v111_v60  ;;  %v4712_v59 = vld [vmem:[%s5710_s3] ss:$0 sm:$0xff] }
  0x74   :  { %3202 = vmatprep.mubr.msk.f32.mxu0 %vm4006_vm0, %v4007_v4  ;;  %3391 = vmatprep.mubr.msk.f32.mxu1 %vm4006_vm0, %v4007_v4 }
  0x77   :  { %3203 = vmatmul.mubr.msk.f32.gmra.mrb[56].mxu0 %vm155_vm1, %v49_v61  ;;  %3392 = vmatmul.mubr.msk.f32.gmra.mrb[56].mxu1 %vm155_vm1, %v112_v62 }
  0x78   :  { %3205 = vmatprep.mubr.msk.f32.mxu0 %vm4006_vm0, %v4007_v4  ;;  %3394 = vmatprep.mubr.msk.f32.mxu1 %vm4006_vm0, %v4007_v4 }
  0x7b   :  { %3206 = vmatmul.mubr.msk.f32.gmra.mrb[58].mxu0 %vm155_vm1, %v50_v63  ;;  %3395 = vmatmul.mubr.msk.f32.gmra.mrb[58].mxu1 %vm155_vm1, %v113_v0 }
  0x7c   :  { %3208 = vmatprep.mubr.msk.f32.mxu0 %vm4006_vm0, %v4007_v4  ;;  %3397 = vmatprep.mubr.msk.f32.mxu1 %vm4006_vm0, %v4007_v4 }
  0x7f   :  { %3209 = vmatmul.mubr.msk.f32.gmra.mrb[60].mxu0 %vm155_vm1, %v51_v1  ;;  %3398 = vmatmul.mubr.msk.f32.gmra.mrb[60].mxu1 %vm155_vm1, %v114_v2 }
  0x80   :  { %3211 = vmatprep.mubr.msk.f32.mxu0 %vm4006_vm0, %v4007_v4  ;;  %3400 = vmatprep.mubr.msk.f32.mxu1 %vm4006_vm0, %v4007_v4 }
  0x83   :  { %3212 = vmatmul.mubr.msk.f32.gmra.mrb[62].mxu0 %vm155_vm1, %v52_v3  ;;  %3401 = vmatmul.mubr.msk.f32.gmra.mrb[62].mxu1 %vm155_vm1, %v115_v5 }
  0x84   :  { %3214 = vmatprep.mubr.msk.f32.mxu0 %vm4006_vm0, %v4007_v4  ;;  %3403 = vmatprep.mubr.msk.f32.mxu1 %vm4006_vm0, %v4007_v4 }
  0x87   :  { %3215 = vmatmul.mubr.msk.f32.gmra.mrb[64].mxu0 %vm155_vm1, %v53_v6  ;;  %3404 = vmatmul.mubr.msk.f32.gmra.mrb[64].mxu1 %vm155_vm1, %v116_v7  ;;  %v76_v6 = vld [vmem:[%s5708_s0 + $0x1b8] sm:$0xff]  ;;  %v139_v7 = vld [vmem:[%s5708_s0 + $0x3b0] sm:$0xff] }
  0x88   :  { %3217 = vmatprep.mubr.msk.f32.mxu0 %vm4006_vm0, %v4007_v4  ;;  %3406 = vmatprep.mubr.msk.f32.mxu1 %vm4006_vm0, %v4007_v4 }
  0x8b   :  { %3218 = vmatmul.mubr.msk.f32.gmra.mrb[66].mxu0 %vm155_vm1, %v54_v8  ;;  %3407 = vmatmul.mubr.msk.f32.gmra.mrb[66].mxu1 %vm155_vm1, %v117_v9 }
  0x8c   :  { %3220 = vmatprep.mubr.msk.f32.mxu0 %vm4006_vm0, %v4007_v4  ;;  %3409 = vmatprep.mubr.msk.f32.mxu1 %vm4006_vm0, %v4007_v4 }
  0x8f   :  { %3221 = vmatmul.mubr.msk.f32.gmra.mrb[68].mxu0 %vm155_vm1, %v55_v10  ;;  %3410 = vmatmul.mubr.msk.f32.gmra.mrb[68].mxu1 %vm155_vm1, %v118_v11 }
  0x90   :  { %3223 = vmatprep.mubr.msk.f32.mxu0 %vm4006_vm0, %v4007_v4  ;;  %3412 = vmatprep.mubr.msk.f32.mxu1 %vm4006_vm0, %v4007_v4 }
  0x93   :  { %3224 = vmatmul.mubr.msk.f32.gmra.mrb[70].mxu0 %vm155_vm1, %v56_v12  ;;  %3413 = vmatmul.mubr.msk.f32.gmra.mrb[70].mxu1 %vm155_vm1, %v119_v13 }
  0x94   :  { %3226 = vmatprep.mubr.msk.f32.mxu0 %vm4006_vm0, %v4007_v4  ;;  %3415 = vmatprep.mubr.msk.f32.mxu1 %vm4006_vm0, %v4007_v4 }
  0x97   :  { %3227 = vmatmul.mubr.msk.f32.gmra.mrb[72].mxu0 %vm155_vm1, %v57_v14  ;;  %3416 = vmatmul.mubr.msk.f32.gmra.mrb[72].mxu1 %vm155_vm1, %v120_v15 }
  0x98   :  { %3229 = vmatprep.mubr.msk.f32.mxu0 %vm4006_vm0, %v4007_v4  ;;  %3418 = vmatprep.mubr.msk.f32.mxu1 %vm4006_vm0, %v4007_v4 }
  0x9b   :  { %3230 = vmatmul.mubr.msk.f32.gmra.mrb[74].mxu0 %vm155_vm1, %v58_v16  ;;  %3419 = vmatmul.mubr.msk.f32.gmra.mrb[74].mxu1 %vm155_vm1, %v121_v17 }
  0x9c   :  { %3232 = vmatprep.mubr.msk.f32.mxu0 %vm4006_vm0, %v4007_v4  ;;  %3421 = vmatprep.mubr.msk.f32.mxu1 %vm4006_vm0, %v4007_v4 }
  0x9f   :  { %3233 = vmatmul.mubr.msk.f32.gmra.mrb[76].mxu0 %vm155_vm1, %v59_v18  ;;  %3422 = vmatmul.mubr.msk.f32.gmra.mrb[76].mxu1 %vm155_vm1, %v122_v19  ;;  %v77_v18 = vld [vmem:[%s5708_s0 + $0x1c0] sm:$0xff]  ;;  %v140_v19 = vld [vmem:[%s5708_s0 + $0x3b8] sm:$0xff] }
  0xa0   :  { %3235 = vmatprep.mubr.msk.f32.mxu0 %vm4006_vm0, %v4007_v4  ;;  %3424 = vmatprep.mubr.msk.f32.mxu1 %vm4006_vm0, %v4007_v4 }
  0xa3   :  { %3236 = vmatmul.mubr.msk.f32.gmra.mrb[78].mxu0 %vm155_vm1, %v60_v20  ;;  %3425 = vmatmul.mubr.msk.f32.gmra.mrb[78].mxu1 %vm155_vm1, %v123_v21 }
  0xa4   :  { %3238 = vmatprep.mubr.msk.f32.mxu0 %vm4006_vm0, %v4007_v4  ;;  %3427 = vmatprep.mubr.msk.f32.mxu1 %vm4006_vm0, %v4007_v4 }
  0xa7   :  { %3239 = vmatmul.mubr.msk.f32.gmra.mrb[80].mxu0 %vm155_vm1, %v61_v22  ;;  %3428 = vmatmul.mubr.msk.f32.gmra.mrb[80].mxu1 %vm155_vm1, %v124_v23 }
  0xa8   :  { %3241 = vmatprep.mubr.msk.f32.mxu0 %vm4006_vm0, %v4007_v4  ;;  %3430 = vmatprep.mubr.msk.f32.mxu1 %vm4006_vm0, %v4007_v4 }
  0xab   :  { %3242 = vmatmul.mubr.msk.f32.gmra.mrb[82].mxu0 %vm155_vm1, %v62_v24  ;;  %3431 = vmatmul.mubr.msk.f32.gmra.mrb[82].mxu1 %vm155_vm1, %v125_v25 }
  0xac   :  { %3244 = vmatprep.mubr.msk.f32.mxu0 %vm4006_vm0, %v4007_v4  ;;  %3433 = vmatprep.mubr.msk.f32.mxu1 %vm4006_vm0, %v4007_v4 }
  0xaf   :  { %3245 = vmatmul.mubr.msk.f32.gmra.mrb[84].mxu0 %vm155_vm1, %v63_v26  ;;  %3434 = vmatmul.mubr.msk.f32.gmra.mrb[84].mxu1 %vm155_vm1, %v126_v27 }
  0xb0   :  { %3247 = vmatprep.mubr.msk.f32.mxu0 %vm4006_vm0, %v4007_v4  ;;  %3436 = vmatprep.mubr.msk.f32.mxu1 %vm4006_vm0, %v4007_v4 }
  0xb3   :  { %3248 = vmatmul.mubr.msk.f32.gmra.mrb[86].mxu0 %vm155_vm1, %v64_v28  ;;  %3437 = vmatmul.mubr.msk.f32.gmra.mrb[86].mxu1 %vm155_vm1, %v127_v29 }
  0xb4   :  { %3250 = vmatprep.mubr.msk.f32.mxu0 %vm4006_vm0, %v4007_v4  ;;  %3439 = vmatprep.mubr.msk.f32.mxu1 %vm4006_vm0, %v4007_v4 }
  0xb7   :  { %3251 = vmatmul.mubr.msk.f32.gmra.mrb[88].mxu0 %vm155_vm1, %v65_v30  ;;  %3440 = vmatmul.mubr.msk.f32.gmra.mrb[88].mxu1 %vm155_vm1, %v128_v31  ;;  %v78_v30 = vld [vmem:[%s5708_s0 + $0x1c8] sm:$0xff]  ;;  %v141_v31 = vld [vmem:[%s5708_s0 + $0x3c0] sm:$0xff] }
  0xb8   :  { %3253 = vmatprep.mubr.msk.f32.mxu0 %vm4006_vm0, %v4007_v4  ;;  %3442 = vmatprep.mubr.msk.f32.mxu1 %vm4006_vm0, %v4007_v4 }
  0xbb   :  { %3254 = vmatmul.mubr.msk.f32.gmra.mrb[90].mxu0 %vm155_vm1, %v66_v32  ;;  %3443 = vmatmul.mubr.msk.f32.gmra.mrb[90].mxu1 %vm155_vm1, %v129_v33 }
  0xbc   :  { %3256 = vmatprep.mubr.msk.f32.mxu0 %vm4006_vm0, %v4007_v4  ;;  %3445 = vmatprep.mubr.msk.f32.mxu1 %vm4006_vm0, %v4007_v4 }
  0xbf   :  { %3257 = vmatmul.mubr.msk.f32.gmra.mrb[92].mxu0 %vm155_vm1, %v67_v34  ;;  %3446 = vmatmul.mubr.msk.f32.gmra.mrb[92].mxu1 %vm155_vm1, %v130_v35 }
  0xc0   :  { %3259 = vmatprep.mubr.msk.f32.mxu0 %vm4006_vm0, %v4007_v4  ;;  %3448 = vmatprep.mubr.msk.f32.mxu1 %vm4006_vm0, %v4007_v4 }
  0xc3   :  { %3260 = vmatmul.mubr.msk.f32.gmra.mrb[94].mxu0 %vm155_vm1, %v68_v36  ;;  %3449 = vmatmul.mubr.msk.f32.gmra.mrb[94].mxu1 %vm155_vm1, %v131_v37 }
  0xc4   :  { %3262 = vmatprep.mubr.msk.f32.mxu0 %vm4006_vm0, %v4007_v4  ;;  %3451 = vmatprep.mubr.msk.f32.mxu1 %vm4006_vm0, %v4007_v4 }
  0xc7   :  { %3263 = vmatmul.mubr.msk.f32.gmra.mrb[96].mxu0 %vm155_vm1, %v69_v38  ;;  %3452 = vmatmul.mubr.msk.f32.gmra.mrb[96].mxu1 %vm155_vm1, %v132_v39 }
  0xc8   :  { %3265 = vmatprep.mubr.msk.f32.mxu0 %vm4006_vm0, %v4007_v4  ;;  %3454 = vmatprep.mubr.msk.f32.mxu1 %vm4006_vm0, %v4007_v4 }
  0xcb   :  { %3266 = vmatmul.mubr.msk.f32.gmra.mrb[98].mxu0 %vm155_vm1, %v70_v40  ;;  %3455 = vmatmul.mubr.msk.f32.gmra.mrb[98].mxu1 %vm155_vm1, %v133_v41 }
  0xcc   :  { %3268 = vmatprep.mubr.msk.f32.mxu0 %vm4006_vm0, %v4007_v4  ;;  %3457 = vmatprep.mubr.msk.f32.mxu1 %vm4006_vm0, %v4007_v4 }
  0xcf   :  { %3269 = vmatmul.mubr.msk.f32.gmra.mrb[100].mxu0 %vm155_vm1, %v71_v42  ;;  %3458 = vmatmul.mubr.msk.f32.gmra.mrb[100].mxu1 %vm155_vm1, %v134_v43  ;;  %v79_v42 = vld [vmem:[%s5708_s0 + $0x1d0] sm:$0xff]  ;;  %v142_v43 = vld [vmem:[%s5708_s0 + $0x3c8] sm:$0xff] }
  0xd0   :  { %3271 = vmatprep.mubr.msk.f32.mxu0 %vm4006_vm0, %v4007_v4  ;;  %3460 = vmatprep.mubr.msk.f32.mxu1 %vm4006_vm0, %v4007_v4 }
  0xd3   :  { %3272 = vmatmul.mubr.msk.f32.gmra.mrb[102].mxu0 %vm155_vm1, %v72_v44  ;;  %3461 = vmatmul.mubr.msk.f32.gmra.mrb[102].mxu1 %vm155_vm1, %v135_v45 }
  0xd4   :  { %3274 = vmatprep.mubr.msk.f32.mxu0 %vm4006_vm0, %v4007_v4  ;;  %3463 = vmatprep.mubr.msk.f32.mxu1 %vm4006_vm0, %v4007_v4 }
  0xd7   :  { %3275 = vmatmul.mubr.msk.f32.gmra.mrb[104].mxu0 %vm155_vm1, %v73_v46  ;;  %3464 = vmatmul.mubr.msk.f32.gmra.mrb[104].mxu1 %vm155_vm1, %v136_v47 }
  0xd8   :  { %3277 = vmatprep.mubr.msk.f32.mxu0 %vm4006_vm0, %v4007_v4  ;;  %3466 = vmatprep.mubr.msk.f32.mxu1 %vm4006_vm0, %v4007_v4 }
  0xda   :  { %v597_v51 = vpop.f32.mrb[0].mxu0  ;;  %v912_v52 = vpop.f32.mrb[0].mxu1 }
  0xdb   :  { %v598_v53 = vadd.f32 %v4683_v48, %v597_v51  ;;  %v3120_v54 = vpop.f32.mrb[1].mxu0  ;;  %3278 = vmatmul.mubr.msk.f32.gmra.mrb[106].mxu0 %vm155_vm1, %v74_v49  ;;  %3467 = vmatmul.mubr.msk.f32.gmra.mrb[106].mxu1 %vm155_vm1, %v137_v50  ;;  %v913_v55 = vadd.f32 %v4683_v48, %v912_v52  ;;  %v3309_v56 = vpop.f32.mrb[1].mxu1 }
  0xdc   :  { %3280 = vmatprep.mubr.msk.f32.mxu0 %vm4006_vm0, %v4007_v4  ;;  %3469 = vmatprep.mubr.msk.f32.mxu1 %vm4006_vm0, %v4007_v4  ;;  %v143_v56 = vld [vmem:[%s5708_s0 + $0x3d0] sm:$0xff] }
  0xdd   :  { %v1221_v60 = vmax.f32 %v598_v53, 0.0  ;;  %v1284_v61 = vmax.f32 %v913_v55, 0.0  ;;  %v80_v55 = vld [vmem:[%s5708_s0 + $0x1d8] sm:$0xff] }
  0xde   :  { %v602_v62 = vpop.f32.mrb[2].mxu0  ;;  %v917_v63 = vpop.f32.mrb[2].mxu1 }
  0xdf   :  { %v603_v0 = vadd.f32 %v4683_v48, %v602_v62  ;;  %v3123_v1 = vpop.f32.mrb[3].mxu0  ;;  %3281 = vmatmul.mubr.msk.f32.gmra.mrb[108].mxu0 %vm155_vm1, %v75_v57  ;;  %3470 = vmatmul.mubr.msk.f32.gmra.mrb[108].mxu1 %vm155_vm1, %v138_v58  ;;  %v918_v2 = vadd.f32 %v4683_v48, %v917_v63  ;;  %v1353_v3 = vmul.f32 %v4712_v59, %v1221_v60  ;;  %v3312_v5 = vpop.f32.mrb[3].mxu1 }
  0xe0   :  { %3283 = vmatprep.mubr.msk.f32.mxu0 %vm4006_vm0, %v4007_v4  ;;  %3472 = vmatprep.mubr.msk.f32.mxu1 %vm4006_vm0, %v4007_v4  ;;  %v1416_v8 = vmul.f32 %v4712_v59, %v1284_v61  ;;  %v81_v5 = vld [vmem:[%s5708_s0 + $0x1e0] sm:$0xff] }
  0xe1   :  { %v1222_v9 = vmax.f32 %v603_v0, 0.0  ;;  %v1285_v10 = vmax.f32 %v918_v2, 0.0  ;;  %1478 = vadd.xlane.f32.xlu0 %v1353_v3 }
  0xe2   :  { %v607_v11 = vpop.f32.mrb[4].mxu0  ;;  %v922_v12 = vpop.f32.mrb[4].mxu1  ;;  %1604 = vadd.xlane.f32.xlu1 %v1416_v8  ;;  %v144_v8 = vld [vmem:[%s5708_s0 + $0x3d8] sm:$0xff] }
  0xe3   :  { %v608_v13 = vadd.f32 %v4683_v48, %v607_v11  ;;  %v3126_v14 = vpop.f32.mrb[5].mxu0  ;;  %3284 = vmatmul.mubr.msk.f32.gmra.mrb[110].mxu0 %vm155_vm1, %v76_v6  ;;  %3473 = vmatmul.mubr.msk.f32.gmra.mrb[110].mxu1 %vm155_vm1, %v139_v7  ;;  %v923_v15 = vadd.f32 %v4683_v48, %v922_v12  ;;  %v3315_v16 = vpop.f32.mrb[5].mxu1  ;;  %v1354_v17 = vmul.f32 %v4712_v59, %v1222_v9 }
  0xe4   :  { %3286 = vmatprep.mubr.msk.f32.mxu0 %vm4006_vm0, %v4007_v4  ;;  %3475 = vmatprep.mubr.msk.f32.mxu1 %vm4006_vm0, %v4007_v4  ;;  %v1417_v22 = vmul.f32 %v4712_v59, %v1285_v10 }
  0xe5   :  { %v1223_v20 = vmax.f32 %v608_v13, 0.0  ;;  %v1286_v21 = vmax.f32 %v923_v15, 0.0  ;;  %1480 = vadd.xlane.f32.xlu0 %v1354_v17  ;;  %v82_v17 = vld [vmem:[%s5708_s0 + $0x1e8] sm:$0xff] }
  0xe6   :  { %v612_v23 = vpop.f32.mrb[6].mxu0  ;;  %v927_v24 = vpop.f32.mrb[6].mxu1 }
  0xe7   :  { %v613_v25 = vadd.f32 %v4683_v48, %v612_v23  ;;  %v928_v26 = vadd.f32 %v4683_v48, %v927_v24  ;;  %v3129_v27 = vpop.f32.mrb[7].mxu0  ;;  %3287 = vmatmul.mubr.msk.f32.gmra.mrb[112].mxu0 %vm155_vm1, %v77_v18  ;;  %3476 = vmatmul.mubr.msk.f32.gmra.mrb[112].mxu1 %vm155_vm1, %v140_v19  ;;  %v1355_v28 = vmul.f32 %v4712_v59, %v1223_v20  ;;  %v3318_v29 = vpop.f32.mrb[7].mxu1  ;;  %v145_v20 = vld [vmem:[%s5708_s0 + $0x3e0] sm:$0xff] }
  0xe8   :  { %3289 = vmatprep.mubr.msk.f32.mxu0 %vm4006_vm0, %v4007_v4  ;;  %3478 = vmatprep.mubr.msk.f32.mxu1 %vm4006_vm0, %v4007_v4  ;;  %v1418_v33 = vmul.f32 %v4712_v59, %v1286_v21  ;;  %v83_v29 = vld [vmem:[%s5708_s0 + $0x1f0] sm:$0xff] }
  0xe9   :  { %v1287_v32 = vmax.f32 %v928_v26, 0.0  ;;  %1606 = vadd.xlane.f32.xlu0 %v1417_v22  ;;  %1482 = vadd.xlane.f32.xlu1 %v1355_v28  ;;  %v1224_v34 = vmax.f32 %v613_v25, 0.0 }
  0xea   :  { %v617_v35 = vpop.f32.mrb[8].mxu0  ;;  %v932_v36 = vpop.f32.mrb[8].mxu1 }
  0xeb   :  { %v618_v37 = vadd.f32 %v4683_v48, %v617_v35  ;;  %v3132_v38 = vpop.f32.mrb[9].mxu0  ;;  %3290 = vmatmul.mubr.msk.f32.gmra.mrb[114].mxu0 %vm155_vm1, %v78_v30  ;;  %3479 = vmatmul.mubr.msk.f32.gmra.mrb[114].mxu1 %vm155_vm1, %v141_v31  ;;  %v933_v39 = vadd.f32 %v4683_v48, %v932_v36  ;;  %v3321_v40 = vpop.f32.mrb[9].mxu1  ;;  %v1419_v41 = vmul.f32 %v4712_v59, %v1287_v32 }
  0xec   :  { %3292 = vmatprep.mubr.msk.f32.mxu0 %vm4006_vm0, %v4007_v4  ;;  %3481 = vmatprep.mubr.msk.f32.mxu1 %vm4006_vm0, %v4007_v4  ;;  %v1356_v49 = vmul.f32 %v4712_v59, %v1224_v34 }
  0xed   :  { %v1225_v44 = vmax.f32 %v618_v37, 0.0  ;;  %v1288_v45 = vmax.f32 %v933_v39, 0.0  ;;  %1610 = vadd.xlane.f32.xlu0 %v1419_v41  ;;  %1608 = vadd.xlane.f32.xlu1 %v1418_v33 }
  0xee   :  { %v622_v46 = vpop.f32.mrb[10].mxu0  ;;  %v937_v47 = vpop.f32.mrb[10].mxu1 }
  0xef   :  { %v623_v50 = vadd.f32 %v4683_v48, %v622_v46  ;;  %v938_v51 = vadd.f32 %v4683_v48, %v937_v47  ;;  %v3135_v52 = vpop.f32.mrb[11].mxu0  ;;  %3293 = vmatmul.mubr.msk.f32.gmra.mrb[116].mxu0 %vm155_vm1, %v79_v42  ;;  %3482 = vmatmul.mubr.msk.f32.gmra.mrb[116].mxu1 %vm155_vm1, %v142_v43  ;;  %v1357_v53 = vmul.f32 %v4712_v59, %v1225_v44  ;;  %v3324_v54 = vpop.f32.mrb[11].mxu1 }
  0xf0   :  { %3295 = vmatprep.mubr.msk.f32.mxu0 %vm4006_vm0, %v4007_v4  ;;  %3484 = vmatprep.mubr.msk.f32.mxu1 %vm4006_vm0, %v4007_v4  ;;  %v1420_v58 = vmul.f32 %v4712_v59, %v1288_v45 }
  0xf1   :  { %v1289_v57 = vmax.f32 %v938_v51, 0.0  ;;  %1484 = vadd.xlane.f32.xlu1 %v1356_v49  ;;  %1486 = vadd.xlane.f32.xlu0 %v1357_v53  ;;  %v1226_v62 = vmax.f32 %v623_v50, 0.0 }
  0xf2   :  { %v627_v60 = vpop.f32.mrb[12].mxu0  ;;  %v942_v61 = vpop.f32.mrb[12].mxu1 }
  0xf3   :  { %v628_v63 = vadd.f32 %v4683_v48, %v627_v60  ;;  %v3138_v0 = vpop.f32.mrb[13].mxu0  ;;  %3296 = vmatmul.mubr.msk.f32.gmra.mrb[118].mxu0 %vm155_vm1, %v80_v55  ;;  %3485 = vmatmul.mubr.msk.f32.gmra.mrb[118].mxu1 %vm155_vm1, %v143_v56  ;;  %v943_v1 = vadd.f32 %v4683_v48, %v942_v61  ;;  %v3327_v2 = vpop.f32.mrb[13].mxu1  ;;  %v1421_v3 = vmul.f32 %v4712_v59, %v1289_v57 }
  0xf4   :  { %3298 = vmatprep.mubr.msk.f32.mxu0 %vm4006_vm0, %v4007_v4  ;;  %3487 = vmatprep.mubr.msk.f32.mxu1 %vm4006_vm0, %v4007_v4  ;;  %v1358_v14 = vmul.f32 %v4712_v59, %v1226_v62 }
  0xf5   :  { %v1227_v6 = vmax.f32 %v628_v63, 0.0  ;;  %v1290_v7 = vmax.f32 %v943_v1, 0.0  ;;  %1612 = vadd.xlane.f32.xlu1 %v1420_v58  ;;  %1614 = vadd.xlane.f32.xlu0 %v1421_v3 }
  0xf6   :  { %v632_v9 = vpop.f32.mrb[14].mxu0  ;;  %v947_v10 = vpop.f32.mrb[14].mxu1 }
  0xf7   :  { %v633_v11 = vadd.f32 %v4683_v48, %v632_v9  ;;  %v948_v12 = vadd.f32 %v4683_v48, %v947_v10  ;;  %v3141_v13 = vpop.f32.mrb[15].mxu0  ;;  %3299 = vmatmul.mubr.msk.f32.gmra.mrb[120].mxu0 %vm155_vm1, %v81_v5  ;;  %v1359_v15 = vmul.f32 %v4712_v59, %v1227_v6  ;;  %v3330_v16 = vpop.f32.mrb[15].mxu1  ;;  %3488 = vmatmul.mubr.msk.f32.gmra.mrb[120].mxu1 %vm155_vm1, %v144_v8 }
  0xf8   :  { %3301 = vmatprep.mubr.msk.f32.mxu0 %vm4006_vm0, %v4007_v4  ;;  %v1422_v19 = vmul.f32 %v4712_v59, %v1290_v7  ;;  %3490 = vmatprep.mubr.msk.f32.mxu1 %vm4006_vm0, %v4007_v4 }
  0xf9   :  { %v1291_v18 = vmax.f32 %v948_v12, 0.0  ;;  %1488 = vadd.xlane.f32.xlu1 %v1358_v14  ;;  %1490 = vadd.xlane.f32.xlu0 %v1359_v15  ;;  %v1228_v23 = vmax.f32 %v633_v11, 0.0 }
  0xfa   :  { %v637_v21 = vpop.f32.mrb[16].mxu0  ;;  %v952_v22 = vpop.f32.mrb[16].mxu1 }
  0xfb   :  { %v638_v24 = vadd.f32 %v4683_v48, %v637_v21  ;;  %v3144_v25 = vpop.f32.mrb[17].mxu0  ;;  %3302 = vmatmul.mubr.msk.f32.gmra.mrb[122].mxu0 %vm155_vm1, %v82_v17  ;;  %v953_v26 = vadd.f32 %v4683_v48, %v952_v22  ;;  %v3333_v27 = vpop.f32.mrb[17].mxu1  ;;  %v1423_v28 = vmul.f32 %v4712_v59, %v1291_v18  ;;  %3491 = vmatmul.mubr.msk.f32.gmra.mrb[122].mxu1 %vm155_vm1, %v145_v20 }
  0xfc   :  { %3304 = vmatprep.mubr.msk.f32.mxu0 %vm4006_vm0, %v4007_v4  ;;  %v1360_v4 = vmul.f32 %v4712_v59, %v1228_v23 }
  0xfd   :  { %v1229_v30 = vmax.f32 %v638_v24, 0.0  ;;  %v1292_v31 = vmax.f32 %v953_v26, 0.0  ;;  %1616 = vadd.xlane.f32.xlu1 %v1422_v19  ;;  %1618 = vadd.xlane.f32.xlu0 %v1423_v28 }
  0xfe   :  { %v642_v32 = vpop.f32.mrb[18].mxu0  ;;  %v957_v33 = vpop.f32.mrb[18].mxu1 }
  0xff   :  { %v643_v34 = vadd.f32 %v4683_v48, %v642_v32  ;;  %v958_v35 = vadd.f32 %v4683_v48, %v957_v33  ;;  %v3147_v36 = vpop.f32.mrb[19].mxu0  ;;  %3305 = vmatmul.mubr.msk.f32.gmra.mrb[124].mxu0 %vm155_vm1, %v83_v29  ;;  %v1361_v37 = vmul.f32 %v4712_v59, %v1229_v30  ;;  %v3336_v38 = vpop.f32.mrb[19].mxu1  ;;  %v1424_v40 = vmul.f32 %v4712_v59, %v1292_v31 }
 0x101   :  { %v1293_v39 = vmax.f32 %v958_v35, 0.0  ;;  %1492 = vadd.xlane.f32.xlu1 %v1360_v4  ;;  %1494 = vadd.xlane.f32.xlu0 %v1361_v37  ;;  %v1230_v43 = vmax.f32 %v643_v34, 0.0 }
 0x102   :  { %v647_v41 = vpop.f32.mrb[20].mxu0  ;;  %v962_v42 = vpop.f32.mrb[20].mxu1 }
 0x103   :  { %v648_v44 = vadd.f32 %v4683_v48, %v647_v41  ;;  %v3150_v45 = vpop.f32.mrb[21].mxu0  ;;  %v963_v46 = vadd.f32 %v4683_v48, %v962_v42  ;;  %v3339_v47 = vpop.f32.mrb[21].mxu1  ;;  %v1425_v49 = vmul.f32 %v4712_v59, %v1293_v39  ;;  %v1362_v57 = vmul.f32 %v4712_v59, %v1230_v43 }
 0x105   :  { %v1231_v50 = vmax.f32 %v648_v44, 0.0  ;;  %v1294_v51 = vmax.f32 %v963_v46, 0.0  ;;  %1620 = vadd.xlane.f32.xlu1 %v1424_v40  ;;  %1622 = vadd.xlane.f32.xlu0 %v1425_v49 }
 0x106   :  { %v652_v52 = vpop.f32.mrb[22].mxu0  ;;  %v967_v53 = vpop.f32.mrb[22].mxu1 }
 0x107   :  { %v653_v54 = vadd.f32 %v4683_v48, %v652_v52  ;;  %v968_v55 = vadd.f32 %v4683_v48, %v967_v53  ;;  %v3153_v56 = vpop.f32.mrb[23].mxu0  ;;  %v1363_v58 = vmul.f32 %v4712_v59, %v1231_v50  ;;  %v3342_v60 = vpop.f32.mrb[23].mxu1  ;;  %v1426_v62 = vmul.f32 %v4712_v59, %v1294_v51 }
 0x109   :  { %v1295_v61 = vmax.f32 %v968_v55, 0.0  ;;  %1496 = vadd.xlane.f32.xlu1 %v1362_v57  ;;  %1498 = vadd.xlane.f32.xlu0 %v1363_v58  ;;  %v1232_v1 = vmax.f32 %v653_v54, 0.0 }
 0x10a   :  { %v657_v63 = vpop.f32.mrb[24].mxu0  ;;  %v972_v0 = vpop.f32.mrb[24].mxu1 }
 0x10b   :  { %v658_v2 = vadd.f32 %v4683_v48, %v657_v63  ;;  %v3156_v3 = vpop.f32.mrb[25].mxu0  ;;  %v973_v5 = vadd.f32 %v4683_v48, %v972_v0  ;;  %v3345_v6 = vpop.f32.mrb[25].mxu1  ;;  %v1427_v7 = vmul.f32 %v4712_v59, %v1295_v61  ;;  %v1364_v15 = vmul.f32 %v4712_v59, %v1232_v1 }
 0x10d   :  { %v1233_v8 = vmax.f32 %v658_v2, 0.0  ;;  %v1296_v9 = vmax.f32 %v973_v5, 0.0  ;;  %1624 = vadd.xlane.f32.xlu1 %v1426_v62  ;;  %1626 = vadd.xlane.f32.xlu0 %v1427_v7 }
 0x10e   :  { %v662_v10 = vpop.f32.mrb[26].mxu0  ;;  %v977_v11 = vpop.f32.mrb[26].mxu1 }
 0x10f   :  { %v663_v12 = vadd.f32 %v4683_v48, %v662_v10  ;;  %v978_v13 = vadd.f32 %v4683_v48, %v977_v11  ;;  %v3159_v14 = vpop.f32.mrb[27].mxu0  ;;  %v1365_v16 = vmul.f32 %v4712_v59, %v1233_v8  ;;  %v3348_v17 = vpop.f32.mrb[27].mxu1  ;;  %v1428_v19 = vmul.f32 %v4712_v59, %v1296_v9 }
 0x111   :  { %v1297_v18 = vmax.f32 %v978_v13, 0.0  ;;  %1500 = vadd.xlane.f32.xlu1 %v1364_v15  ;;  %1502 = vadd.xlane.f32.xlu0 %v1365_v16  ;;  %v1234_v22 = vmax.f32 %v663_v12, 0.0 }
 0x112   :  { %v667_v20 = vpop.f32.mrb[28].mxu0  ;;  %v982_v21 = vpop.f32.mrb[28].mxu1 }
 0x113   :  { %v668_v23 = vadd.f32 %v4683_v48, %v667_v20  ;;  %v3162_v24 = vpop.f32.mrb[29].mxu0  ;;  %v983_v25 = vadd.f32 %v4683_v48, %v982_v21  ;;  %v3351_v26 = vpop.f32.mrb[29].mxu1  ;;  %v1429_v27 = vmul.f32 %v4712_v59, %v1297_v18  ;;  %v1366_v35 = vmul.f32 %v4712_v59, %v1234_v22 }
 0x115   :  { %v1235_v28 = vmax.f32 %v668_v23, 0.0  ;;  %v1298_v29 = vmax.f32 %v983_v25, 0.0  ;;  %1628 = vadd.xlane.f32.xlu1 %v1428_v19  ;;  %1630 = vadd.xlane.f32.xlu0 %v1429_v27 }
 0x116   :  { %v672_v30 = vpop.f32.mrb[30].mxu0  ;;  %v987_v31 = vpop.f32.mrb[30].mxu1 }
 0x117   :  { %v673_v32 = vadd.f32 %v4683_v48, %v672_v30  ;;  %v988_v33 = vadd.f32 %v4683_v48, %v987_v31  ;;  %v3165_v34 = vpop.f32.mrb[31].mxu0  ;;  %v1367_v36 = vmul.f32 %v4712_v59, %v1235_v28  ;;  %v3354_v4 = vpop.f32.mrb[31].mxu1  ;;  %v1430_v38 = vmul.f32 %v4712_v59, %v1298_v29 }
 0x119   :  { %v1299_v37 = vmax.f32 %v988_v33, 0.0  ;;  %1504 = vadd.xlane.f32.xlu1 %v1366_v35  ;;  %1506 = vadd.xlane.f32.xlu0 %v1367_v36  ;;  %v1236_v41 = vmax.f32 %v673_v32, 0.0 }
 0x11a   :  { %v677_v39 = vpop.f32.mrb[32].mxu0  ;;  %v992_v40 = vpop.f32.mrb[32].mxu1 }
 0x11b   :  { %v678_v42 = vadd.f32 %v4683_v48, %v677_v39  ;;  %v3168_v43 = vpop.f32.mrb[33].mxu0  ;;  %v993_v44 = vadd.f32 %v4683_v48, %v992_v40  ;;  %v3357_v45 = vpop.f32.mrb[33].mxu1  ;;  %v1431_v46 = vmul.f32 %v4712_v59, %v1299_v37  ;;  %v1368_v55 = vmul.f32 %v4712_v59, %v1236_v41 }
 0x11d   :  { %v1237_v47 = vmax.f32 %v678_v42, 0.0  ;;  %v1300_v49 = vmax.f32 %v993_v44, 0.0  ;;  %1632 = vadd.xlane.f32.xlu1 %v1430_v38  ;;  %1634 = vadd.xlane.f32.xlu0 %v1431_v46 }
 0x11e   :  { %v682_v50 = vpop.f32.mrb[34].mxu0  ;;  %v997_v51 = vpop.f32.mrb[34].mxu1 }
 0x11f   :  { %v683_v52 = vadd.f32 %v4683_v48, %v682_v50  ;;  %v998_v53 = vadd.f32 %v4683_v48, %v997_v51  ;;  %v3171_v54 = vpop.f32.mrb[35].mxu0  ;;  %v1369_v56 = vmul.f32 %v4712_v59, %v1237_v47  ;;  %v3360_v57 = vpop.f32.mrb[35].mxu1  ;;  %v1432_v60 = vmul.f32 %v4712_v59, %v1300_v49 }
 0x121   :  { %v1301_v58 = vmax.f32 %v998_v53, 0.0  ;;  %1508 = vadd.xlane.f32.xlu1 %v1368_v55  ;;  %1510 = vadd.xlane.f32.xlu0 %v1369_v56  ;;  %v1238_v63 = vmax.f32 %v683_v52, 0.0 }
 0x122   :  { %v687_v61 = vpop.f32.mrb[36].mxu0  ;;  %v1002_v62 = vpop.f32.mrb[36].mxu1 }
 0x123   :  { %v688_v0 = vadd.f32 %v4683_v48, %v687_v61  ;;  %v3174_v1 = vpop.f32.mrb[37].mxu0  ;;  %v1003_v2 = vadd.f32 %v4683_v48, %v1002_v62  ;;  %v3363_v3 = vpop.f32.mrb[37].mxu1  ;;  %v1433_v5 = vmul.f32 %v4712_v59, %v1301_v58  ;;  %v1370_v13 = vmul.f32 %v4712_v59, %v1238_v63 }
 0x125   :  { %v1239_v6 = vmax.f32 %v688_v0, 0.0  ;;  %v1302_v7 = vmax.f32 %v1003_v2, 0.0  ;;  %1636 = vadd.xlane.f32.xlu1 %v1432_v60  ;;  %1638 = vadd.xlane.f32.xlu0 %v1433_v5 }
 0x126   :  { %v692_v8 = vpop.f32.mrb[38].mxu0  ;;  %v1007_v9 = vpop.f32.mrb[38].mxu1 }
 0x127   :  { %v693_v10 = vadd.f32 %v4683_v48, %v692_v8  ;;  %v1008_v11 = vadd.f32 %v4683_v48, %v1007_v9  ;;  %v3177_v12 = vpop.f32.mrb[39].mxu0  ;;  %v1371_v14 = vmul.f32 %v4712_v59, %v1239_v6  ;;  %v3366_v15 = vpop.f32.mrb[39].mxu1  ;;  %v1434_v17 = vmul.f32 %v4712_v59, %v1302_v7 }
 0x129   :  { %v1303_v16 = vmax.f32 %v1008_v11, 0.0  ;;  %1512 = vadd.xlane.f32.xlu1 %v1370_v13  ;;  %1514 = vadd.xlane.f32.xlu0 %v1371_v14  ;;  %v1240_v20 = vmax.f32 %v693_v10, 0.0 }
 0x12a   :  { %v697_v18 = vpop.f32.mrb[40].mxu0  ;;  %v1012_v19 = vpop.f32.mrb[40].mxu1 }
 0x12b   :  { %v698_v21 = vadd.f32 %v4683_v48, %v697_v18  ;;  %v3180_v22 = vpop.f32.mrb[41].mxu0  ;;  %v1013_v23 = vadd.f32 %v4683_v48, %v1012_v19  ;;  %v3369_v24 = vpop.f32.mrb[41].mxu1  ;;  %v1435_v25 = vmul.f32 %v4712_v59, %v1303_v16  ;;  %v1372_v33 = vmul.f32 %v4712_v59, %v1240_v20 }
 0x12d   :  { %v1241_v26 = vmax.f32 %v698_v21, 0.0  ;;  %v1304_v27 = vmax.f32 %v1013_v23, 0.0  ;;  %1640 = vadd.xlane.f32.xlu1 %v1434_v17  ;;  %1642 = vadd.xlane.f32.xlu0 %v1435_v25 }
 0x12e   :  { %v702_v28 = vpop.f32.mrb[42].mxu0  ;;  %v1017_v29 = vpop.f32.mrb[42].mxu1 }
 0x12f   :  { %v703_v30 = vadd.f32 %v4683_v48, %v702_v28  ;;  %v1018_v31 = vadd.f32 %v4683_v48, %v1017_v29  ;;  %v3183_v32 = vpop.f32.mrb[43].mxu0  ;;  %v1373_v34 = vmul.f32 %v4712_v59, %v1241_v26  ;;  %v3372_v35 = vpop.f32.mrb[43].mxu1  ;;  %v1436_v4 = vmul.f32 %v4712_v59, %v1304_v27 }
 0x131   :  { %v1305_v36 = vmax.f32 %v1018_v31, 0.0  ;;  %1516 = vadd.xlane.f32.xlu1 %v1372_v33  ;;  %1518 = vadd.xlane.f32.xlu0 %v1373_v34  ;;  %v1242_v39 = vmax.f32 %v703_v30, 0.0 }
 0x132   :  { %v707_v37 = vpop.f32.mrb[44].mxu0  ;;  %v1022_v38 = vpop.f32.mrb[44].mxu1 }
 0x133   :  { %v708_v40 = vadd.f32 %v4683_v48, %v707_v37  ;;  %v3186_v41 = vpop.f32.mrb[45].mxu0  ;;  %v1023_v42 = vadd.f32 %v4683_v48, %v1022_v38  ;;  %v3375_v43 = vpop.f32.mrb[45].mxu1  ;;  %v1437_v44 = vmul.f32 %v4712_v59, %v1305_v36  ;;  %v1374_v53 = vmul.f32 %v4712_v59, %v1242_v39 }
 0x135   :  { %v1243_v45 = vmax.f32 %v708_v40, 0.0  ;;  %v1306_v46 = vmax.f32 %v1023_v42, 0.0  ;;  %1644 = vadd.xlane.f32.xlu1 %v1436_v4  ;;  %1646 = vadd.xlane.f32.xlu0 %v1437_v44 }
 0x136   :  { %v712_v47 = vpop.f32.mrb[46].mxu0  ;;  %v1027_v49 = vpop.f32.mrb[46].mxu1 }
 0x137   :  { %v713_v50 = vadd.f32 %v4683_v48, %v712_v47  ;;  %v1028_v51 = vadd.f32 %v4683_v48, %v1027_v49  ;;  %v3189_v52 = vpop.f32.mrb[47].mxu0  ;;  %v1375_v54 = vmul.f32 %v4712_v59, %v1243_v45  ;;  %v3378_v55 = vpop.f32.mrb[47].mxu1  ;;  %v1438_v57 = vmul.f32 %v4712_v59, %v1306_v46 }
 0x139   :  { %v1307_v56 = vmax.f32 %v1028_v51, 0.0  ;;  %1520 = vadd.xlane.f32.xlu1 %v1374_v53  ;;  %1522 = vadd.xlane.f32.xlu0 %v1375_v54  ;;  %v1244_v61 = vmax.f32 %v713_v50, 0.0 }
 0x13a   :  { %v717_v58 = vpop.f32.mrb[48].mxu0  ;;  %v1032_v60 = vpop.f32.mrb[48].mxu1 }
 0x13b   :  { %v718_v62 = vadd.f32 %v4683_v48, %v717_v58  ;;  %v3192_v63 = vpop.f32.mrb[49].mxu0  ;;  %v1033_v0 = vadd.f32 %v4683_v48, %v1032_v60  ;;  %v3381_v1 = vpop.f32.mrb[49].mxu1  ;;  %v1439_v2 = vmul.f32 %v4712_v59, %v1307_v56  ;;  %v1376_v11 = vmul.f32 %v4712_v59, %v1244_v61 }
 0x13d   :  { %v1245_v3 = vmax.f32 %v718_v62, 0.0  ;;  %v1308_v5 = vmax.f32 %v1033_v0, 0.0  ;;  %1648 = vadd.xlane.f32.xlu1 %v1438_v57  ;;  %1650 = vadd.xlane.f32.xlu0 %v1439_v2 }
 0x13e   :  { %v722_v6 = vpop.f32.mrb[50].mxu0  ;;  %v1037_v7 = vpop.f32.mrb[50].mxu1 }
 0x13f   :  { %v723_v8 = vadd.f32 %v4683_v48, %v722_v6  ;;  %v1038_v9 = vadd.f32 %v4683_v48, %v1037_v7  ;;  %v3195_v10 = vpop.f32.mrb[51].mxu0  ;;  %v1377_v12 = vmul.f32 %v4712_v59, %v1245_v3  ;;  %v3384_v13 = vpop.f32.mrb[51].mxu1  ;;  %v1440_v15 = vmul.f32 %v4712_v59, %v1308_v5 }
 0x141   :  { %v1309_v14 = vmax.f32 %v1038_v9, 0.0  ;;  %1524 = vadd.xlane.f32.xlu1 %v1376_v11  ;;  %1526 = vadd.xlane.f32.xlu0 %v1377_v12  ;;  %v1246_v18 = vmax.f32 %v723_v8, 0.0 }
 0x142   :  { %v727_v16 = vpop.f32.mrb[52].mxu0  ;;  %v1042_v17 = vpop.f32.mrb[52].mxu1 }
 0x143   :  { %v728_v19 = vadd.f32 %v4683_v48, %v727_v16  ;;  %v3198_v20 = vpop.f32.mrb[53].mxu0  ;;  %v1043_v21 = vadd.f32 %v4683_v48, %v1042_v17  ;;  %v3387_v22 = vpop.f32.mrb[53].mxu1  ;;  %v1441_v23 = vmul.f32 %v4712_v59, %v1309_v14  ;;  %v1378_v31 = vmul.f32 %v4712_v59, %v1246_v18 }
 0x145   :  { %v1247_v24 = vmax.f32 %v728_v19, 0.0  ;;  %v1310_v25 = vmax.f32 %v1043_v21, 0.0  ;;  %1652 = vadd.xlane.f32.xlu1 %v1440_v15  ;;  %1654 = vadd.xlane.f32.xlu0 %v1441_v23 }
 0x146   :  { %v732_v26 = vpop.f32.mrb[54].mxu0  ;;  %v1047_v27 = vpop.f32.mrb[54].mxu1 }
 0x147   :  { %v733_v28 = vadd.f32 %v4683_v48, %v732_v26  ;;  %v1048_v29 = vadd.f32 %v4683_v48, %v1047_v27  ;;  %v3201_v30 = vpop.f32.mrb[55].mxu0  ;;  %v1379_v32 = vmul.f32 %v4712_v59, %v1247_v24  ;;  %v3390_v33 = vpop.f32.mrb[55].mxu1  ;;  %v1442_v35 = vmul.f32 %v4712_v59, %v1310_v25 }
 0x149   :  { %v1311_v34 = vmax.f32 %v1048_v29, 0.0  ;;  %1528 = vadd.xlane.f32.xlu1 %v1378_v31  ;;  %1530 = vadd.xlane.f32.xlu0 %v1379_v32  ;;  %v1248_v37 = vmax.f32 %v733_v28, 0.0 }
 0x14a   :  { %v737_v36 = vpop.f32.mrb[56].mxu0  ;;  %v1052_v4 = vpop.f32.mrb[56].mxu1 }
 0x14b   :  { %v738_v38 = vadd.f32 %v4683_v48, %v737_v36  ;;  %v3204_v39 = vpop.f32.mrb[57].mxu0  ;;  %v1053_v40 = vadd.f32 %v4683_v48, %v1052_v4  ;;  %v3393_v41 = vpop.f32.mrb[57].mxu1  ;;  %v1443_v42 = vmul.f32 %v4712_v59, %v1311_v34  ;;  %v1380_v51 = vmul.f32 %v4712_v59, %v1248_v37 }
 0x14d   :  { %v1249_v43 = vmax.f32 %v738_v38, 0.0  ;;  %v1312_v44 = vmax.f32 %v1053_v40, 0.0  ;;  %1656 = vadd.xlane.f32.xlu1 %v1442_v35  ;;  %1658 = vadd.xlane.f32.xlu0 %v1443_v42 }
 0x14e   :  { %v742_v45 = vpop.f32.mrb[58].mxu0  ;;  %v1057_v46 = vpop.f32.mrb[58].mxu1 }
 0x14f   :  { %v743_v47 = vadd.f32 %v4683_v48, %v742_v45  ;;  %v1058_v49 = vadd.f32 %v4683_v48, %v1057_v46  ;;  %v3207_v50 = vpop.f32.mrb[59].mxu0  ;;  %v1381_v52 = vmul.f32 %v4712_v59, %v1249_v43  ;;  %v3396_v53 = vpop.f32.mrb[59].mxu1  ;;  %v1444_v55 = vmul.f32 %v4712_v59, %v1312_v44 }
 0x151   :  { %v1313_v54 = vmax.f32 %v1058_v49, 0.0  ;;  %1532 = vadd.xlane.f32.xlu1 %v1380_v51  ;;  %1534 = vadd.xlane.f32.xlu0 %v1381_v52  ;;  %v1250_v58 = vmax.f32 %v743_v47, 0.0 }
 0x152   :  { %v747_v56 = vpop.f32.mrb[60].mxu0  ;;  %v1062_v57 = vpop.f32.mrb[60].mxu1 }
 0x153   :  { %v748_v60 = vadd.f32 %v4683_v48, %v747_v56  ;;  %v3210_v61 = vpop.f32.mrb[61].mxu0  ;;  %v1063_v62 = vadd.f32 %v4683_v48, %v1062_v57  ;;  %v3399_v63 = vpop.f32.mrb[61].mxu1  ;;  %v1445_v0 = vmul.f32 %v4712_v59, %v1313_v54  ;;  %v1382_v9 = vmul.f32 %v4712_v59, %v1250_v58 }
 0x154   :  { %v4952_v63 = vstv %s5711_s4 }
 0x155   :  { %v1251_v1 = vmax.f32 %v748_v60, 0.0  ;;  %v1314_v2 = vmax.f32 %v1063_v62, 0.0  ;;  %1660 = vadd.xlane.f32.xlu1 %v1444_v55  ;;  %1662 = vadd.xlane.f32.xlu0 %v1445_v0 }
 0x156   :  { %v752_v3 = vpop.f32.mrb[62].mxu0  ;;  %v1067_v5 = vpop.f32.mrb[62].mxu1 }
 0x157   :  { %v753_v6 = vadd.f32 %v4683_v48, %v752_v3  ;;  %v1068_v7 = vadd.f32 %v4683_v48, %v1067_v5  ;;  %v3213_v8 = vpop.f32.mrb[63].mxu0  ;;  %v1383_v10 = vmul.f32 %v4712_v59, %v1251_v1  ;;  %v3402_v11 = vpop.f32.mrb[63].mxu1  ;;  %v1446_v13 = vmul.f32 %v4712_v59, %v1314_v2 }
 0x159   :  { %v1315_v12 = vmax.f32 %v1068_v7, 0.0  ;;  %1536 = vadd.xlane.f32.xlu1 %v1382_v9  ;;  %1538 = vadd.xlane.f32.xlu0 %v1383_v10  ;;  %v1252_v16 = vmax.f32 %v753_v6, 0.0 }
 0x15a   :  { %v757_v14 = vpop.f32.mrb[64].mxu0  ;;  %v1072_v15 = vpop.f32.mrb[64].mxu1 }
 0x15b   :  { %v758_v17 = vadd.f32 %v4683_v48, %v757_v14  ;;  %v3216_v18 = vpop.f32.mrb[65].mxu0  ;;  %v1073_v19 = vadd.f32 %v4683_v48, %v1072_v15  ;;  %v3405_v20 = vpop.f32.mrb[65].mxu1  ;;  %v1447_v21 = vmul.f32 %v4712_v59, %v1315_v12  ;;  %v1384_v29 = vmul.f32 %v4712_v59, %v1252_v16 }
 0x15d   :  { %v1253_v22 = vmax.f32 %v758_v17, 0.0  ;;  %v1316_v23 = vmax.f32 %v1073_v19, 0.0  ;;  %1664 = vadd.xlane.f32.xlu1 %v1446_v13  ;;  %1666 = vadd.xlane.f32.xlu0 %v1447_v21 }
 0x15e   :  { %v762_v24 = vpop.f32.mrb[66].mxu0  ;;  %v1077_v25 = vpop.f32.mrb[66].mxu1 }
 0x15f   :  { %v763_v26 = vadd.f32 %v4683_v48, %v762_v24  ;;  %v1078_v27 = vadd.f32 %v4683_v48, %v1077_v25  ;;  %v3219_v28 = vpop.f32.mrb[67].mxu0  ;;  %v1385_v30 = vmul.f32 %v4712_v59, %v1253_v22  ;;  %v3408_v31 = vpop.f32.mrb[67].mxu1  ;;  %v1448_v33 = vmul.f32 %v4712_v59, %v1316_v23 }
 0x161   :  { %v1317_v32 = vmax.f32 %v1078_v27, 0.0  ;;  %1540 = vadd.xlane.f32.xlu1 %v1384_v29  ;;  %1542 = vadd.xlane.f32.xlu0 %v1385_v30  ;;  %v1254_v36 = vmax.f32 %v763_v26, 0.0 }
 0x162   :  { %v767_v34 = vpop.f32.mrb[68].mxu0  ;;  %v1082_v35 = vpop.f32.mrb[68].mxu1 }
 0x163   :  { %v768_v4 = vadd.f32 %v4683_v48, %v767_v34  ;;  %v3222_v37 = vpop.f32.mrb[69].mxu0  ;;  %v1083_v38 = vadd.f32 %v4683_v48, %v1082_v35  ;;  %v3411_v39 = vpop.f32.mrb[69].mxu1  ;;  %v1449_v40 = vmul.f32 %v4712_v59, %v1317_v32  ;;  %v1386_v49 = vmul.f32 %v4712_v59, %v1254_v36  ;;  %v4973_v34 = vld [vmem:[%s5710_s3] ss:$0 sm:$0xff] }
 0x165   :  { %v1255_v41 = vmax.f32 %v768_v4, 0.0  ;;  %v1318_v42 = vmax.f32 %v1083_v38, 0.0  ;;  %1668 = vadd.xlane.f32.xlu1 %v1448_v33  ;;  %1670 = vadd.xlane.f32.xlu0 %v1449_v40 }
 0x166   :  { %v772_v43 = vpop.f32.mrb[70].mxu0  ;;  %v1087_v44 = vpop.f32.mrb[70].mxu1 }
 0x167   :  { %v773_v45 = vadd.f32 %v4683_v48, %v772_v43  ;;  %v1088_v46 = vadd.f32 %v4683_v48, %v1087_v44  ;;  %v3225_v47 = vpop.f32.mrb[71].mxu0  ;;  %v1387_v50 = vmul.f32 %v4712_v59, %v1255_v41  ;;  %v3414_v51 = vpop.f32.mrb[71].mxu1  ;;  %v1450_v53 = vmul.f32 %v4712_v59, %v1318_v42 }
 0x169   :  { %v1319_v52 = vmax.f32 %v1088_v46, 0.0  ;;  %1544 = vadd.xlane.f32.xlu1 %v1386_v49  ;;  %1546 = vadd.xlane.f32.xlu0 %v1387_v50  ;;  %v1256_v56 = vmax.f32 %v773_v45, 0.0 }
 0x16a   :  { %v777_v54 = vpop.f32.mrb[72].mxu0  ;;  %v1092_v55 = vpop.f32.mrb[72].mxu1 }
 0x16b   :  { %v778_v57 = vadd.f32 %v4683_v48, %v777_v54  ;;  %v3228_v58 = vpop.f32.mrb[73].mxu0  ;;  %v1093_v60 = vadd.f32 %v4683_v48, %v1092_v55  ;;  %v3417_v61 = vpop.f32.mrb[73].mxu1  ;;  %v1451_v62 = vmul.f32 %v4712_v59, %v1319_v52  ;;  %v1388_v8 = vmul.f32 %v4712_v59, %v1256_v56 }
 0x16d   :  { %v1257_v0 = vmax.f32 %v778_v57, 0.0  ;;  %v1320_v1 = vmax.f32 %v1093_v60, 0.0  ;;  %1672 = vadd.xlane.f32.xlu1 %v1450_v53  ;;  %1674 = vadd.xlane.f32.xlu0 %v1451_v62 }
 0x16e   :  { %v1097_v2 = vpop.f32.mrb[74].mxu1  ;;  %v1479_v3 = vpop.xlane.xlu0 %1478 }
 0x16f   :  { %v1098_v5 = vadd.f32 %v4683_v48, %v1097_v2  ;;  %v1730_v6 = vadd.f32 %v4952_v63, %v1479_v3  ;;  %v782_v7 = vpop.f32.mrb[74].mxu0  ;;  %v1389_v9 = vmul.f32 %v4712_v59, %v1257_v0  ;;  %v1605_v10 = vpop.xlane.xlu1 %1604  ;;  %v1452_v17 = vmul.f32 %v4712_v59, %v1320_v1 }
 0x170   :  { %v783_v11 = vadd.f32 %v4683_v48, %v782_v7  ;;  %v3231_v12 = vpop.f32.mrb[75].mxu0  ;;  %v1793_v13 = vadd.f32 %v4952_v63, %v1605_v10  ;;  %v3420_v14 = vpop.f32.mrb[75].mxu1  ;;  %v4965_v48 = vld [vmem:[%s5709_s2] ss:$0 sm:$0xff] }
 0x171   :  { %v1321_v15 = vmax.f32 %v1098_v5, 0.0  ;;  %v2862_v16 = vmul.f32 -1.442695, %v1730_v6  ;;  %1548 = vadd.xlane.f32.xlu1 %v1388_v8  ;;  %1550 = vadd.xlane.f32.xlu0 %v1389_v9 }
 0x172   :  { %v1258_v18 = vmax.f32 %v783_v11, 0.0  ;;  %v2925_v19 = vmul.f32 -1.442695, %v1793_v13  ;;  %v1481_v20 = vpop.xlane.xlu0 %1480  ;;  %v787_v21 = vpop.f32.mrb[76].mxu0 }
 0x173   :  { %3501 = vpow2.f32 %v2862_v16  ;;  %v1731_v22 = vadd.f32 %v4952_v63, %v1481_v20  ;;  %v788_v23 = vadd.f32 %v4965_v48, %v787_v21  ;;  %v3234_v24 = vpop.f32.mrb[77].mxu0  ;;  %v1102_v25 = vpop.f32.mrb[76].mxu1  ;;  %v1453_v26 = vmul.f32 %v4712_v59, %v1321_v15 }
 0x174   :  { %3503 = vpow2.f32 %v2925_v19  ;;  %v1103_v27 = vadd.f32 %v4965_v48, %v1102_v25  ;;  %v3423_v28 = vpop.f32.mrb[77].mxu1  ;;  %v1390_v35 = vmul.f32 %v4973_v34, %v1258_v18 }
 0x175   :  { %v2863_v29 = vmul.f32 -1.442695, %v1731_v22  ;;  %v1259_v30 = vmax.f32 %v788_v23, 0.0  ;;  %1676 = vadd.xlane.f32.xlu1 %v1452_v17  ;;  %1678 = vadd.xlane.f32.xlu0 %v1453_v26 }
 0x176   :  { %v1322_v31 = vmax.f32 %v1103_v27, 0.0  ;;  %v1107_v32 = vpop.f32.mrb[78].mxu1  ;;  %v1607_v33 = vpop.xlane.xlu0 %1606 }
 0x177   :  { %3505 = vpow2.f32 %v2863_v29  ;;  %v1108_v59 = vadd.f32 %v4965_v48, %v1107_v32  ;;  %v1794_v36 = vadd.f32 %v4952_v63, %v1607_v33  ;;  %v1483_v4 = vpop.xlane.xlu1 %1482  ;;  %v792_v37 = vpop.f32.mrb[78].mxu0  ;;  %v1391_v38 = vmul.f32 %v4973_v34, %v1259_v30 }
 0x178   :  { %v1732_v39 = vadd.f32 %v4952_v63, %v1483_v4  ;;  %v793_v40 = vadd.f32 %v4965_v48, %v792_v37  ;;  %v3237_v41 = vpop.f32.mrb[79].mxu0  ;;  %v3426_v42 = vpop.f32.mrb[79].mxu1  ;;  %v1454_v45 = vmul.f32 %v4973_v34, %v1322_v31 }
 0x179   :  { %v1323_v43 = vmax.f32 %v1108_v59, 0.0  ;;  %v2926_v44 = vmul.f32 -1.442695, %v1794_v36  ;;  %1552 = vadd.xlane.f32.xlu1 %v1390_v35  ;;  %1554 = vadd.xlane.f32.xlu0 %v1391_v38 }
 0x17a   :  { %v2864_v46 = vmul.f32 -1.442695, %v1732_v39  ;;  %v1260_v47 = vmax.f32 %v793_v40, 0.0  ;;  %v1611_v49 = vpop.xlane.xlu0 %1610  ;;  %v797_v50 = vpop.f32.mrb[80].mxu0 }
 0x17b   :  { %3507 = vpow2.f32 %v2926_v44  ;;  %v1796_v51 = vadd.f32 %v4952_v63, %v1611_v49  ;;  %v1609_v52 = vpop.xlane.xlu1 %1608  ;;  %v798_v53 = vadd.f32 %v4965_v48, %v797_v50  ;;  %v3240_v54 = vpop.f32.mrb[81].mxu0  ;;  %v1455_v55 = vmul.f32 %v4973_v34, %v1323_v43 }
 0x17c   :  { %3509 = vpow2.f32 %v2864_v46  ;;  %v1795_v56 = vadd.f32 %v4952_v63, %v1609_v52  ;;  %v1112_v57 = vpop.f32.mrb[80].mxu1  ;;  %v1392_v7 = vmul.f32 %v4973_v34, %v1260_v47 }
 0x17d   :  { %v3502_v58 = vpop.eup %3501  ;;  %v2928_v60 = vmul.f32 -1.442695, %v1796_v51  ;;  %v1261_v61 = vmax.f32 %v798_v53, 0.0  ;;  %v1113_v62 = vadd.f32 %v4965_v48, %v1112_v57  ;;  %v3429_v0 = vpop.f32.mrb[81].mxu1  ;;  %1680 = vadd.xlane.f32.xlu1 %v1454_v45  ;;  %1682 = vadd.xlane.f32.xlu0 %v1455_v55 }
 0x17e   :  { %v3504_v1 = vpop.eup %3503  ;;  %v2230_v2 = vadd.f32 1.0, %v3502_v58  ;;  %v2927_v3 = vmul.f32 -1.442695, %v1795_v56  ;;  %v1117_v5 = vpop.f32.mrb[82].mxu1 }
 0x17f   :  { %v1487_v6 = vpop.xlane.xlu0 %1486  ;;  %v2293_v8 = vadd.f32 1.0, %v3504_v1  ;;  %3511 = vpow2.f32 %v2928_v60  ;;  %v1324_v9 = vmax.f32 %v1113_v62, 0.0  ;;  %v1118_v10 = vadd.f32 %v4965_v48, %v1117_v5  ;;  %v1485_v11 = vpop.xlane.xlu1 %1484 }
 0x180   :  { %v802_v12 = vpop.f32.mrb[82].mxu0  ;;  %3513 = vrcp.f32 %v2230_v2  ;;  %v1733_v13 = vadd.f32 %v4952_v63, %v1485_v11  ;;  %v1734_v14 = vadd.f32 %v4952_v63, %v1487_v6  ;;  %v3432_v17 = vpop.f32.mrb[83].mxu1  ;;  %v1393_v20 = vmul.f32 %v4973_v34, %v1261_v61 }
 0x181   :  { %v803_v15 = vadd.f32 %v4965_v48, %v802_v12  ;;  %v3243_v16 = vpop.f32.mrb[83].mxu0  ;;  %v3506_v18 = vpop.eup %3505  ;;  %3515 = vrcp.f32 %v2293_v8  ;;  %v1325_v19 = vmax.f32 %v1118_v10, 0.0  ;;  %1556 = vadd.xlane.f32.xlu1 %v1392_v7  ;;  %v1456_v21 = vmul.f32 %v4973_v34, %v1324_v9 }
 0x182   :  { %v2231_v22 = vadd.f32 1.0, %v3506_v18  ;;  %3517 = vpow2.f32 %v2927_v3  ;;  %v2865_v23 = vmul.f32 -1.442695, %v1733_v13  ;;  %v2866_v24 = vmul.f32 -1.442695, %v1734_v14  ;;  %v807_v26 = vpop.f32.mrb[84].mxu0  ;;  %1558 = vadd.xlane.f32.xlu0 %v1393_v20 }
 0x183   :  { %v1615_v25 = vpop.xlane.xlu0 %1614  ;;  %v1262_v27 = vmax.f32 %v803_v15, 0.0  ;;  %v1613_v28 = vpop.xlane.xlu1 %1612  ;;  %v808_v30 = vadd.f32 %v4965_v48, %v807_v26  ;;  %v1457_v32 = vmul.f32 %v4973_v34, %v1325_v19 }
 0x184   :  { %v1798_v29 = vadd.f32 %v4952_v63, %v1615_v25  ;;  %v3246_v31 = vpop.f32.mrb[85].mxu0  ;;  %3519 = vrcp.f32 %v2231_v22  ;;  %v1797_v33 = vadd.f32 %v4952_v63, %v1613_v28  ;;  %v1122_v35 = vpop.f32.mrb[84].mxu1 }
 0x185   :  { %v3508_v59 = vpop.eup %3507  ;;  %3521 = vpow2.f32 %v2865_v23  ;;  %v1263_v4 = vmax.f32 %v808_v30, 0.0  ;;  %v1123_v37 = vadd.f32 %v4965_v48, %v1122_v35  ;;  %v3435_v38 = vpop.f32.mrb[85].mxu1  ;;  %1684 = vadd.xlane.f32.xlu1 %v1456_v21  ;;  %v1394_v44 = vmul.f32 %v4973_v34, %v1262_v27 }
 0x186   :  { %v2930_v36 = vmul.f32 -1.442695, %v1798_v29  ;;  %v3510_v39 = vpop.eup %3509  ;;  %v2294_v40 = vadd.f32 1.0, %v3508_v59  ;;  %3523 = vpow2.f32 %v2866_v24  ;;  %v2929_v41 = vmul.f32 -1.442695, %v1797_v33  ;;  %v1127_v42 = vpop.f32.mrb[86].mxu1  ;;  %1686 = vadd.xlane.f32.xlu0 %v1457_v32 }
 0x187   :  { %v1491_v43 = vpop.xlane.xlu0 %1490  ;;  %v2232_v45 = vadd.f32 1.0, %v3510_v39  ;;  %v1326_v46 = vmax.f32 %v1123_v37, 0.0  ;;  %v1128_v47 = vadd.f32 %v4965_v48, %v1127_v42  ;;  %v1489_v49 = vpop.xlane.xlu1 %1488  ;;  %v1395_v58 = vmul.f32 %v4973_v34, %v1263_v4 }
 0x188   :  { %3525 = vpow2.f32 %v2930_v36  ;;  %v812_v50 = vpop.f32.mrb[86].mxu0  ;;  %v1735_v51 = vadd.f32 %v4952_v63, %v1489_v49  ;;  %v1736_v52 = vadd.f32 %v4952_v63, %v1491_v43  ;;  %v3438_v55 = vpop.f32.mrb[87].mxu1 }
 0x189   :  { %3527 = vrcp.f32 %v2294_v40  ;;  %v813_v53 = vadd.f32 %v4965_v48, %v812_v50  ;;  %v3249_v54 = vpop.f32.mrb[87].mxu0  ;;  %v3512_v56 = vpop.eup %3511  ;;  %v1327_v57 = vmax.f32 %v1128_v47, 0.0  ;;  %1560 = vadd.xlane.f32.xlu1 %v1394_v44  ;;  %v1458_v60 = vmul.f32 %v4973_v34, %v1326_v46 }
 0x18a   :  { %3529 = vrcp.f32 %v2232_v45  ;;  %v3514_v61 = vpop.eup %3513  ;;  %v2296_v62 = vadd.f32 1.0, %v3512_v56  ;;  %v2867_v0 = vmul.f32 -1.442695, %v1735_v51  ;;  %v2868_v1 = vmul.f32 -1.442695, %v1736_v52  ;;  %v817_v3 = vpop.f32.mrb[88].mxu0  ;;  %1562 = vadd.xlane.f32.xlu0 %v1395_v58 }
 0x18b   :  { %3531 = vpow2.f32 %v2929_v41  ;;  %v1619_v2 = vpop.xlane.xlu0 %1618  ;;  %v3516_v5 = vpop.eup %3515  ;;  %2606 = vst.msk [vmem:[%s5712_s5] sm:$0xff] %vm2605_vm2, %v3514_v61  ;;  %v1264_v6 = vmax.f32 %v813_v53, 0.0  ;;  %v818_v9 = vadd.f32 %v4965_v48, %v817_v3  ;;  %v1459_v11 = vmul.f32 %v4973_v34, %v1327_v57 }
 0x18c   :  { %v1617_v7 = vpop.xlane.xlu1 %1616  ;;  %v1800_v8 = vadd.f32 %v4952_v63, %v1619_v2  ;;  %v3252_v10 = vpop.f32.mrb[89].mxu0  ;;  %2669 = vst.msk [vmem:[%s5712_s5 + $0x1f8] sm:$0xff] %vm2605_vm2, %v3516_v5  ;;  %3533 = vrcp.f32 %v2296_v62 }
 0x18d   :  { %v3518_v12 = vpop.eup %3517  ;;  %v1799_v13 = vadd.f32 %v4952_v63, %v1617_v7  ;;  %v1132_v14 = vpop.f32.mrb[88].mxu1  ;;  %3535 = vpow2.f32 %v2867_v0  ;;  %v1265_v17 = vmax.f32 %v818_v9, 0.0  ;;  %1688 = vadd.xlane.f32.xlu1 %v1458_v60  ;;  %v1396_v24 = vmul.f32 %v4973_v34, %v1264_v6 }
 0x18e   :  { %v2295_v15 = vadd.f32 1.0, %v3518_v12  ;;  %v2932_v16 = vmul.f32 -1.442695, %v1800_v8  ;;  %v3441_v18 = vpop.f32.mrb[89].mxu1  ;;  %v3520_v19 = vpop.eup %3519  ;;  %3537 = vpow2.f32 %v2868_v1  ;;  %v1133_v21 = vadd.f32 %v4965_v48, %v1132_v14  ;;  %1690 = vadd.xlane.f32.xlu0 %v1459_v11 }
 0x18f   :  { %v2931_v20 = vmul.f32 -1.442695, %v1799_v13  ;;  %v1137_v22 = vpop.f32.mrb[90].mxu1  ;;  %v1495_v23 = vpop.xlane.xlu0 %1494  ;;  %2607 = vst.msk [vmem:[%s5712_s5 + $0x8] sm:$0xff] %vm2605_vm2, %v3520_v19  ;;  %v1397_v30 = vmul.f32 %v4973_v34, %v1265_v17 }
 0x190   :  { %v3522_v25 = vpop.eup %3521  ;;  %3539 = vrcp.f32 %v2295_v15  ;;  %v1138_v26 = vadd.f32 %v4965_v48, %v1137_v22  ;;  %v1493_v27 = vpop.xlane.xlu1 %1492  ;;  %v1738_v28 = vadd.f32 %v4952_v63, %v1495_v23  ;;  %v1328_v33 = vmax.f32 %v1133_v21, 0.0 }
 0x191   :  { %v822_v29 = vpop.f32.mrb[90].mxu0  ;;  %v3524_v31 = vpop.eup %3523  ;;  %v2233_v32 = vadd.f32 1.0, %v3522_v25  ;;  %3541 = vpow2.f32 %v2931_v20  ;;  %v1737_v35 = vadd.f32 %v4952_v63, %v1493_v27  ;;  %1564 = vadd.xlane.f32.xlu1 %v1396_v24 }
 0x192   :  { %v3255_v59 = vpop.f32.mrb[91].mxu0  ;;  %v3444_v36 = vpop.f32.mrb[91].mxu1  ;;  %v2234_v37 = vadd.f32 1.0, %v3524_v31  ;;  %3543 = vpow2.f32 %v2932_v16  ;;  %v1329_v38 = vmax.f32 %v1138_v26, 0.0  ;;  %v2870_v39 = vmul.f32 -1.442695, %v1738_v28  ;;  %1566 = vadd.xlane.f32.xlu0 %v1397_v30 }
 0x193   :  { %v3526_v4 = vpop.eup %3525  ;;  %3545 = vrcp.f32 %v2233_v32  ;;  %v2869_v42 = vmul.f32 -1.442695, %v1737_v35  ;;  %v823_v43 = vadd.f32 %v4965_v48, %v822_v29  ;;  %v1623_v44 = vpop.xlane.xlu0 %1622  ;;  %v1460_v52 = vmul.f32 %v4973_v34, %v1328_v33 }
 0x194   :  { %v3528_v40 = vpop.eup %3527  ;;  %v2298_v41 = vadd.f32 1.0, %v3526_v4  ;;  %v827_v45 = vpop.f32.mrb[92].mxu0  ;;  %3547 = vrcp.f32 %v2234_v37  ;;  %v1802_v49 = vadd.f32 %v4952_v63, %v1623_v44  ;;  %v1461_v57 = vmul.f32 %v4973_v34, %v1329_v38 }
 0x195   :  { %v3530_v46 = vpop.eup %3529  ;;  %2670 = vst.msk [vmem:[%s5712_s5 + $0x200] sm:$0xff] %vm2605_vm2, %v3528_v40  ;;  %v1621_v47 = vpop.xlane.xlu1 %1620  ;;  %v828_v50 = vadd.f32 %v4965_v48, %v827_v45  ;;  %v1266_v54 = vmax.f32 %v823_v43, 0.0  ;;  %1692 = vadd.xlane.f32.xlu1 %v1460_v52 }
 0x196   :  { %v3258_v51 = vpop.f32.mrb[93].mxu0  ;;  %v3532_v53 = vpop.eup %3531  ;;  %2608 = vst.msk [vmem:[%s5712_s5 + $0x10] sm:$0xff] %vm2605_vm2, %v3530_v46  ;;  %3549 = vrcp.f32 %v2298_v41  ;;  %v1801_v55 = vadd.f32 %v4952_v63, %v1621_v47  ;;  %v2934_v60 = vmul.f32 -1.442695, %v1802_v49  ;;  %1694 = vadd.xlane.f32.xlu0 %v1461_v57 }
 0x197   :  { %v1142_v56 = vpop.f32.mrb[92].mxu1  ;;  %v2297_v58 = vadd.f32 1.0, %v3532_v53  ;;  %3551 = vpow2.f32 %v2869_v42  ;;  %v1267_v61 = vmax.f32 %v828_v50, 0.0  ;;  %v3534_v0 = vpop.eup %3533  ;;  %v1398_v6 = vmul.f32 %v4973_v34, %v1266_v54 }
 0x198   :  { %v3447_v62 = vpop.f32.mrb[93].mxu1  ;;  %3553 = vpow2.f32 %v2870_v39  ;;  %v2933_v1 = vmul.f32 -1.442695, %v1801_v55  ;;  %v1143_v2 = vadd.f32 %v4965_v48, %v1142_v56  ;;  %v1499_v5 = vpop.xlane.xlu0 %1498  ;;  %2672 = vst.msk [vmem:[%s5712_s5 + $0x210] sm:$0xff] %vm2605_vm2, %v3534_v0 }
 0x199   :  { %v1147_v3 = vpop.f32.mrb[94].mxu1  ;;  %v3536_v7 = vpop.eup %3535  ;;  %3555 = vrcp.f32 %v2297_v58  ;;  %v1740_v10 = vadd.f32 %v4952_v63, %v1499_v5  ;;  %v1399_v12 = vmul.f32 %v4973_v34, %v1267_v61  ;;  %1568 = vadd.xlane.f32.xlu1 %v1398_v6 }
 0x19a   :  { %v1148_v8 = vadd.f32 %v4965_v48, %v1147_v3  ;;  %v1497_v9 = vpop.xlane.xlu1 %1496  ;;  %v832_v11 = vpop.f32.mrb[94].mxu0  ;;  %v2235_v14 = vadd.f32 1.0, %v3536_v7  ;;  %3557 = vpow2.f32 %v2933_v1  ;;  %v1330_v15 = vmax.f32 %v1143_v2, 0.0 }
 0x19b   :  { %v3538_v13 = vpop.eup %3537  ;;  %v1739_v16 = vadd.f32 %v4952_v63, %v1497_v9  ;;  %v3261_v17 = vpop.f32.mrb[95].mxu0  ;;  %3559 = vpow2.f32 %v2934_v60  ;;  %v2872_v22 = vmul.f32 -1.442695, %v1740_v10  ;;  %v833_v25 = vadd.f32 %v4965_v48, %v832_v11  ;;  %1570 = vadd.xlane.f32.xlu0 %v1399_v12 }
 0x19c   :  { %v3450_v18 = vpop.f32.mrb[95].mxu1  ;;  %v3540_v19 = vpop.eup %3539  ;;  %v2236_v20 = vadd.f32 1.0, %v3538_v13  ;;  %v1331_v21 = vmax.f32 %v1148_v8, 0.0  ;;  %3561 = vrcp.f32 %v2235_v14  ;;  %v1462_v28 = vmul.f32 %v4973_v34, %v1330_v15 }
 0x19d   :  { %v3542_v23 = vpop.eup %3541  ;;  %2671 = vst.msk [vmem:[%s5712_s5 + $0x208] sm:$0xff] %vm2605_vm2, %v3540_v19  ;;  %v2871_v24 = vmul.f32 -1.442695, %v1739_v16  ;;  %v1627_v26 = vpop.xlane.xlu0 %1626  ;;  %v1268_v4 = vmax.f32 %v833_v25, 0.0 }
 0x19e   :  { %v837_v27 = vpop.f32.mrb[96].mxu0  ;;  %v3544_v29 = vpop.eup %3543  ;;  %3563 = vrcp.f32 %v2236_v20  ;;  %v2299_v30 = vadd.f32 1.0, %v3542_v23  ;;  %v1804_v32 = vadd.f32 %v4952_v63, %v1627_v26  ;;  %1696 = vadd.xlane.f32.xlu1 %v1462_v28  ;;  %v1463_v46 = vmul.f32 %v4973_v34, %v1331_v21 }
 0x19f   :  { %v1625_v31 = vpop.xlane.xlu1 %1624  ;;  %v838_v33 = vadd.f32 %v4965_v48, %v837_v27  ;;  %v3264_v35 = vpop.f32.mrb[97].mxu0  ;;  %v2300_v36 = vadd.f32 1.0, %v3544_v29  ;;  %3565 = vpow2.f32 %v2871_v24  ;;  %v1400_v55 = vmul.f32 %v4973_v34, %v1268_v4 }
 0x1a0   :  { %v3546_v59 = vpop.eup %3545  ;;  %v1803_v37 = vadd.f32 %v4952_v63, %v1625_v31  ;;  %v1152_v38 = vpop.f32.mrb[96].mxu1  ;;  %3567 = vrcp.f32 %v2299_v30  ;;  %v2936_v40 = vmul.f32 -1.442695, %v1804_v32  ;;  %1698 = vadd.xlane.f32.xlu0 %v1463_v46 }
 0x1a1   :  { %v3548_v39 = vpop.eup %3547  ;;  %2609 = vst.msk [vmem:[%s5712_s5 + $0x18] sm:$0xff] %vm2605_vm2, %v3546_v59  ;;  %v1269_v41 = vmax.f32 %v838_v33, 0.0  ;;  %v3453_v42 = vpop.f32.mrb[97].mxu1  ;;  %3569 = vrcp.f32 %v2300_v36  ;;  %v1153_v45 = vadd.f32 %v4965_v48, %v1152_v38 }
 0x1a2   :  { %v3550_v43 = vpop.eup %3549  ;;  %2610 = vst.msk [vmem:[%s5712_s5 + $0x20] sm:$0xff] %vm2605_vm2, %v3548_v39  ;;  %v2935_v44 = vmul.f32 -1.442695, %v1803_v37  ;;  %v1157_v47 = vpop.f32.mrb[98].mxu1  ;;  %3571 = vpow2.f32 %v2872_v22  ;;  %1572 = vadd.xlane.f32.xlu1 %v1400_v55 }
 0x1a3   :  { %v1503_v49 = vpop.xlane.xlu0 %1502  ;;  %v3552_v50 = vpop.eup %3551  ;;  %2674 = vst.msk [vmem:[%s5712_s5 + $0x220] sm:$0xff] %vm2605_vm2, %v3550_v43  ;;  %v1158_v51 = vadd.f32 %v4965_v48, %v1157_v47  ;;  %v1332_v5 = vmax.f32 %v1153_v45, 0.0  ;;  %v1401_v7 = vmul.f32 %v4973_v34, %v1269_v41 }
 0x1a4   :  { %v1501_v52 = vpop.xlane.xlu1 %1500  ;;  %v1742_v53 = vadd.f32 %v4952_v63, %v1503_v49  ;;  %v842_v54 = vpop.f32.mrb[98].mxu0  ;;  %v2237_v57 = vadd.f32 1.0, %v3552_v50  ;;  %3573 = vpow2.f32 %v2935_v44 }
 0x1a5   :  { %v3554_v56 = vpop.eup %3553  ;;  %v1741_v58 = vadd.f32 %v4952_v63, %v1501_v52  ;;  %v3267_v60 = vpop.f32.mrb[99].mxu0  ;;  %3575 = vpow2.f32 %v2936_v40  ;;  %v1333_v1 = vmax.f32 %v1158_v51, 0.0  ;;  %v843_v2 = vadd.f32 %v4965_v48, %v842_v54  ;;  %1574 = vadd.xlane.f32.xlu0 %v1401_v7 }
 0x1a6   :  { %v3456_v61 = vpop.f32.mrb[99].mxu1  ;;  %v3556_v62 = vpop.eup %3555  ;;  %v2238_v0 = vadd.f32 1.0, %v3554_v56  ;;  %3577 = vrcp.f32 %v2237_v57  ;;  %v2874_v12 = vmul.f32 -1.442695, %v1742_v53  ;;  %v1464_v29 = vmul.f32 %v4973_v34, %v1332_v5 }
 0x1a7   :  { %v3558_v3 = vpop.eup %3557  ;;  %2673 = vst.msk [vmem:[%s5712_s5 + $0x218] sm:$0xff] %vm2605_vm2, %v3556_v62  ;;  %v2873_v6 = vmul.f32 -1.442695, %v1741_v58  ;;  %v1631_v8 = vpop.xlane.xlu0 %1630  ;;  %v1465_v18 = vmul.f32 %v4973_v34, %v1333_v1  ;;  %v1270_v22 = vmax.f32 %v843_v2, 0.0 }
 0x1a8   :  { %v847_v9 = vpop.f32.mrb[100].mxu0  ;;  %v3560_v10 = vpop.eup %3559  ;;  %3579 = vrcp.f32 %v2238_v0  ;;  %v2301_v11 = vadd.f32 1.0, %v3558_v3  ;;  %v1806_v14 = vadd.f32 %v4952_v63, %v1631_v8  ;;  %1700 = vadd.xlane.f32.xlu1 %v1464_v29 }
 0x1a9   :  { %v1629_v13 = vpop.xlane.xlu1 %1628  ;;  %v3270_v15 = vpop.f32.mrb[101].mxu0  ;;  %v2302_v17 = vadd.f32 1.0, %v3560_v10  ;;  %3581 = vpow2.f32 %v2873_v6  ;;  %v848_v23 = vadd.f32 %v4965_v48, %v847_v9  ;;  %1702 = vadd.xlane.f32.xlu0 %v1465_v18  ;;  %v1402_v44 = vmul.f32 %v4973_v34, %v1270_v22 }
 0x1aa   :  { %v3562_v16 = vpop.eup %3561  ;;  %v1805_v19 = vadd.f32 %v4952_v63, %v1629_v13  ;;  %v1162_v20 = vpop.f32.mrb[100].mxu1  ;;  %3583 = vrcp.f32 %v2301_v11  ;;  %v2938_v28 = vmul.f32 -1.442695, %v1806_v14 }
 0x1ab   :  { %v3564_v21 = vpop.eup %3563  ;;  %2611 = vst.msk [vmem:[%s5712_s5 + $0x28] sm:$0xff] %vm2605_vm2, %v3562_v16  ;;  %v1163_v24 = vadd.f32 %v4965_v48, %v1162_v20  ;;  %v3459_v25 = vpop.f32.mrb[101].mxu1  ;;  %3585 = vrcp.f32 %v2302_v17  ;;  %v1271_v35 = vmax.f32 %v848_v23, 0.0 }
 0x1ac   :  { %v3566_v26 = vpop.eup %3565  ;;  %2612 = vst.msk [vmem:[%s5712_s5 + $0x30] sm:$0xff] %vm2605_vm2, %v3564_v21  ;;  %v2937_v27 = vmul.f32 -1.442695, %v1805_v19  ;;  %v1167_v30 = vpop.f32.mrb[102].mxu1  ;;  %3587 = vpow2.f32 %v2874_v12  ;;  %1576 = vadd.xlane.f32.xlu1 %v1402_v44 }
 0x1ad   :  { %v1507_v31 = vpop.xlane.xlu0 %1506  ;;  %v3568_v32 = vpop.eup %3567  ;;  %v2239_v33 = vadd.f32 1.0, %v3566_v26  ;;  %v1334_v59 = vmax.f32 %v1163_v24, 0.0  ;;  %v1168_v38 = vadd.f32 %v4965_v48, %v1167_v30  ;;  %v1403_v45 = vmul.f32 %v4973_v34, %v1271_v35 }
 0x1ae   :  { %v1505_v36 = vpop.xlane.xlu1 %1504  ;;  %v852_v4 = vpop.f32.mrb[102].mxu0  ;;  %2675 = vst.msk [vmem:[%s5712_s5 + $0x228] sm:$0xff] %vm2605_vm2, %v3568_v32  ;;  %3589 = vpow2.f32 %v2937_v27  ;;  %v1744_v40 = vadd.f32 %v4952_v63, %v1507_v31 }
 0x1af   :  { %v3570_v37 = vpop.eup %3569  ;;  %v1743_v39 = vadd.f32 %v4952_v63, %v1505_v36  ;;  %v3273_v41 = vpop.f32.mrb[103].mxu0  ;;  %3591 = vrcp.f32 %v2239_v33  ;;  %v853_v46 = vadd.f32 %v4965_v48, %v852_v4  ;;  %v1466_v50 = vmul.f32 %v4973_v34, %v1334_v59  ;;  %1578 = vadd.xlane.f32.xlu0 %v1403_v45 }
 0x1b0   :  { %v3462_v42 = vpop.f32.mrb[103].mxu1  ;;  %v3572_v43 = vpop.eup %3571  ;;  %2676 = vst.msk [vmem:[%s5712_s5 + $0x230] sm:$0xff] %vm2605_vm2, %v3570_v37  ;;  %3593 = vpow2.f32 %v2938_v28  ;;  %v1335_v51 = vmax.f32 %v1168_v38, 0.0  ;;  %v2876_v57 = vmul.f32 -1.442695, %v1744_v40 }
 0x1b1   :  { %v3574_v47 = vpop.eup %3573  ;;  %v2240_v49 = vadd.f32 1.0, %v3572_v43  ;;  %v1635_v52 = vpop.xlane.xlu0 %1634  ;;  %v2875_v56 = vmul.f32 -1.442695, %v1743_v39  ;;  %v1272_v6 = vmax.f32 %v853_v46, 0.0  ;;  %1704 = vadd.xlane.f32.xlu1 %v1466_v50 }
 0x1b2   :  { %v857_v53 = vpop.f32.mrb[104].mxu0  ;;  %v3576_v54 = vpop.eup %3575  ;;  %v2303_v55 = vadd.f32 1.0, %v3574_v47  ;;  %v1808_v60 = vadd.f32 %v4952_v63, %v1635_v52  ;;  %v1467_v1 = vmul.f32 %v4973_v34, %v1335_v51 }
 0x1b3   :  { %v1633_v58 = vpop.xlane.xlu1 %1632  ;;  %v3276_v61 = vpop.f32.mrb[105].mxu0  ;;  %3595 = vrcp.f32 %v2240_v49  ;;  %v2304_v0 = vadd.f32 1.0, %v3576_v54  ;;  %v858_v7 = vadd.f32 %v4965_v48, %v857_v53  ;;  %v1404_v28 = vmul.f32 %v4973_v34, %v1272_v6 }
 0x1b4   :  { %v3578_v62 = vpop.eup %3577  ;;  %v1807_v2 = vadd.f32 %v4952_v63, %v1633_v58  ;;  %v1172_v3 = vpop.f32.mrb[104].mxu1  ;;  %3597 = vrcp.f32 %v2303_v55  ;;  %v2940_v11 = vmul.f32 -1.442695, %v1808_v60  ;;  %1706 = vadd.xlane.f32.xlu0 %v1467_v1 }
 0x1b5   :  { %v3580_v5 = vpop.eup %3579  ;;  %2613 = vst.msk [vmem:[%s5712_s5 + $0x38] sm:$0xff] %vm2605_vm2, %v3578_v62  ;;  %v3465_v8 = vpop.f32.mrb[105].mxu1  ;;  %3599 = vrcp.f32 %v2304_v0  ;;  %v1173_v12 = vadd.f32 %v4965_v48, %v1172_v3  ;;  %v1273_v17 = vmax.f32 %v858_v7, 0.0  ;;  %1580 = vadd.xlane.f32.xlu1 %v1404_v28 }
 0x1b6   :  { %v3582_v9 = vpop.eup %3581  ;;  %2614 = vst.msk [vmem:[%s5712_s5 + $0x40] sm:$0xff] %vm2605_vm2, %v3580_v5  ;;  %v2939_v10 = vmul.f32 -1.442695, %v1807_v2  ;;  %v1177_v13 = vpop.f32.mrb[106].mxu1  ;;  %3601 = vpow2.f32 %v2875_v56 }
 0x1b7   :  { %v1511_v14 = vpop.xlane.xlu0 %1510  ;;  %v3584_v15 = vpop.eup %3583  ;;  %v2241_v16 = vadd.f32 1.0, %v3582_v9  ;;  %v1178_v18 = vadd.f32 %v4965_v48, %v1177_v13  ;;  %3603 = vpow2.f32 %v2876_v57  ;;  %v1336_v22 = vmax.f32 %v1173_v12, 0.0 }
 0x1b8   :  { %v1509_v19 = vpop.xlane.xlu1 %1508  ;;  %v862_v20 = vpop.f32.mrb[106].mxu0  ;;  %2677 = vst.msk [vmem:[%s5712_s5 + $0x238] sm:$0xff] %vm2605_vm2, %v3584_v15  ;;  %v1746_v24 = vadd.f32 %v4952_v63, %v1511_v14  ;;  %v1405_v29 = vmul.f32 %v4973_v34, %v1273_v17 }
 0x1b9   :  { %v3586_v21 = vpop.eup %3585  ;;  %v1745_v23 = vadd.f32 %v4952_v63, %v1509_v19  ;;  %v3279_v25 = vpop.f32.mrb[107].mxu0  ;;  %3605 = vrcp.f32 %v2241_v16  ;;  %v1337_v30 = vmax.f32 %v1178_v18, 0.0  ;;  %v863_v35 = vadd.f32 %v4965_v48, %v862_v20 }
 0x1ba   :  { %v3468_v26 = vpop.f32.mrb[107].mxu1  ;;  %v3588_v27 = vpop.eup %3587  ;;  %2678 = vst.msk [vmem:[%s5712_s5 + $0x240] sm:$0xff] %vm2605_vm2, %v3586_v21  ;;  %3607 = vpow2.f32 %v2939_v10  ;;  %v1468_v38 = vmul.f32 %v4973_v34, %v1336_v22  ;;  %v2878_v43 = vmul.f32 -1.442695, %v1746_v24  ;;  %1582 = vadd.xlane.f32.xlu0 %v1405_v29 }
 0x1bb   :  { %v3590_v31 = vpop.eup %3589  ;;  %v2242_v32 = vadd.f32 1.0, %v3588_v27  ;;  %v2877_v33 = vmul.f32 -1.442695, %v1745_v23  ;;  %v1639_v59 = vpop.xlane.xlu0 %1638  ;;  %3609 = vpow2.f32 %v2940_v11  ;;  %v1469_v39 = vmul.f32 %v4973_v34, %v1337_v30 }
 0x1bc   :  { %v867_v36 = vpop.f32.mrb[108].mxu0  ;;  %v3592_v4 = vpop.eup %3591  ;;  %v2305_v37 = vadd.f32 1.0, %v3590_v31  ;;  %v1810_v45 = vadd.f32 %v4952_v63, %v1639_v59  ;;  %v1274_v53 = vmax.f32 %v863_v35, 0.0  ;;  %1708 = vadd.xlane.f32.xlu1 %v1468_v38 }
 0x1bd   :  { %v1637_v40 = vpop.xlane.xlu1 %1636  ;;  %v3282_v41 = vpop.f32.mrb[109].mxu0  ;;  %2615 = vst.msk [vmem:[%s5712_s5 + $0x48] sm:$0xff] %vm2605_vm2, %v3592_v4  ;;  %3611 = vrcp.f32 %v2242_v32  ;;  %v868_v49 = vadd.f32 %v4965_v48, %v867_v36 }
 0x1be   :  { %v3594_v42 = vpop.eup %3593  ;;  %v1809_v44 = vadd.f32 %v4952_v63, %v1637_v40  ;;  %v1182_v46 = vpop.f32.mrb[108].mxu1  ;;  %3613 = vrcp.f32 %v2305_v37  ;;  %v2942_v55 = vmul.f32 -1.442695, %v1810_v45  ;;  %1710 = vadd.xlane.f32.xlu0 %v1469_v39  ;;  %v1406_v14 = vmul.f32 %v4973_v34, %v1274_v53 }
 0x1bf   :  { %v2306_v47 = vadd.f32 1.0, %v3594_v42  ;;  %v1183_v50 = vadd.f32 %v4965_v48, %v1182_v46  ;;  %v3471_v51 = vpop.f32.mrb[109].mxu1  ;;  %v3596_v52 = vpop.eup %3595  ;;  %3615 = vpow2.f32 %v2877_v33  ;;  %v1275_v60 = vmax.f32 %v868_v49, 0.0 }
 0x1c0   :  { %v2941_v54 = vmul.f32 -1.442695, %v1809_v44  ;;  %v1187_v56 = vpop.f32.mrb[110].mxu1  ;;  %v1515_v57 = vpop.xlane.xlu0 %1514  ;;  %2616 = vst.msk [vmem:[%s5712_s5 + $0x50] sm:$0xff] %vm2605_vm2, %v3596_v52  ;;  %1584 = vadd.xlane.f32.xlu1 %v1406_v14 }
 0x1c1   :  { %v3598_v58 = vpop.eup %3597  ;;  %3617 = vrcp.f32 %v2306_v47  ;;  %v1338_v61 = vmax.f32 %v1183_v50, 0.0  ;;  %v1188_v62 = vadd.f32 %v4965_v48, %v1187_v56  ;;  %v1513_v0 = vpop.xlane.xlu1 %1512  ;;  %v1748_v5 = vadd.f32 %v4952_v63, %v1515_v57 }
 0x1c2   :  { %v872_v1 = vpop.f32.mrb[110].mxu0  ;;  %v3600_v2 = vpop.eup %3599  ;;  %2679 = vst.msk [vmem:[%s5712_s5 + $0x248] sm:$0xff] %vm2605_vm2, %v3598_v58  ;;  %3619 = vpow2.f32 %v2878_v43  ;;  %v1747_v3 = vadd.f32 %v4952_v63, %v1513_v0  ;;  %v1407_v9 = vmul.f32 %v4973_v34, %v1275_v60 }
 0x1c3   :  { %v3285_v6 = vpop.f32.mrb[111].mxu0  ;;  %v3474_v7 = vpop.f32.mrb[111].mxu1  ;;  %2680 = vst.msk [vmem:[%s5712_s5 + $0x250] sm:$0xff] %vm2605_vm2, %v3600_v2  ;;  %3621 = vpow2.f32 %v2941_v54  ;;  %v1339_v10 = vmax.f32 %v1188_v62, 0.0  ;;  %v5168_v11 = vadd.f32 %v4965_v48, %v872_v1  ;;  %v1470_v20 = vmul.f32 %v4973_v34, %v1338_v61 }
 0x1c4   :  { %v3602_v8 = vpop.eup %3601  ;;  %3623 = vpow2.f32 %v2942_v55  ;;  %v2879_v15 = vmul.f32 -1.442695, %v1747_v3  ;;  %v1643_v16 = vpop.xlane.xlu0 %1642  ;;  %v2880_v21 = vmul.f32 -1.442695, %v1748_v5  ;;  %1586 = vadd.xlane.f32.xlu0 %v1407_v9 }
 0x1c5   :  { %v3604_v12 = vpop.eup %3603  ;;  %v2243_v13 = vadd.f32 1.0, %v3602_v8  ;;  %v877_v17 = vpop.f32.mrb[112].mxu0  ;;  %v1812_v23 = vadd.f32 %v4952_v63, %v1643_v16  ;;  %v1471_v26 = vmul.f32 %v4973_v34, %v1339_v10  ;;  %v1276_v32 = vmax.f32 %v5168_v11, 0.0  ;;  %1712 = vadd.xlane.f32.xlu1 %v1470_v20 }
 0x1c6   :  { %v3606_v18 = vpop.eup %3605  ;;  %v2244_v19 = vadd.f32 1.0, %v3604_v12  ;;  %v1641_v22 = vpop.xlane.xlu1 %1640  ;;  %v878_v28 = vadd.f32 %v4965_v48, %v877_v17  ;;  %v5188_v48 = vld [vmem:[%s5709_s2] ss:$0 sm:$0xff] }
 0x1c7   :  { %v3288_v24 = vpop.f32.mrb[113].mxu0  ;;  %v3608_v25 = vpop.eup %3607  ;;  %2617 = vst.msk [vmem:[%s5712_s5 + $0x58] sm:$0xff] %vm2605_vm2, %v3606_v18  ;;  %3625 = vrcp.f32 %v2243_v13  ;;  %v1811_v27 = vadd.f32 %v4952_v63, %v1641_v22  ;;  %v2944_v33 = vmul.f32 -1.442695, %v1812_v23 }
 0x1c8   :  { %v1192_v29 = vpop.f32.mrb[112].mxu1  ;;  %v3610_v30 = vpop.eup %3609  ;;  %3627 = vrcp.f32 %v2244_v19  ;;  %v2307_v31 = vadd.f32 1.0, %v3608_v25  ;;  %v1277_v37 = vmax.f32 %v878_v28, 0.0  ;;  %1714 = vadd.xlane.f32.xlu0 %v1471_v26 }
 0x1c9   :  { %v3477_v35 = vpop.f32.mrb[113].mxu1  ;;  %v3612_v59 = vpop.eup %3611  ;;  %v2308_v36 = vadd.f32 1.0, %v3610_v30  ;;  %3629 = vpow2.f32 %v2879_v15  ;;  %v2943_v4 = vmul.f32 -1.442695, %v1811_v27  ;;  %v1193_v41 = vadd.f32 %v5188_v48, %v1192_v29 }
 0x1ca   :  { %v1197_v38 = vpop.f32.mrb[114].mxu1  ;;  %v1519_v39 = vpop.xlane.xlu0 %1518  ;;  %2618 = vst.msk [vmem:[%s5712_s5 + $0x60] sm:$0xff] %vm2605_vm2, %v3612_v59  ;;  %3631 = vrcp.f32 %v2307_v31  ;;  %v1409_v47 = vmul.f32 %v4973_v34, %v1277_v37  ;;  %v5207_v34 = vld [vmem:[%s5710_s3] ss:$0 sm:$0xff] }
 0x1cb   :  { %v3614_v40 = vpop.eup %3613  ;;  %v1198_v42 = vadd.f32 %v5188_v48, %v1197_v38  ;;  %v1517_v43 = vpop.xlane.xlu1 %1516  ;;  %v1750_v44 = vadd.f32 %v4952_v63, %v1519_v39  ;;  %3633 = vrcp.f32 %v2308_v36  ;;  %v1340_v55 = vmax.f32 %v1193_v41, 0.0 }
 0x1cc   :  { %v882_v45 = vpop.f32.mrb[114].mxu0  ;;  %v3616_v46 = vpop.eup %3615  ;;  %2681 = vst.msk [vmem:[%s5712_s5 + $0x258] sm:$0xff] %vm2605_vm2, %v3614_v40  ;;  %v1749_v49 = vadd.f32 %v4952_v63, %v1517_v43  ;;  %3635 = vpow2.f32 %v2880_v21  ;;  %v1408_v58 = vmul.f32 %v5207_v34, %v1276_v32  ;;  %1590 = vadd.xlane.f32.xlu0 %v1409_v47 }
 0x1cd   :  { %v883_v50 = vadd.f32 %v5188_v48, %v882_v45  ;;  %v3291_v51 = vpop.f32.mrb[115].mxu0  ;;  %v3480_v52 = vpop.f32.mrb[115].mxu1  ;;  %v2245_v54 = vadd.f32 1.0, %v3616_v46  ;;  %v1341_v56 = vmax.f32 %v1198_v42, 0.0  ;;  %3637 = vpow2.f32 %v2943_v4 }
 0x1ce   :  { %v3618_v53 = vpop.eup %3617  ;;  %v2881_v60 = vmul.f32 -1.442695, %v1749_v49  ;;  %v1647_v62 = vpop.xlane.xlu0 %1646  ;;  %v1472_v3 = vmul.f32 %v5207_v34, %v1340_v55  ;;  %v2882_v5 = vmul.f32 -1.442695, %v1750_v44  ;;  %1588 = vadd.xlane.f32.xlu1 %v1408_v58 }
 0x1cf   :  { %v3620_v57 = vpop.eup %3619  ;;  %2682 = vst.msk [vmem:[%s5712_s5 + $0x260] sm:$0xff] %vm2605_vm2, %v3618_v53  ;;  %v1278_v61 = vmax.f32 %v883_v50, 0.0  ;;  %v887_v0 = vpop.f32.mrb[116].mxu0  ;;  %3639 = vrcp.f32 %v2245_v54  ;;  %v1473_v10 = vmul.f32 %v5207_v34, %v1341_v56  ;;  %v1814_v14 = vadd.f32 %v4952_v63, %v1647_v62 }
 0x1d0   :  { %v3622_v1 = vpop.eup %3621  ;;  %v2246_v2 = vadd.f32 1.0, %v3620_v57  ;;  %v1645_v6 = vpop.xlane.xlu1 %1644  ;;  %3641 = vpow2.f32 %v2944_v33  ;;  %v888_v15 = vadd.f32 %v5188_v48, %v887_v0 }
 0x1d1   :  { %v3294_v7 = vpop.f32.mrb[117].mxu0  ;;  %v3624_v8 = vpop.eup %3623  ;;  %v2309_v9 = vadd.f32 1.0, %v3622_v1  ;;  %v1813_v11 = vadd.f32 %v4952_v63, %v1645_v6  ;;  %v1410_v18 = vmul.f32 %v5207_v34, %v1278_v61  ;;  %v2946_v24 = vmul.f32 -1.442695, %v1814_v14  ;;  %1718 = vadd.xlane.f32.xlu0 %v1473_v10 }
 0x1d2   :  { %v1202_v12 = vpop.f32.mrb[116].mxu1  ;;  %3643 = vrcp.f32 %v2246_v2  ;;  %v2310_v13 = vadd.f32 1.0, %v3624_v8  ;;  %v3626_v17 = vpop.eup %3625  ;;  %v1279_v25 = vmax.f32 %v888_v15, 0.0  ;;  %1716 = vadd.xlane.f32.xlu1 %v1472_v3 }
 0x1d3   :  { %v3483_v16 = vpop.f32.mrb[117].mxu1  ;;  %3645 = vrcp.f32 %v2309_v9  ;;  %v2945_v19 = vmul.f32 -1.442695, %v1813_v11  ;;  %v1203_v20 = vadd.f32 %v5188_v48, %v1202_v12  ;;  %v1523_v22 = vpop.xlane.xlu0 %1522  ;;  %2619 = vst.msk [vmem:[%s5712_s5 + $0x68] sm:$0xff] %vm2605_vm2, %v3626_v17 }
 0x1d4   :  { %v1207_v21 = vpop.f32.mrb[118].mxu1  ;;  %v3628_v23 = vpop.eup %3627  ;;  %3647 = vrcp.f32 %v2310_v13  ;;  %v1752_v32 = vadd.f32 %v4952_v63, %v1523_v22  ;;  %v1411_v4 = vmul.f32 %v5207_v34, %v1279_v25 }
 0x1d5   :  { %v1208_v26 = vadd.f32 %v5188_v48, %v1207_v21  ;;  %v1521_v27 = vpop.xlane.xlu1 %1520  ;;  %v892_v28 = vpop.f32.mrb[118].mxu0  ;;  %2620 = vst.msk [vmem:[%s5712_s5 + $0x70] sm:$0xff] %vm2605_vm2, %v3628_v23  ;;  %3649 = vpow2.f32 %v2881_v60  ;;  %v1342_v30 = vmax.f32 %v1203_v20, 0.0 }
 0x1d6   :  { %v3630_v29 = vpop.eup %3629  ;;  %v1751_v31 = vadd.f32 %v4952_v63, %v1521_v27  ;;  %v3297_v33 = vpop.f32.mrb[119].mxu0  ;;  %3651 = vpow2.f32 %v2882_v5  ;;  %v2884_v41 = vmul.f32 -1.442695, %v1752_v32  ;;  %v893_v46 = vadd.f32 %v5188_v48, %v892_v28  ;;  %1592 = vadd.xlane.f32.xlu1 %v1410_v18  ;;  %1594 = vadd.xlane.f32.xlu0 %v1411_v4 }
 0x1d7   :  { %v3486_v35 = vpop.f32.mrb[119].mxu1  ;;  %v3632_v59 = vpop.eup %3631  ;;  %v2247_v36 = vadd.f32 1.0, %v3630_v29  ;;  %v1343_v37 = vmax.f32 %v1208_v26, 0.0  ;;  %3653 = vpow2.f32 %v2945_v19  ;;  %v1474_v39 = vmul.f32 %v5207_v34, %v1342_v30 }
 0x1d8   :  { %v3634_v38 = vpop.eup %3633  ;;  %2683 = vst.msk [vmem:[%s5712_s5 + $0x268] sm:$0xff] %vm2605_vm2, %v3632_v59  ;;  %v2883_v40 = vmul.f32 -1.442695, %v1751_v31  ;;  %v1651_v42 = vpop.xlane.xlu0 %1650  ;;  %v1280_v58 = vmax.f32 %v893_v46, 0.0 }
 0x1d9   :  { %v897_v43 = vpop.f32.mrb[120].mxu0  ;;  %v3636_v44 = vpop.eup %3635  ;;  %2684 = vst.msk [vmem:[%s5712_s5 + $0x270] sm:$0xff] %vm2605_vm2, %v3634_v38  ;;  %3655 = vrcp.f32 %v2247_v36  ;;  %v1475_v45 = vmul.f32 %v5207_v34, %v1343_v37  ;;  %v1816_v49 = vadd.f32 %v4952_v63, %v1651_v42 }
 0x1da   :  { %v1649_v47 = vpop.xlane.xlu1 %1648  ;;  %v3300_v50 = vpop.f32.mrb[121].mxu0  ;;  %v2248_v52 = vadd.f32 1.0, %v3636_v44  ;;  %3657 = vpow2.f32 %v2946_v24  ;;  %v898_v54 = vadd.f32 %v5188_v48, %v897_v43  ;;  %1720 = vadd.xlane.f32.xlu1 %v1474_v39  ;;  %v1412_v17 = vmul.f32 %v5207_v34, %v1280_v58 }
 0x1db   :  { %v3638_v51 = vpop.eup %3637  ;;  %v1815_v53 = vadd.f32 %v4952_v63, %v1649_v47  ;;  %v1212_v55 = vpop.f32.mrb[120].mxu1  ;;  %3659 = vpow2.f32 %v2883_v40  ;;  %v2948_v7 = vmul.f32 -1.442695, %v1816_v49  ;;  %1722 = vadd.xlane.f32.xlu0 %v1475_v45 }
 0x1dc   :  { %v3640_v56 = vpop.eup %3639  ;;  %v2311_v57 = vadd.f32 1.0, %v3638_v51  ;;  %v3489_v60 = vpop.f32.mrb[121].mxu1  ;;  %3661 = vrcp.f32 %v2248_v52  ;;  %v1281_v0 = vmax.f32 %v898_v54, 0.0  ;;  %v1213_v3 = vadd.f32 %v5188_v48, %v1212_v55 }
 0x1dd   :  { %v3642_v61 = vpop.eup %3641  ;;  %2621 = vst.msk [vmem:[%s5712_s5 + $0x78] sm:$0xff] %vm2605_vm2, %v3640_v56  ;;  %v2947_v62 = vmul.f32 -1.442695, %v1815_v53  ;;  %v1527_v1 = vpop.xlane.xlu0 %1526 }
 0x1de   :  { %v902_v2 = vpop.f32.mrb[122].mxu0  ;;  %v3644_v5 = vpop.eup %3643  ;;  %3663 = vrcp.f32 %v2311_v57  ;;  %v2312_v6 = vadd.f32 1.0, %v3642_v61  ;;  %v1754_v9 = vadd.f32 %v4952_v63, %v1527_v1  ;;  %v1413_v12 = vmul.f32 %v5207_v34, %v1281_v0  ;;  %1596 = vadd.xlane.f32.xlu1 %v1412_v17 }
 0x1df   :  { %v1525_v8 = vpop.xlane.xlu1 %1524  ;;  %v3303_v10 = vpop.f32.mrb[123].mxu0  ;;  %2622 = vst.msk [vmem:[%s5712_s5 + $0x80] sm:$0xff] %vm2605_vm2, %v3644_v5  ;;  %3665 = vpow2.f32 %v2884_v41  ;;  %v903_v14 = vadd.f32 %v5188_v48, %v902_v2  ;;  %v1344_v23 = vmax.f32 %v1213_v3, 0.0 }
 0x1e0   :  { %v3646_v11 = vpop.eup %3645  ;;  %v1753_v13 = vadd.f32 %v4952_v63, %v1525_v8  ;;  %v1217_v15 = vpop.f32.mrb[122].mxu1  ;;  %3667 = vrcp.f32 %v2312_v6  ;;  %v2886_v18 = vmul.f32 -1.442695, %v1754_v9  ;;  %1598 = vadd.xlane.f32.xlu0 %v1413_v12 }
 0x1e1   :  { %v3648_v16 = vpop.eup %3647  ;;  %2685 = vst.msk [vmem:[%s5712_s5 + $0x278] sm:$0xff] %vm2605_vm2, %v3646_v11  ;;  %v3492_v19 = vpop.f32.mrb[123].mxu1  ;;  %3669 = vpow2.f32 %v2947_v62  ;;  %v1282_v22 = vmax.f32 %v903_v14, 0.0  ;;  %v1218_v31 = vadd.f32 %v5188_v48, %v1217_v15  ;;  %v1476_v39 = vmul.f32 %v5207_v34, %v1344_v23 }
 0x1e2   :  { %v3650_v20 = vpop.eup %3649  ;;  %2686 = vst.msk [vmem:[%s5712_s5 + $0x280] sm:$0xff] %vm2605_vm2, %v3648_v16  ;;  %v2885_v21 = vmul.f32 -1.442695, %v1753_v13  ;;  %v1655_v24 = vpop.xlane.xlu0 %1654  ;;  %3671 = vpow2.f32 %v2948_v7 }
 0x1e3   :  { %v907_v25 = vpop.f32.mrb[124].mxu0  ;;  %v3652_v26 = vpop.eup %3651  ;;  %v2249_v27 = vadd.f32 1.0, %v3650_v20  ;;  %v1818_v29 = vadd.f32 %v4952_v63, %v1655_v24  ;;  %v1414_v35 = vmul.f32 %v5207_v34, %v1282_v22  ;;  %v1345_v45 = vmax.f32 %v1218_v31, 0.0 }
 0x1e4   :  { %v1653_v28 = vpop.xlane.xlu1 %1652  ;;  %v3306_v30 = vpop.f32.mrb[125].mxu0  ;;  %v2250_v33 = vadd.f32 1.0, %v3652_v26  ;;  %3673 = vpow2.f32 %v2885_v21  ;;  %v908_v37 = vadd.f32 %v5188_v48, %v907_v25 }
 0x1e5   :  { %v3654_v32 = vpop.eup %3653  ;;  %v1817_v59 = vadd.f32 %v4952_v63, %v1653_v28  ;;  %3675 = vrcp.f32 %v2249_v27  ;;  %v2950_v48 = vmul.f32 -1.442695, %v1818_v29  ;;  %1600 = vadd.xlane.f32.xlu1 %v1414_v35  ;;  %v1477_v60 = vmul.f32 %v5207_v34, %v1345_v45 }
 0x1e6   :  { %v3656_v36 = vpop.eup %3655  ;;  %v2313_v4 = vadd.f32 1.0, %v3654_v32  ;;  %3677 = vrcp.f32 %v2250_v33  ;;  %v1531_v41 = vpop.xlane.xlu0 %1530  ;;  %v1283_v44 = vmax.f32 %v908_v37, 0.0 }
 0x1e7   :  { %v3658_v38 = vpop.eup %3657  ;;  %2623 = vst.msk [vmem:[%s5712_s5 + $0x88] sm:$0xff] %vm2605_vm2, %v3656_v36  ;;  %v2949_v40 = vmul.f32 -1.442695, %v1817_v59  ;;  %v1756_v55 = vadd.f32 %v4952_v63, %v1531_v41 }
 0x1e8   :  { %v3660_v42 = vpop.eup %3659  ;;  %3679 = vrcp.f32 %v2313_v4  ;;  %v2314_v43 = vadd.f32 1.0, %v3658_v38  ;;  %v1529_v46 = vpop.xlane.xlu1 %1528  ;;  %v1415_v52 = vmul.f32 %v5207_v34, %v1283_v44 }
 0x1e9   :  { %v3662_v47 = vpop.eup %3661  ;;  %v2251_v49 = vadd.f32 1.0, %v3660_v42  ;;  %3681 = vpow2.f32 %v2886_v18  ;;  %v1755_v50 = vadd.f32 %v4952_v63, %v1529_v46  ;;  %1724 = vadd.xlane.f32.xlu1 %v1476_v39  ;;  %v2888_v34 = vmul.f32 -1.442695, %v1756_v55 }
 0x1ea   :  { %v3664_v51 = vpop.eup %3663  ;;  %2624 = vst.msk [vmem:[%s5712_s5 + $0x90] sm:$0xff] %vm2605_vm2, %v3662_v47  ;;  %3683 = vrcp.f32 %v2314_v43  ;;  %v1659_v56 = vpop.xlane.xlu0 %1658  ;;  %1602 = vadd.xlane.f32.xlu0 %v1415_v52 }
 0x1eb   :  { %v3666_v53 = vpop.eup %3665  ;;  %2687 = vst.msk [vmem:[%s5712_s5 + $0x288] sm:$0xff] %vm2605_vm2, %v3664_v51  ;;  %3685 = vrcp.f32 %v2251_v49  ;;  %v2887_v54 = vmul.f32 -1.442695, %v1755_v50  ;;  %v1820_v1 = vadd.f32 %v4952_v63, %v1659_v56 }
 0x1ec   :  { %v3668_v57 = vpop.eup %3667  ;;  %v2252_v58 = vadd.f32 1.0, %v3666_v53  ;;  %3687 = vpow2.f32 %v2949_v40  ;;  %v1657_v61 = vpop.xlane.xlu1 %1656 }
 0x1ed   :  { %v3670_v62 = vpop.eup %3669  ;;  %2688 = vst.msk [vmem:[%s5712_s5 + $0x290] sm:$0xff] %vm2605_vm2, %v3668_v57  ;;  %3689 = vpow2.f32 %v2950_v48  ;;  %v1819_v0 = vadd.f32 %v4952_v63, %v1657_v61  ;;  %v2952_v14 = vmul.f32 -1.442695, %v1820_v1 }
 0x1ee   :  { %v3672_v2 = vpop.eup %3671  ;;  %3691 = vrcp.f32 %v2252_v58  ;;  %v2315_v3 = vadd.f32 1.0, %v3670_v62  ;;  %v1535_v7 = vpop.xlane.xlu0 %1534  ;;  %1726 = vadd.xlane.f32.xlu0 %v1477_v60 }
 0x1ef   :  { %v3674_v5 = vpop.eup %3673  ;;  %v2316_v6 = vadd.f32 1.0, %v3672_v2  ;;  %3693 = vpow2.f32 %v2887_v54  ;;  %v2951_v10 = vmul.f32 -1.442695, %v1819_v0  ;;  %v1758_v12 = vadd.f32 %v4952_v63, %v1535_v7 }
 0x1f0   :  { %v3676_v8 = vpop.eup %3675  ;;  %3695 = vrcp.f32 %v2315_v3  ;;  %v2253_v9 = vadd.f32 1.0, %v3674_v5  ;;  %v1533_v11 = vpop.xlane.xlu1 %1532 }
 0x1f1   :  { %v3678_v13 = vpop.eup %3677  ;;  %2625 = vst.msk [vmem:[%s5712_s5 + $0x98] sm:$0xff] %vm2605_vm2, %v3676_v8  ;;  %3697 = vrcp.f32 %v2316_v6  ;;  %v1757_v15 = vadd.f32 %v4952_v63, %v1533_v11  ;;  %v2890_v22 = vmul.f32 -1.442695, %v1758_v12 }
 0x1f2   :  { %v3680_v16 = vpop.eup %3679  ;;  %2626 = vst.msk [vmem:[%s5712_s5 + $0xa0] sm:$0xff] %vm2605_vm2, %v3678_v13  ;;  %3699 = vrcp.f32 %v2253_v9  ;;  %v1663_v19 = vpop.xlane.xlu0 %1662 }
 0x1f3   :  { %v3682_v17 = vpop.eup %3681  ;;  %2689 = vst.msk [vmem:[%s5712_s5 + $0x298] sm:$0xff] %vm2605_vm2, %v3680_v16  ;;  %3701 = vpow2.f32 %v2888_v34  ;;  %v2889_v18 = vmul.f32 -1.442695, %v1757_v15  ;;  %v1822_v26 = vadd.f32 %v4952_v63, %v1663_v19 }
 0x1f4   :  { %v3684_v20 = vpop.eup %3683  ;;  %v2254_v21 = vadd.f32 1.0, %v3682_v17  ;;  %3703 = vpow2.f32 %v2951_v10  ;;  %v1661_v23 = vpop.xlane.xlu1 %1660 }
 0x1f5   :  { %v3686_v24 = vpop.eup %3685  ;;  %2690 = vst.msk [vmem:[%s5712_s5 + $0x2a0] sm:$0xff] %vm2605_vm2, %v3684_v20  ;;  %3705 = vpow2.f32 %v2952_v14  ;;  %v1821_v25 = vadd.f32 %v4952_v63, %v1661_v23  ;;  %v2954_v4 = vmul.f32 -1.442695, %v1822_v26 }
 0x1f6   :  { %v3688_v27 = vpop.eup %3687  ;;  %2627 = vst.msk [vmem:[%s5712_s5 + $0xa8] sm:$0xff] %vm2605_vm2, %v3686_v24  ;;  %3707 = vrcp.f32 %v2254_v21  ;;  %v1539_v31 = vpop.xlane.xlu0 %1538 }
 0x1f7   :  { %v3690_v28 = vpop.eup %3689  ;;  %v2317_v29 = vadd.f32 1.0, %v3688_v27  ;;  %3709 = vpow2.f32 %v2889_v18  ;;  %v2953_v30 = vmul.f32 -1.442695, %v1821_v25  ;;  %v1760_v59 = vadd.f32 %v4952_v63, %v1539_v31 }
 0x1f8   :  { %v3692_v32 = vpop.eup %3691  ;;  %v2318_v33 = vadd.f32 1.0, %v3690_v28  ;;  %3711 = vpow2.f32 %v2890_v22  ;;  %v1537_v35 = vpop.xlane.xlu1 %1536 }
 0x1f9   :  { %v3694_v36 = vpop.eup %3693  ;;  %2628 = vst.msk [vmem:[%s5712_s5 + $0xb0] sm:$0xff] %vm2605_vm2, %v3692_v32  ;;  %3713 = vrcp.f32 %v2317_v29  ;;  %v1759_v37 = vadd.f32 %v4952_v63, %v1537_v35  ;;  %v2892_v42 = vmul.f32 -1.442695, %v1760_v59 }
 0x1fa   :  { %v3696_v38 = vpop.eup %3695  ;;  %3715 = vrcp.f32 %v2318_v33  ;;  %v2255_v39 = vadd.f32 1.0, %v3694_v36  ;;  %v1667_v43 = vpop.xlane.xlu0 %1666 }
 0x1fb   :  { %v3698_v40 = vpop.eup %3697  ;;  %2691 = vst.msk [vmem:[%s5712_s5 + $0x2a8] sm:$0xff] %vm2605_vm2, %v3696_v38  ;;  %3717 = vpow2.f32 %v2953_v30  ;;  %v2891_v41 = vmul.f32 -1.442695, %v1759_v37  ;;  %v1824_v50 = vadd.f32 %v4952_v63, %v1667_v43 }
 0x1fc   :  { %v3700_v44 = vpop.eup %3699  ;;  %2692 = vst.msk [vmem:[%s5712_s5 + $0x2b0] sm:$0xff] %vm2605_vm2, %v3698_v40  ;;  %3719 = vrcp.f32 %v2255_v39  ;;  %v1665_v45 = vpop.xlane.xlu1 %1664 }
 0x1fd   :  { %v3702_v46 = vpop.eup %3701  ;;  %2629 = vst.msk [vmem:[%s5712_s5 + $0xb8] sm:$0xff] %vm2605_vm2, %v3700_v44  ;;  %3721 = vpow2.f32 %v2954_v4  ;;  %v1823_v47 = vadd.f32 %v4952_v63, %v1665_v45  ;;  %v2956_v1 = vmul.f32 -1.442695, %v1824_v50 }
 0x1fe   :  { %v3704_v49 = vpop.eup %3703  ;;  %v2256_v48 = vadd.f32 1.0, %v3702_v46  ;;  %3723 = vpow2.f32 %v2891_v41  ;;  %v1543_v54 = vpop.xlane.xlu0 %1542 }
 0x1ff   :  { %v3706_v51 = vpop.eup %3705  ;;  %v2319_v52 = vadd.f32 1.0, %v3704_v49  ;;  %3725 = vpow2.f32 %v2892_v42  ;;  %v2955_v53 = vmul.f32 -1.442695, %v1823_v47  ;;  %v1762_v61 = vadd.f32 %v4952_v63, %v1543_v54 }
 0x200   :  { %v3708_v55 = vpop.eup %3707  ;;  %3727 = vrcp.f32 %v2256_v48  ;;  %v2320_v56 = vadd.f32 1.0, %v3706_v51  ;;  %v1541_v57 = vpop.xlane.xlu1 %1540 }
 0x201   :  { %v3710_v58 = vpop.eup %3709  ;;  %2630 = vst.msk [vmem:[%s5712_s5 + $0xc0] sm:$0xff] %vm2605_vm2, %v3708_v55  ;;  %3729 = vrcp.f32 %v2319_v52  ;;  %v1761_v60 = vadd.f32 %v4952_v63, %v1541_v57  ;;  %v2894_v9 = vmul.f32 -1.442695, %v1762_v61 }
 0x202   :  { %v3712_v62 = vpop.eup %3711  ;;  %3731 = vrcp.f32 %v2320_v56  ;;  %v2257_v0 = vadd.f32 1.0, %v3710_v58  ;;  %v1671_v6 = vpop.xlane.xlu0 %1670 }
 0x203   :  { %v3714_v2 = vpop.eup %3713  ;;  %v2258_v3 = vadd.f32 1.0, %v3712_v62  ;;  %3733 = vpow2.f32 %v2955_v53  ;;  %v2893_v5 = vmul.f32 -1.442695, %v1761_v60  ;;  %v1826_v13 = vadd.f32 %v4952_v63, %v1671_v6 }
 0x204   :  { %v3716_v34 = vpop.eup %3715  ;;  %2693 = vst.msk [vmem:[%s5712_s5 + $0x2b8] sm:$0xff] %vm2605_vm2, %v3714_v2  ;;  %3735 = vrcp.f32 %v2257_v0  ;;  %v1669_v7 = vpop.xlane.xlu1 %1668 }
 0x205   :  { %v3718_v8 = vpop.eup %3717  ;;  %2694 = vst.msk [vmem:[%s5712_s5 + $0x2c0] sm:$0xff] %vm2605_vm2, %v3716_v34  ;;  %3737 = vrcp.f32 %v2258_v3  ;;  %v1825_v10 = vadd.f32 %v4952_v63, %v1669_v7  ;;  %v2958_v26 = vmul.f32 -1.442695, %v1826_v13 }
 0x206   :  { %v3720_v11 = vpop.eup %3719  ;;  %v2321_v12 = vadd.f32 1.0, %v3718_v8  ;;  %3739 = vpow2.f32 %v2956_v1  ;;  %v1547_v15 = vpop.xlane.xlu0 %1546 }
 0x207   :  { %v3722_v14 = vpop.eup %3721  ;;  %2631 = vst.msk [vmem:[%s5712_s5 + $0xc8] sm:$0xff] %vm2605_vm2, %v3720_v11  ;;  %3741 = vpow2.f32 %v2893_v5  ;;  %v2957_v18 = vmul.f32 -1.442695, %v1825_v10  ;;  %v1764_v23 = vadd.f32 %v4952_v63, %v1547_v15 }
 0x208   :  { %v3724_v16 = vpop.eup %3723  ;;  %3743 = vrcp.f32 %v2321_v12  ;;  %v2322_v17 = vadd.f32 1.0, %v3722_v14  ;;  %v1545_v19 = vpop.xlane.xlu1 %1544 }
 0x209   :  { %v3726_v20 = vpop.eup %3725  ;;  %v2259_v21 = vadd.f32 1.0, %v3724_v16  ;;  %3745 = vpow2.f32 %v2894_v9  ;;  %v1763_v22 = vadd.f32 %v4952_v63, %v1545_v19  ;;  %v2896_v33 = vmul.f32 -1.442695, %v1764_v23 }
 0x20a   :  { %v3728_v24 = vpop.eup %3727  ;;  %3747 = vrcp.f32 %v2322_v17  ;;  %v2260_v25 = vadd.f32 1.0, %v3726_v20  ;;  %v1675_v29 = vpop.xlane.xlu0 %1674 }
 0x20b   :  { %v3730_v27 = vpop.eup %3729  ;;  %2632 = vst.msk [vmem:[%s5712_s5 + $0xd0] sm:$0xff] %vm2605_vm2, %v3728_v24  ;;  %3749 = vrcp.f32 %v2259_v21  ;;  %v2895_v28 = vmul.f32 -1.442695, %v1763_v22  ;;  %v1828_v59 = vadd.f32 %v4952_v63, %v1675_v29 }
 0x20c   :  { %v3732_v30 = vpop.eup %3731  ;;  %2695 = vst.msk [vmem:[%s5712_s5 + $0x2c8] sm:$0xff] %vm2605_vm2, %v3730_v27  ;;  %3751 = vrcp.f32 %v2260_v25  ;;  %v1673_v31 = vpop.xlane.xlu1 %1672 }
 0x20d   :  { %v3734_v32 = vpop.eup %3733  ;;  %2696 = vst.msk [vmem:[%s5712_s5 + $0x2d0] sm:$0xff] %vm2605_vm2, %v3732_v30  ;;  %3753 = vpow2.f32 %v2957_v18  ;;  %v1827_v35 = vadd.f32 %v4952_v63, %v1673_v31  ;;  %v2960_v45 = vmul.f32 -1.442695, %v1828_v59 }
 0x20e   :  { %v3736_v36 = vpop.eup %3735  ;;  %v2323_v4 = vadd.f32 1.0, %v3734_v32  ;;  %3755 = vpow2.f32 %v2958_v26  ;;  %v1551_v39 = vpop.xlane.xlu0 %1550 }
 0x20f   :  { %v3738_v37 = vpop.eup %3737  ;;  %2633 = vst.msk [vmem:[%s5712_s5 + $0xd8] sm:$0xff] %vm2605_vm2, %v3736_v36  ;;  %3757 = vpow2.f32 %v2895_v28  ;;  %v2959_v38 = vmul.f32 -1.442695, %v1827_v35  ;;  %v1766_v42 = vadd.f32 %v4952_v63, %v1551_v39 }
 0x210   :  { %v3740_v40 = vpop.eup %3739  ;;  %2634 = vst.msk [vmem:[%s5712_s5 + $0xe0] sm:$0xff] %vm2605_vm2, %v3738_v37  ;;  %3759 = vrcp.f32 %v2323_v4  ;;  %v1549_v41 = vpop.xlane.xlu1 %1548 }
 0x211   :  { %v3742_v43 = vpop.eup %3741  ;;  %v2324_v44 = vadd.f32 1.0, %v3740_v40  ;;  %3761 = vpow2.f32 %v2896_v33  ;;  %v1765_v46 = vadd.f32 %v4952_v63, %v1549_v41  ;;  %v2898_v54 = vmul.f32 -1.442695, %v1766_v42 }
 0x212   :  { %v3744_v47 = vpop.eup %3743  ;;  %v2261_v49 = vadd.f32 1.0, %v3742_v43  ;;  %3763 = vpow2.f32 %v2959_v38  ;;  %v1679_v51 = vpop.xlane.xlu0 %1678 }
 0x213   :  { %v3746_v48 = vpop.eup %3745  ;;  %2697 = vst.msk [vmem:[%s5712_s5 + $0x2d8] sm:$0xff] %vm2605_vm2, %v3744_v47  ;;  %3765 = vrcp.f32 %v2324_v44  ;;  %v2897_v50 = vmul.f32 -1.442695, %v1765_v46  ;;  %v1830_v56 = vadd.f32 %v4952_v63, %v1679_v51 }
 0x214   :  { %v3748_v52 = vpop.eup %3747  ;;  %3767 = vrcp.f32 %v2261_v49  ;;  %v2262_v53 = vadd.f32 1.0, %v3746_v48  ;;  %v1677_v55 = vpop.xlane.xlu1 %1676 }
 0x215   :  { %v3750_v57 = vpop.eup %3749  ;;  %2698 = vst.msk [vmem:[%s5712_s5 + $0x2e0] sm:$0xff] %vm2605_vm2, %v3748_v52  ;;  %3769 = vpow2.f32 %v2960_v45  ;;  %v1829_v58 = vadd.f32 %v4952_v63, %v1677_v55  ;;  %v2962_v3 = vmul.f32 -1.442695, %v1830_v56 }
 0x216   :  { %v3752_v60 = vpop.eup %3751  ;;  %2635 = vst.msk [vmem:[%s5712_s5 + $0xe8] sm:$0xff] %vm2605_vm2, %v3750_v57  ;;  %3771 = vrcp.f32 %v2262_v53  ;;  %v1555_v0 = vpop.xlane.xlu0 %1554 }
 0x217   :  { %v3754_v61 = vpop.eup %3753  ;;  %2636 = vst.msk [vmem:[%s5712_s5 + $0xf0] sm:$0xff] %vm2605_vm2, %v3752_v60  ;;  %3773 = vpow2.f32 %v2897_v50  ;;  %v2961_v62 = vmul.f32 -1.442695, %v1829_v58  ;;  %v1768_v8 = vadd.f32 %v4952_v63, %v1555_v0 }
 0x218   :  { %v3756_v1 = vpop.eup %3755  ;;  %v2325_v2 = vadd.f32 1.0, %v3754_v61  ;;  %3775 = vpow2.f32 %v2898_v54  ;;  %v1553_v5 = vpop.xlane.xlu1 %1552 }
 0x219   :  { %v3758_v6 = vpop.eup %3757  ;;  %v2326_v34 = vadd.f32 1.0, %v3756_v1  ;;  %3777 = vpow2.f32 %v2961_v62  ;;  %v1767_v7 = vadd.f32 %v4952_v63, %v1553_v5  ;;  %v2900_v19 = vmul.f32 -1.442695, %v1768_v8 }
 0x21a   :  { %v3760_v9 = vpop.eup %3759  ;;  %3779 = vrcp.f32 %v2325_v2  ;;  %v2263_v10 = vadd.f32 1.0, %v3758_v6  ;;  %v1683_v12 = vpop.xlane.xlu0 %1682 }
 0x21b   :  { %v3762_v11 = vpop.eup %3761  ;;  %2699 = vst.msk [vmem:[%s5712_s5 + $0x2e8] sm:$0xff] %vm2605_vm2, %v3760_v9  ;;  %3781 = vrcp.f32 %v2326_v34  ;;  %v2899_v15 = vmul.f32 -1.442695, %v1767_v7  ;;  %v1832_v24 = vadd.f32 %v4952_v63, %v1683_v12 }
 0x21c   :  { %v3764_v13 = vpop.eup %3763  ;;  %3783 = vrcp.f32 %v2263_v10  ;;  %v2264_v14 = vadd.f32 1.0, %v3762_v11  ;;  %v1681_v16 = vpop.xlane.xlu1 %1680 }
 0x21d   :  { %v3766_v17 = vpop.eup %3765  ;;  %v2327_v18 = vadd.f32 1.0, %v3764_v13  ;;  %3785 = vpow2.f32 %v2962_v3  ;;  %v1831_v20 = vadd.f32 %v4952_v63, %v1681_v16  ;;  %v2964_v36 = vmul.f32 -1.442695, %v1832_v24 }
 0x21e   :  { %v3768_v21 = vpop.eup %3767  ;;  %2700 = vst.msk [vmem:[%s5712_s5 + $0x2f0] sm:$0xff] %vm2605_vm2, %v3766_v17  ;;  %3787 = vrcp.f32 %v2264_v14  ;;  %v1559_v30 = vpop.xlane.xlu0 %1558 }
 0x21f   :  { %v3770_v22 = vpop.eup %3769  ;;  %2637 = vst.msk [vmem:[%s5712_s5 + $0xf8] sm:$0xff] %vm2605_vm2, %v3768_v21  ;;  %3789 = vrcp.f32 %v2327_v18  ;;  %v2963_v23 = vmul.f32 -1.442695, %v1831_v20  ;;  %v1770_v33 = vadd.f32 %v4952_v63, %v1559_v30 }
 0x220   :  { %v3772_v25 = vpop.eup %3771  ;;  %v2328_v26 = vadd.f32 1.0, %v3770_v22  ;;  %3791 = vpow2.f32 %v2899_v15  ;;  %v1557_v27 = vpop.xlane.xlu1 %1556 }
 0x221   :  { %v3774_v28 = vpop.eup %3773  ;;  %2638 = vst.msk [vmem:[%s5712_s5 + $0x100] sm:$0xff] %vm2605_vm2, %v3772_v25  ;;  %3793 = vpow2.f32 %v2900_v19  ;;  %v1769_v29 = vadd.f32 %v4952_v63, %v1557_v27  ;;  %v2902_v41 = vmul.f32 -1.442695, %v1770_v33 }
 0x222   :  { %v3776_v31 = vpop.eup %3775  ;;  %3795 = vrcp.f32 %v2328_v26  ;;  %v2265_v32 = vadd.f32 1.0, %v3774_v28  ;;  %v1687_v43 = vpop.xlane.xlu0 %1686 }
 0x223   :  { %v3778_v35 = vpop.eup %3777  ;;  %v2266_v59 = vadd.f32 1.0, %v3776_v31  ;;  %3797 = vpow2.f32 %v2963_v23  ;;  %v2901_v38 = vmul.f32 -1.442695, %v1769_v29  ;;  %v1834_v45 = vadd.f32 %v4952_v63, %v1687_v43 }
 0x224   :  { %v3780_v4 = vpop.eup %3779  ;;  %3799 = vrcp.f32 %v2265_v32  ;;  %v2329_v37 = vadd.f32 1.0, %v3778_v35  ;;  %v1685_v39 = vpop.xlane.xlu1 %1684 }
 0x225   :  { %v3782_v40 = vpop.eup %3781  ;;  %2701 = vst.msk [vmem:[%s5712_s5 + $0x2f8] sm:$0xff] %vm2605_vm2, %v3780_v4  ;;  %3801 = vrcp.f32 %v2266_v59  ;;  %v1833_v42 = vadd.f32 %v4952_v63, %v1685_v39  ;;  %v2966_v50 = vmul.f32 -1.442695, %v1834_v45 }
 0x226   :  { %v3784_v44 = vpop.eup %3783  ;;  %2702 = vst.msk [vmem:[%s5712_s5 + $0x300] sm:$0xff] %vm2605_vm2, %v3782_v40  ;;  %3803 = vrcp.f32 %v2329_v37  ;;  %v1563_v54 = vpop.xlane.xlu0 %1562 }
 0x227   :  { %v3786_v46 = vpop.eup %3785  ;;  %2639 = vst.msk [vmem:[%s5712_s5 + $0x108] sm:$0xff] %vm2605_vm2, %v3784_v44  ;;  %3805 = vpow2.f32 %v2964_v36  ;;  %v2965_v47 = vmul.f32 -1.442695, %v1833_v42  ;;  %v1772_v56 = vadd.f32 %v4952_v63, %v1563_v54 }
 0x228   :  { %v3788_v49 = vpop.eup %3787  ;;  %v2330_v48 = vadd.f32 1.0, %v3786_v46  ;;  %3807 = vpow2.f32 %v2901_v38  ;;  %v1561_v51 = vpop.xlane.xlu1 %1560 }
 0x229   :  { %v3790_v52 = vpop.eup %3789  ;;  %2640 = vst.msk [vmem:[%s5712_s5 + $0x110] sm:$0xff] %vm2605_vm2, %v3788_v49  ;;  %3809 = vpow2.f32 %v2902_v41  ;;  %v1771_v53 = vadd.f32 %v4952_v63, %v1561_v51  ;;  %v2904_v2 = vmul.f32 -1.442695, %v1772_v56 }
 0x22a   :  { %v3792_v55 = vpop.eup %3791  ;;  %2703 = vst.msk [vmem:[%s5712_s5 + $0x308] sm:$0xff] %vm2605_vm2, %v3790_v52  ;;  %3811 = vrcp.f32 %v2330_v48  ;;  %v1691_v5 = vpop.xlane.xlu0 %1690 }
 0x22b   :  { %v3794_v57 = vpop.eup %3793  ;;  %v2267_v58 = vadd.f32 1.0, %v3792_v55  ;;  %3813 = vpow2.f32 %v2965_v47  ;;  %v2903_v60 = vmul.f32 -1.442695, %v1771_v53  ;;  %v1836_v7 = vadd.f32 %v4952_v63, %v1691_v5 }
 0x22c   :  { %v3796_v61 = vpop.eup %3795  ;;  %v2268_v62 = vadd.f32 1.0, %v3794_v57  ;;  %3815 = vpow2.f32 %v2966_v50  ;;  %v1689_v0 = vpop.xlane.xlu1 %1688 }
 0x22d   :  { %v3798_v1 = vpop.eup %3797  ;;  %2704 = vst.msk [vmem:[%s5712_s5 + $0x310] sm:$0xff] %vm2605_vm2, %v3796_v61  ;;  %3817 = vrcp.f32 %v2267_v58  ;;  %v1835_v3 = vadd.f32 %v4952_v63, %v1689_v0  ;;  %v2968_v11 = vmul.f32 -1.442695, %v1836_v7 }
 0x22e   :  { %v3800_v6 = vpop.eup %3799  ;;  %3819 = vrcp.f32 %v2268_v62  ;;  %v2331_v34 = vadd.f32 1.0, %v3798_v1  ;;  %v1567_v15 = vpop.xlane.xlu0 %1566 }
 0x22f   :  { %v3802_v8 = vpop.eup %3801  ;;  %2641 = vst.msk [vmem:[%s5712_s5 + $0x118] sm:$0xff] %vm2605_vm2, %v3800_v6  ;;  %3821 = vpow2.f32 %v2903_v60  ;;  %v2967_v9 = vmul.f32 -1.442695, %v1835_v3  ;;  %v1774_v18 = vadd.f32 %v4952_v63, %v1567_v15 }
 0x230   :  { %v3804_v10 = vpop.eup %3803  ;;  %2642 = vst.msk [vmem:[%s5712_s5 + $0x120] sm:$0xff] %vm2605_vm2, %v3802_v8  ;;  %3823 = vrcp.f32 %v2331_v34  ;;  %v1565_v12 = vpop.xlane.xlu1 %1564 }
 0x231   :  { %v3806_v13 = vpop.eup %3805  ;;  %2705 = vst.msk [vmem:[%s5712_s5 + $0x318] sm:$0xff] %vm2605_vm2, %v3804_v10  ;;  %3825 = vpow2.f32 %v2904_v2  ;;  %v1773_v14 = vadd.f32 %v4952_v63, %v1565_v12  ;;  %v2906_v30 = vmul.f32 -1.442695, %v1774_v18 }
 0x232   :  { %v3808_v16 = vpop.eup %3807  ;;  %v2332_v17 = vadd.f32 1.0, %v3806_v13  ;;  %3827 = vpow2.f32 %v2967_v9  ;;  %v1695_v27 = vpop.xlane.xlu0 %1694 }
 0x233   :  { %v3810_v19 = vpop.eup %3809  ;;  %v2269_v20 = vadd.f32 1.0, %v3808_v16  ;;  %3829 = vpow2.f32 %v2968_v11  ;;  %v2905_v21 = vmul.f32 -1.442695, %v1773_v14  ;;  %v1838_v31 = vadd.f32 %v4952_v63, %v1695_v27 }
 0x234   :  { %v3812_v22 = vpop.eup %3811  ;;  %3831 = vrcp.f32 %v2332_v17  ;;  %v2270_v23 = vadd.f32 1.0, %v3810_v19  ;;  %v1693_v24 = vpop.xlane.xlu1 %1692 }
 0x235   :  { %v3814_v25 = vpop.eup %3813  ;;  %2706 = vst.msk [vmem:[%s5712_s5 + $0x320] sm:$0xff] %vm2605_vm2, %v3812_v22  ;;  %3833 = vrcp.f32 %v2269_v20  ;;  %v1837_v26 = vadd.f32 %v4952_v63, %v1693_v24  ;;  %v2970_v37 = vmul.f32 -1.442695, %v1838_v31 }
 0x236   :  { %v3816_v28 = vpop.eup %3815  ;;  %3835 = vrcp.f32 %v2270_v23  ;;  %v2333_v29 = vadd.f32 1.0, %v3814_v25  ;;  %v1571_v39 = vpop.xlane.xlu0 %1570 }
 0x237   :  { %v3818_v32 = vpop.eup %3817  ;;  %v2334_v33 = vadd.f32 1.0, %v3816_v28  ;;  %3837 = vpow2.f32 %v2905_v21  ;;  %v2969_v35 = vmul.f32 -1.442695, %v1837_v26  ;;  %v1776_v42 = vadd.f32 %v4952_v63, %v1571_v39 }
 0x238   :  { %v3820_v59 = vpop.eup %3819  ;;  %2643 = vst.msk [vmem:[%s5712_s5 + $0x128] sm:$0xff] %vm2605_vm2, %v3818_v32  ;;  %3839 = vrcp.f32 %v2333_v29  ;;  %v1569_v36 = vpop.xlane.xlu1 %1568 }
 0x239   :  { %v3822_v4 = vpop.eup %3821  ;;  %2644 = vst.msk [vmem:[%s5712_s5 + $0x130] sm:$0xff] %vm2605_vm2, %v3820_v59  ;;  %3841 = vrcp.f32 %v2334_v33  ;;  %v1775_v38 = vadd.f32 %v4952_v63, %v1569_v36  ;;  %v2908_v53 = vmul.f32 -1.442695, %v1776_v42 }
 0x23a   :  { %v3824_v40 = vpop.eup %3823  ;;  %v2271_v41 = vadd.f32 1.0, %v3822_v4  ;;  %3843 = vpow2.f32 %v2906_v30  ;;  %v1699_v54 = vpop.xlane.xlu0 %1698 }
 0x23b   :  { %v3826_v43 = vpop.eup %3825  ;;  %2707 = vst.msk [vmem:[%s5712_s5 + $0x328] sm:$0xff] %vm2605_vm2, %v3824_v40  ;;  %3845 = vpow2.f32 %v2969_v35  ;;  %v2907_v48 = vmul.f32 -1.442695, %v1775_v38  ;;  %v1840_v57 = vadd.f32 %v4952_v63, %v1699_v54 }
 0x23c   :  { %v3828_v44 = vpop.eup %3827  ;;  %3847 = vrcp.f32 %v2271_v41  ;;  %v2272_v45 = vadd.f32 1.0, %v3826_v43  ;;  %v1697_v46 = vpop.xlane.xlu1 %1696 }
 0x23d   :  { %v3830_v47 = vpop.eup %3829  ;;  %v2335_v49 = vadd.f32 1.0, %v3828_v44  ;;  %3849 = vpow2.f32 %v2970_v37  ;;  %v1839_v50 = vadd.f32 %v4952_v63, %v1697_v46  ;;  %v2972_v62 = vmul.f32 -1.442695, %v1840_v57 }
 0x23e   :  { %v3832_v51 = vpop.eup %3831  ;;  %3851 = vrcp.f32 %v2272_v45  ;;  %v2336_v52 = vadd.f32 1.0, %v3830_v47  ;;  %v1575_v3 = vpop.xlane.xlu0 %1574 }
 0x23f   :  { %v3834_v55 = vpop.eup %3833  ;;  %2708 = vst.msk [vmem:[%s5712_s5 + $0x330] sm:$0xff] %vm2605_vm2, %v3832_v51  ;;  %3853 = vrcp.f32 %v2335_v49  ;;  %v2971_v56 = vmul.f32 -1.442695, %v1839_v50  ;;  %v1778_v34 = vadd.f32 %v4952_v63, %v1575_v3 }
 0x240   :  { %v3836_v58 = vpop.eup %3835  ;;  %2645 = vst.msk [vmem:[%s5712_s5 + $0x138] sm:$0xff] %vm2605_vm2, %v3834_v55  ;;  %3855 = vrcp.f32 %v2336_v52  ;;  %v1573_v60 = vpop.xlane.xlu1 %1572 }
 0x241   :  { %v3838_v61 = vpop.eup %3837  ;;  %2646 = vst.msk [vmem:[%s5712_s5 + $0x140] sm:$0xff] %vm2605_vm2, %v3836_v58  ;;  %3857 = vpow2.f32 %v2907_v48  ;;  %v1777_v0 = vadd.f32 %v4952_v63, %v1573_v60  ;;  %v2910_v10 = vmul.f32 -1.442695, %v1778_v34 }
 0x242   :  { %v3840_v1 = vpop.eup %3839  ;;  %v2273_v2 = vadd.f32 1.0, %v3838_v61  ;;  %3859 = vpow2.f32 %v2908_v53  ;;  %v1703_v14 = vpop.xlane.xlu0 %1702 }
 0x243   :  { %v3842_v5 = vpop.eup %3841  ;;  %2709 = vst.msk [vmem:[%s5712_s5 + $0x338] sm:$0xff] %vm2605_vm2, %v3840_v1  ;;  %3861 = vpow2.f32 %v2971_v56  ;;  %v2909_v6 = vmul.f32 -1.442695, %v1777_v0  ;;  %v1842_v17 = vadd.f32 %v4952_v63, %v1703_v14 }
 0x244   :  { %v3844_v7 = vpop.eup %3843  ;;  %2710 = vst.msk [vmem:[%s5712_s5 + $0x340] sm:$0xff] %vm2605_vm2, %v3842_v5  ;;  %3863 = vrcp.f32 %v2273_v2  ;;  %v1701_v13 = vpop.xlane.xlu1 %1700 }
 0x245   :  { %v3846_v8 = vpop.eup %3845  ;;  %v2274_v9 = vadd.f32 1.0, %v3844_v7  ;;  %3865 = vpow2.f32 %v2972_v62  ;;  %v1841_v16 = vadd.f32 %v4952_v63, %v1701_v13  ;;  %v2974_v22 = vmul.f32 -1.442695, %v1842_v17 }
 0x246   :  { %v3848_v11 = vpop.eup %3847  ;;  %v2337_v12 = vadd.f32 1.0, %v3846_v8  ;;  %3867 = vpow2.f32 %v2909_v6  ;;  %v1579_v25 = vpop.xlane.xlu0 %1578 }
 0x247   :  { %v3850_v15 = vpop.eup %3849  ;;  %2647 = vst.msk [vmem:[%s5712_s5 + $0x148] sm:$0xff] %vm2605_vm2, %v3848_v11  ;;  %3869 = vrcp.f32 %v2274_v9  ;;  %v2973_v21 = vmul.f32 -1.442695, %v1841_v16  ;;  %v1780_v30 = vadd.f32 %v4952_v63, %v1579_v25 }
 0x248   :  { %v3852_v18 = vpop.eup %3851  ;;  %3871 = vrcp.f32 %v2337_v12  ;;  %v2338_v19 = vadd.f32 1.0, %v3850_v15  ;;  %v1577_v24 = vpop.xlane.xlu1 %1576 }
 0x249   :  { %v3854_v20 = vpop.eup %3853  ;;  %2648 = vst.msk [vmem:[%s5712_s5 + $0x150] sm:$0xff] %vm2605_vm2, %v3852_v18  ;;  %3873 = vpow2.f32 %v2910_v10  ;;  %v1779_v27 = vadd.f32 %v4952_v63, %v1577_v24  ;;  %v2912_v42 = vmul.f32 -1.442695, %v1780_v30 }
 0x24a   :  { %v3856_v23 = vpop.eup %3855  ;;  %2711 = vst.msk [vmem:[%s5712_s5 + $0x348] sm:$0xff] %vm2605_vm2, %v3854_v20  ;;  %3875 = vrcp.f32 %v2338_v19  ;;  %v1707_v4 = vpop.xlane.xlu0 %1706 }
 0x24b   :  { %v3858_v26 = vpop.eup %3857  ;;  %2712 = vst.msk [vmem:[%s5712_s5 + $0x350] sm:$0xff] %vm2605_vm2, %v3856_v23  ;;  %3877 = vpow2.f32 %v2973_v21  ;;  %v2911_v33 = vmul.f32 -1.442695, %v1779_v27  ;;  %v1844_v39 = vadd.f32 %v4952_v63, %v1707_v4 }
 0x24c   :  { %v3860_v28 = vpop.eup %3859  ;;  %v2275_v29 = vadd.f32 1.0, %v3858_v26  ;;  %3879 = vpow2.f32 %v2974_v22  ;;  %v1705_v36 = vpop.xlane.xlu1 %1704 }
 0x24d   :  { %v3862_v31 = vpop.eup %3861  ;;  %v2276_v32 = vadd.f32 1.0, %v3860_v28  ;;  %v1843_v38 = vadd.f32 %v4952_v63, %v1705_v36  ;;  %v2976_v50 = vmul.f32 -1.442695, %v1844_v39 }
 0x24e   :  { %v3864_v35 = vpop.eup %3863  ;;  %3881 = vrcp.f32 %v2275_v29  ;;  %v2339_v59 = vadd.f32 1.0, %v3862_v31  ;;  %v1583_v49 = vpop.xlane.xlu0 %1582 }
 0x24f   :  { %v3866_v37 = vpop.eup %3865  ;;  %2649 = vst.msk [vmem:[%s5712_s5 + $0x158] sm:$0xff] %vm2605_vm2, %v3864_v35  ;;  %3883 = vrcp.f32 %v2276_v32  ;;  %v2975_v45 = vmul.f32 -1.442695, %v1843_v38  ;;  %v1782_v52 = vadd.f32 %v4952_v63, %v1583_v49 }
 0x250   :  { %v3868_v40 = vpop.eup %3867  ;;  %3885 = vrcp.f32 %v2339_v59  ;;  %v2340_v41 = vadd.f32 1.0, %v3866_v37  ;;  %v1581_v47 = vpop.xlane.xlu1 %1580 }
 0x251   :  { %v3870_v43 = vpop.eup %3869  ;;  %v2277_v44 = vadd.f32 1.0, %v3868_v40  ;;  %3887 = vpow2.f32 %v2911_v33  ;;  %v1781_v51 = vadd.f32 %v4952_v63, %v1581_v47  ;;  %v2914_v60 = vmul.f32 -1.442695, %v1782_v52 }
 0x252   :  { %v3872_v46 = vpop.eup %3871  ;;  %2650 = vst.msk [vmem:[%s5712_s5 + $0x160] sm:$0xff] %vm2605_vm2, %v3870_v43  ;;  %3889 = vrcp.f32 %v2340_v41  ;;  %v1711_v62 = vpop.xlane.xlu0 %1710 }
 0x253   :  { %v3874_v48 = vpop.eup %3873  ;;  %2713 = vst.msk [vmem:[%s5712_s5 + $0x358] sm:$0xff] %vm2605_vm2, %v3872_v46  ;;  %3891 = vrcp.f32 %v2277_v44  ;;  %v2913_v58 = vmul.f32 -1.442695, %v1781_v51  ;;  %v1846_v2 = vadd.f32 %v4952_v63, %v1711_v62 }
 0x254   :  { %v3876_v53 = vpop.eup %3875  ;;  %v2278_v54 = vadd.f32 1.0, %v3874_v48  ;;  %3893 = vpow2.f32 %v2912_v42  ;;  %v1709_v61 = vpop.xlane.xlu1 %1708 }
 0x255   :  { %v3878_v55 = vpop.eup %3877  ;;  %2714 = vst.msk [vmem:[%s5712_s5 + $0x360] sm:$0xff] %vm2605_vm2, %v3876_v53  ;;  %3895 = vpow2.f32 %v2975_v45  ;;  %v1845_v1 = vadd.f32 %v4952_v63, %v1709_v61  ;;  %v2978_v34 = vmul.f32 -1.442695, %v1846_v2 }
 0x256   :  { %v3880_v56 = vpop.eup %3879  ;;  %3897 = vrcp.f32 %v2278_v54  ;;  %v2341_v57 = vadd.f32 1.0, %v3878_v55  ;;  %v1587_v9 = vpop.xlane.xlu0 %1586 }
 0x257   :  { %v2342_v0 = vadd.f32 1.0, %v3880_v56  ;;  %3899 = vpow2.f32 %v2976_v50  ;;  %v2977_v6 = vmul.f32 -1.442695, %v1845_v1  ;;  %v1784_v12 = vadd.f32 %v4952_v63, %v1587_v9 }
 0x258   :  { %v3882_v3 = vpop.eup %3881  ;;  %3901 = vrcp.f32 %v2341_v57  ;;  %v1585_v8 = vpop.xlane.xlu1 %1584 }
 0x259   :  { %v3884_v5 = vpop.eup %3883  ;;  %2651 = vst.msk [vmem:[%s5712_s5 + $0x168] sm:$0xff] %vm2605_vm2, %v3882_v3  ;;  %3903 = vrcp.f32 %v2342_v0  ;;  %v1783_v11 = vadd.f32 %v4952_v63, %v1585_v8  ;;  %v2916_v17 = vmul.f32 -1.442695, %v1784_v12 }
 0x25a   :  { %v3886_v7 = vpop.eup %3885  ;;  %2652 = vst.msk [vmem:[%s5712_s5 + $0x170] sm:$0xff] %vm2605_vm2, %v3884_v5  ;;  %3905 = vpow2.f32 %v2913_v58  ;;  %v1715_v20 = vpop.xlane.xlu0 %1714 }
 0x25b   :  { %v3888_v10 = vpop.eup %3887  ;;  %2715 = vst.msk [vmem:[%s5712_s5 + $0x368] sm:$0xff] %vm2605_vm2, %v3886_v7  ;;  %3907 = vpow2.f32 %v2914_v60  ;;  %v2915_v16 = vmul.f32 -1.442695, %v1783_v11  ;;  %v1848_v24 = vadd.f32 %v4952_v63, %v1715_v20 }
 0x25c   :  { %v3890_v13 = vpop.eup %3889  ;;  %v2279_v14 = vadd.f32 1.0, %v3888_v10  ;;  %3909 = vpow2.f32 %v2977_v6  ;;  %v1713_v19 = vpop.xlane.xlu1 %1712 }
 0x25d   :  { %v3892_v15 = vpop.eup %3891  ;;  %2716 = vst.msk [vmem:[%s5712_s5 + $0x370] sm:$0xff] %vm2605_vm2, %v3890_v13  ;;  %3911 = vpow2.f32 %v2978_v34  ;;  %v1847_v23 = vadd.f32 %v4952_v63, %v1713_v19  ;;  %v2980_v29 = vmul.f32 -1.442695, %v1848_v24 }
 0x25e   :  { %v3894_v18 = vpop.eup %3893  ;;  %2653 = vst.msk [vmem:[%s5712_s5 + $0x178] sm:$0xff] %vm2605_vm2, %v3892_v15  ;;  %3913 = vrcp.f32 %v2279_v14  ;;  %v1591_v33 = vpop.xlane.xlu0 %1590 }
 0x25f   :  { %v3896_v21 = vpop.eup %3895  ;;  %v2280_v22 = vadd.f32 1.0, %v3894_v18  ;;  %3915 = vpow2.f32 %v2915_v16  ;;  %v2979_v28 = vmul.f32 -1.442695, %v1847_v23  ;;  %v1786_v40 = vadd.f32 %v4952_v63, %v1591_v33 }
 0x260   :  { %v3898_v25 = vpop.eup %3897  ;;  %v2343_v26 = vadd.f32 1.0, %v3896_v21  ;;  %3917 = vpow2.f32 %v2916_v17  ;;  %v1589_v32 = vpop.xlane.xlu1 %1588 }
 0x261   :  { %v3900_v27 = vpop.eup %3899  ;;  %2654 = vst.msk [vmem:[%s5712_s5 + $0x180] sm:$0xff] %vm2605_vm2, %v3898_v25  ;;  %3919 = vrcp.f32 %v2280_v22  ;;  %v1785_v59 = vadd.f32 %v4952_v63, %v1589_v32  ;;  %v2918_v53 = vmul.f32 -1.442695, %v1786_v40 }
 0x262   :  { %v3902_v30 = vpop.eup %3901  ;;  %3921 = vrcp.f32 %v2343_v26  ;;  %v2344_v31 = vadd.f32 1.0, %v3900_v27  ;;  %v1719_v42 = vpop.xlane.xlu0 %1718 }
 0x263   :  { %v3904_v35 = vpop.eup %3903  ;;  %2717 = vst.msk [vmem:[%s5712_s5 + $0x378] sm:$0xff] %vm2605_vm2, %v3902_v30  ;;  %3923 = vpow2.f32 %v2979_v28  ;;  %v2917_v45 = vmul.f32 -1.442695, %v1785_v59  ;;  %v1850_v50 = vadd.f32 %v4952_v63, %v1719_v42 }
 0x264   :  { %v3906_v36 = vpop.eup %3905  ;;  %2718 = vst.msk [vmem:[%s5712_s5 + $0x380] sm:$0xff] %vm2605_vm2, %v3904_v35  ;;  %3925 = vrcp.f32 %v2344_v31  ;;  %v1717_v41 = vpop.xlane.xlu1 %1716 }
 0x265   :  { %v3908_v4 = vpop.eup %3907  ;;  %v2281_v37 = vadd.f32 1.0, %v3906_v36  ;;  %3927 = vpow2.f32 %v2980_v29  ;;  %v1849_v46 = vadd.f32 %v4952_v63, %v1717_v41  ;;  %v2982_v1 = vmul.f32 -1.442695, %v1850_v50 }
 0x266   :  { %v3910_v38 = vpop.eup %3909  ;;  %v2282_v39 = vadd.f32 1.0, %v3908_v4  ;;  %v1595_v55 = vpop.xlane.xlu0 %1594 }
 0x267   :  { %v3912_v43 = vpop.eup %3911  ;;  %3929 = vrcp.f32 %v2281_v37  ;;  %v2345_v44 = vadd.f32 1.0, %v3910_v38  ;;  %v2981_v58 = vmul.f32 -1.442695, %v1849_v46  ;;  %v1788_v62 = vadd.f32 %v4952_v63, %v1595_v55 }
 0x268   :  { %v3914_v47 = vpop.eup %3913  ;;  %3931 = vrcp.f32 %v2282_v39  ;;  %v2346_v49 = vadd.f32 1.0, %v3912_v43  ;;  %v1593_v54 = vpop.xlane.xlu1 %1592 }
 0x269   :  { %v3916_v48 = vpop.eup %3915  ;;  %2655 = vst.msk [vmem:[%s5712_s5 + $0x188] sm:$0xff] %vm2605_vm2, %v3914_v47  ;;  %3933 = vrcp.f32 %v2345_v44  ;;  %v1787_v60 = vadd.f32 %v4952_v63, %v1593_v54  ;;  %v2920_v11 = vmul.f32 -1.442695, %v1788_v62 }
 0x26a   :  { %v3918_v51 = vpop.eup %3917  ;;  %3935 = vrcp.f32 %v2346_v49  ;;  %v2283_v52 = vadd.f32 1.0, %v3916_v48  ;;  %v1723_v6 = vpop.xlane.xlu0 %1722 }
 0x26b   :  { %v3920_v56 = vpop.eup %3919  ;;  %v2284_v57 = vadd.f32 1.0, %v3918_v51  ;;  %3937 = vpow2.f32 %v2917_v45  ;;  %v2919_v7 = vmul.f32 -1.442695, %v1787_v60  ;;  %v1852_v9 = vadd.f32 %v4952_v63, %v1723_v6 }
 0x26c   :  { %v3922_v61 = vpop.eup %3921  ;;  %2656 = vst.msk [vmem:[%s5712_s5 + $0x190] sm:$0xff] %vm2605_vm2, %v3920_v56  ;;  %3939 = vrcp.f32 %v2283_v52  ;;  %v1721_v5 = vpop.xlane.xlu1 %1720 }
 0x26d   :  { %v3924_v0 = vpop.eup %3923  ;;  %2719 = vst.msk [vmem:[%s5712_s5 + $0x388] sm:$0xff] %vm2605_vm2, %v3922_v61  ;;  %3941 = vrcp.f32 %v2284_v57  ;;  %v1851_v8 = vadd.f32 %v4952_v63, %v1721_v5  ;;  %v2984_v15 = vmul.f32 -1.442695, %v1852_v9 }
 0x26e   :  { %v3926_v2 = vpop.eup %3925  ;;  %v2347_v3 = vadd.f32 1.0, %v3924_v0  ;;  %3943 = vpow2.f32 %v2918_v53  ;;  %v1599_v17 = vpop.xlane.xlu0 %1598 }
 0x26f   :  { %v3928_v34 = vpop.eup %3927  ;;  %2720 = vst.msk [vmem:[%s5712_s5 + $0x390] sm:$0xff] %vm2605_vm2, %v3926_v2  ;;  %3945 = vpow2.f32 %v2981_v58  ;;  %v2983_v13 = vmul.f32 -1.442695, %v1851_v8  ;;  %v1790_v20 = vadd.f32 %v4952_v63, %v1599_v17 }
 0x270   :  { %3947 = vrcp.f32 %v2347_v3  ;;  %v2348_v10 = vadd.f32 1.0, %v3928_v34  ;;  %v1597_v16 = vpop.xlane.xlu1 %1596 }
 0x271   :  { %v3930_v12 = vpop.eup %3929  ;;  %3949 = vpow2.f32 %v2982_v1  ;;  %v1789_v19 = vadd.f32 %v4952_v63, %v1597_v16  ;;  %v2922_v24 = vmul.f32 -1.442695, %v1790_v20 }
 0x272   :  { %v3932_v14 = vpop.eup %3931  ;;  %2657 = vst.msk [vmem:[%s5712_s5 + $0x198] sm:$0xff] %vm2605_vm2, %v3930_v12  ;;  %3951 = vrcp.f32 %v2348_v10 }
 0x273   :  { %v3934_v18 = vpop.eup %3933  ;;  %2658 = vst.msk [vmem:[%s5712_s5 + $0x1a0] sm:$0xff] %vm2605_vm2, %v3932_v14  ;;  %3953 = vpow2.f32 %v2919_v7  ;;  %v2921_v23 = vmul.f32 -1.442695, %v1789_v19 }
 0x274   :  { %v3936_v21 = vpop.eup %3935  ;;  %2721 = vst.msk [vmem:[%s5712_s5 + $0x398] sm:$0xff] %vm2605_vm2, %v3934_v18  ;;  %3955 = vpow2.f32 %v2920_v11  ;;  %v1601_v27 = vpop.xlane.xlu1 %1600 }
 0x275   :  { %v3938_v22 = vpop.eup %3937  ;;  %2722 = vst.msk [vmem:[%s5712_s5 + $0x3a0] sm:$0xff] %vm2605_vm2, %v3936_v21  ;;  %3957 = vpow2.f32 %v2983_v13  ;;  %v1791_v29 = vadd.f32 %v4952_v63, %v1601_v27 }
 0x276   :  { %v3940_v25 = vpop.eup %3939  ;;  %v2285_v26 = vadd.f32 1.0, %v3938_v22  ;;  %3959 = vpow2.f32 %v2984_v15 }
 0x277   :  { %v3942_v28 = vpop.eup %3941  ;;  %2659 = vst.msk [vmem:[%s5712_s5 + $0x1a8] sm:$0xff] %vm2605_vm2, %v3940_v25  ;;  %3961 = vpow2.f32 %v2921_v23  ;;  %v2923_v33 = vmul.f32 -1.442695, %v1791_v29  ;;  %v1603_v35 = vpop.xlane.xlu0 %1602 }
 0x278   :  { %v3944_v30 = vpop.eup %3943  ;;  %2660 = vst.msk [vmem:[%s5712_s5 + $0x1b0] sm:$0xff] %vm2605_vm2, %v3942_v28  ;;  %3963 = vrcp.f32 %v2285_v26  ;;  %v1725_v4 = vpop.xlane.xlu1 %1724  ;;  %v1792_v43 = vadd.f32 %v4952_v63, %v1603_v35 }
 0x279   :  { %v3946_v31 = vpop.eup %3945  ;;  %v2286_v32 = vadd.f32 1.0, %v3944_v30  ;;  %3965 = vpow2.f32 %v2922_v24  ;;  %v1853_v38 = vadd.f32 %v4952_v63, %v1725_v4 }
 0x27a   :  { %v3948_v59 = vpop.eup %3947  ;;  %v2349_v36 = vadd.f32 1.0, %v3946_v31  ;;  %v2924_v54 = vmul.f32 -1.442695, %v1792_v43 }
 0x27b   :  { %v3950_v37 = vpop.eup %3949  ;;  %2723 = vst.msk [vmem:[%s5712_s5 + $0x3a8] sm:$0xff] %vm2605_vm2, %v3948_v59  ;;  %3967 = vrcp.f32 %v2286_v32  ;;  %v2985_v42 = vmul.f32 -1.442695, %v1853_v38  ;;  %v1727_v44 = vpop.xlane.xlu0 %1726 }
 0x27c   :  { %v3952_v39 = vpop.eup %3951  ;;  %3969 = vrcp.f32 %v2349_v36  ;;  %v2350_v40 = vadd.f32 1.0, %v3950_v37  ;;  %v1854_v48 = vadd.f32 %v4952_v63, %v1727_v44 }
 0x27d   :  { %v3954_v41 = vpop.eup %3953  ;;  %2724 = vst.msk [vmem:[%s5712_s5 + $0x3b0] sm:$0xff] %vm2605_vm2, %v3952_v39  ;;  %3971 = vpow2.f32 %v2923_v33 }
 0x27e   :  { %v3956_v45 = vpop.eup %3955  ;;  %3973 = vrcp.f32 %v2350_v40  ;;  %v2287_v46 = vadd.f32 1.0, %v3954_v41  ;;  %v2986_v58 = vmul.f32 -1.442695, %v1854_v48 }
 0x27f   :  { %v3958_v47 = vpop.eup %3957  ;;  %v2288_v49 = vadd.f32 1.0, %v3956_v45  ;;  %3975 = vpow2.f32 %v2985_v42 }
 0x280   :  { %v3960_v50 = vpop.eup %3959  ;;  %3977 = vrcp.f32 %v2287_v46  ;;  %v2351_v51 = vadd.f32 1.0, %v3958_v47 }
 0x281   :  { %v3962_v52 = vpop.eup %3961  ;;  %3979 = vrcp.f32 %v2288_v49  ;;  %v2352_v53 = vadd.f32 1.0, %v3960_v50 }
 0x282   :  { %v3964_v55 = vpop.eup %3963  ;;  %3981 = vrcp.f32 %v2351_v51  ;;  %v2289_v56 = vadd.f32 1.0, %v3962_v52 }
 0x283   :  { %v3966_v57 = vpop.eup %3965  ;;  %2661 = vst.msk [vmem:[%s5712_s5 + $0x1b8] sm:$0xff] %vm2605_vm2, %v3964_v55  ;;  %3983 = vrcp.f32 %v2352_v53 }
 0x284   :  { %3985 = vrcp.f32 %v2289_v56  ;;  %v2290_v63 = vadd.f32 1.0, %v3966_v57 }
 0x285   :  { %v3968_v60 = vpop.eup %3967  ;;  %3987 = vpow2.f32 %v2924_v54 }
 0x286   :  { %v3970_v61 = vpop.eup %3969  ;;  %2662 = vst.msk [vmem:[%s5712_s5 + $0x1c0] sm:$0xff] %vm2605_vm2, %v3968_v60  ;;  %3989 = vrcp.f32 %v2290_v63 }
 0x287   :  { %v3972_v62 = vpop.eup %3971  ;;  %2725 = vst.msk [vmem:[%s5712_s5 + $0x3b8] sm:$0xff] %vm2605_vm2, %v3970_v61  ;;  %3991 = vpow2.f32 %v2986_v58 }
 0x288   :  { %v3974_v0 = vpop.eup %3973  ;;  %v2291_v1 = vadd.f32 1.0, %v3972_v62 }
 0x289   :  { %v3976_v2 = vpop.eup %3975  ;;  %2726 = vst.msk [vmem:[%s5712_s5 + $0x3c0] sm:$0xff] %vm2605_vm2, %v3974_v0 }
 0x28a   :  { %v3978_v3 = vpop.eup %3977  ;;  %3993 = vrcp.f32 %v2291_v1  ;;  %v2353_v5 = vadd.f32 1.0, %v3976_v2 }
 0x28b   :  { %v3980_v6 = vpop.eup %3979  ;;  %2663 = vst.msk [vmem:[%s5712_s5 + $0x1c8] sm:$0xff] %vm2605_vm2, %v3978_v3 }
 0x28c   :  { %v3982_v34 = vpop.eup %3981  ;;  %2664 = vst.msk [vmem:[%s5712_s5 + $0x1d0] sm:$0xff] %vm2605_vm2, %v3980_v6  ;;  %3995 = vrcp.f32 %v2353_v5 }
 0x28d   :  { %v3984_v7 = vpop.eup %3983  ;;  %2727 = vst.msk [vmem:[%s5712_s5 + $0x3c8] sm:$0xff] %vm2605_vm2, %v3982_v34 }
 0x28e   :  { %v3986_v8 = vpop.eup %3985  ;;  %2728 = vst.msk [vmem:[%s5712_s5 + $0x3d0] sm:$0xff] %vm2605_vm2, %v3984_v7 }
 0x28f   :  { %v3988_v9 = vpop.eup %3987  ;;  %2665 = vst.msk [vmem:[%s5712_s5 + $0x1d8] sm:$0xff] %vm2605_vm2, %v3986_v8 }
 0x290   :  { %v3990_v10 = vpop.eup %3989  ;;  %v2292_v11 = vadd.f32 1.0, %v3988_v9 }
 0x291   :  { %v3992_v12 = vpop.eup %3991  ;;  %2666 = vst.msk [vmem:[%s5712_s5 + $0x1e0] sm:$0xff] %vm2605_vm2, %v3990_v10 }
 0x292   :  { %3997 = vrcp.f32 %v2292_v11  ;;  %v2354_v13 = vadd.f32 1.0, %v3992_v12 }
 0x294   :  { %v3994_v14 = vpop.eup %3993  ;;  %3999 = vrcp.f32 %v2354_v13 }
 0x295   :  { %2667 = vst.msk [vmem:[%s5712_s5 + $0x1e8] sm:$0xff] %vm2605_vm2, %v3994_v14 }
 0x296   :  { %v3996_v15 = vpop.eup %3995 }
 0x297   :  { %2729 = vst.msk [vmem:[%s5712_s5 + $0x3d8] sm:$0xff] %vm2605_vm2, %v3996_v15 }
 0x29c   :  { %v3998_v16 = vpop.eup %3997 }
 0x29d   :  { %2668 = vst.msk [vmem:[%s5712_s5 + $0x1f0] sm:$0xff] %vm2605_vm2, %v3998_v16 }
 0x29e   :  { %v4000_v17 = vpop.eup %3999 }
 0x29f   :  { %2730 = vst.msk [vmem:[%s5712_s5 + $0x3e0] sm:$0xff] %vm2605_vm2, %v4000_v17 }

</bundles_post_ra>
